<compile_context>
chip_gen: v5e
topology: v5e:2x2
jax: 0.10.0
libtpu: 0.0.40
codegen_flags: <defaults>
</compile_context>

<pallas_src>
import functools

import jax
import jax.numpy as jnp
from jax.experimental import pallas as pl
from jax.experimental.pallas import tpu as pltpu

_VS = 8  # tile-aligned start row of the valid region inside the conv scratch


# -----------------------------------------------------------------------------
# Fused kernel: one grid step = one group of branches x one ROI tile.
# -----------------------------------------------------------------------------
def _fused_kernel(*refs, G, num_convs, num_fcs, Nt, H, W, Cin, Cc):
    n_in = 1 + 2 * num_convs + 2 * num_fcs + 2
    x_ref = refs[0]
    conv_refs = refs[1:1 + 2 * num_convs]
    fc_refs = refs[1 + 2 * num_convs:1 + 2 * (num_convs + num_fcs)]
    off_w_ref = refs[n_in - 2]
    off_b_ref = refs[n_in - 1]
    o_ref = refs[n_in]
    pad_ref = refs[n_in + 1] if num_convs > 1 else None

    CW = Cc * W
    dfc = fc_refs[0].shape[-1]

    # Zero only the two halo rows (the interior is fully rewritten each layer).
    # Done every step: the branch-group axis is 'parallel', so no step may rely
    # on another step having zeroed the scratch.
    if pad_ref is not None:
        zrow = jnp.zeros((Nt, 1, CW), jnp.float32)
        pad_ref[:, _VS - 1:_VS, :] = zrow
        pad_ref[:, _VS + H:_VS + H + 1, :] = zrow

    def conv3x3_relu(xp, row0, w_ref, b_ref, g, cin):
        # xp: (Nt, rows, cin*W) activation, channel-major lanes, zero h-halo at
        #     rows row0 and row0+H+1 (valid rows are [row0+1, row0+1+H)).
        # w_ref[g, ky]: (cin*W, Cc*W) bf16 band matrix that already contains
        #     the kx taps (tridiagonal in w) and the w-edge zero padding.
        acc = jnp.zeros((Nt * H, CW), jnp.float32)
        for ky in range(3):
            slab = xp[:, row0 + ky:row0 + ky + H, :]
            slab = slab.reshape(Nt * H, cin * W).astype(jnp.bfloat16)
            acc = acc + jnp.dot(slab, w_ref[g, ky],
                                preferred_element_type=jnp.float32)
        return jnp.maximum(acc + b_ref[g], 0.0)            # (Nt*H, Cc*W) f32

    outs = []
    for g in range(G):                                     # unrolled branches
        # ---- conv stack ------------------------------------------------------
        h = conv3x3_relu(x_ref[g], 0, conv_refs[0], conv_refs[1], g, Cin)
        for l in range(1, num_convs):
            # Tile-aligned interior write (rows [_VS, _VS+H) of the scratch).
            pad_ref[:, _VS:_VS + H, :] = h.reshape(Nt, H, CW)
            h = conv3x3_relu(pad_ref, _VS - 1, conv_refs[2 * l],
                             conv_refs[2 * l + 1], g, Cc)

        # ---- fully connected stack --------------------------------------------
        # fc[0] weight rows were permuted at pack time to the kernel's
        # (h, c, w) order, so the conv output feeds it with no transpose.
        h3 = h.reshape(Nt, H, CW)
        acc = jnp.zeros((Nt, dfc), jnp.float32)
        for hh in range(H):
            acc = acc + jnp.dot(h3[:, hh, :].astype(jnp.bfloat16),
                                fc_refs[0][g, hh],
                                preferred_element_type=jnp.float32)
        h = jnp.maximum(acc + fc_refs[1][g], 0.0)
        for l in range(1, num_fcs):
            h = jnp.dot(h.astype(jnp.bfloat16), fc_refs[2 * l][g],
                        preferred_element_type=jnp.float32)
            h = jnp.maximum(h + fc_refs[2 * l + 1][g], 0.0)

        y = jnp.dot(h.astype(jnp.bfloat16), off_w_ref[g],
                    preferred_element_type=jnp.float32) + off_b_ref[g]
        outs.append(y)

    res = outs[0] if G == 1 else jnp.concatenate(outs, axis=-1)
    o_ref[0] = res.astype(o_ref.dtype)


# -----------------------------------------------------------------------------
# Parameter init (PyTorch-like per-branch layout)
# -----------------------------------------------------------------------------
def init_params(key, *, in_channels, conv_out_channels, fc_out_channels,
                num_convs, num_fcs, reg_num, expand_feature_num, roi_feat_size):
    roi_feat_area = roi_feat_size * roi_feat_size
    params = {"convs": [], "fcs": [], "fc_off": []}
    for _ in range(expand_feature_num):
        convs = []
        for i in range(num_convs):
            cin = in_channels if i == 0 else conv_out_channels
            key, kw, kb = jax.random.split(key, 3)
            w = jax.random.normal(kw, (3, 3, cin, conv_out_channels),
                                  jnp.float32) * (2.0 / (9 * cin)) ** 0.5
            b = jax.random.normal(kb, (conv_out_channels,), jnp.float32) * 0.01
            convs.append((w, b))
        params["convs"].append(convs)

        fcs = []
        for i in range(num_fcs):
            din = conv_out_channels * roi_feat_area if i == 0 else fc_out_channels
            key, kw, kb = jax.random.split(key, 3)
            w = jax.random.normal(kw, (din, fc_out_channels),
                                  jnp.float32) * (1.0 / din) ** 0.5
            b = jax.random.normal(kb, (fc_out_channels,), jnp.float32) * 0.01
            fcs.append((w, b))
        params["fcs"].append(fcs)

        key, kw, kb = jax.random.split(key, 3)
        w = jax.random.normal(kw, (fc_out_channels, reg_num), jnp.float32) * 0.01
        b = jnp.zeros((reg_num,), jnp.float32)
        params["fc_off"].append((w, b))
    return params


# -----------------------------------------------------------------------------
# Kernel-layout packing (done once, off the hot path)
# -----------------------------------------------------------------------------
def _band_matrices(w_hwio, W):
    """(3,3,cin,cout) conv weight -> (3, cin*W, cout*W) per-ky band matrices.

    With channel-major lanes (lane = c*W + w) a 3x3 'SAME' conv is
        out_row(h) = sum_ky  in_row(h + ky - 1) @ M[ky]
    where M[ky][ci*W + u, co*W + v] = w[ky, u - v + 1, ci, co] for |u - v| <= 1
    and 0 otherwise.  The w-edge zero padding is absorbed by the missing band
    entries, so no lane halo is needed in the activation.
    """
    u = jnp.arange(W)[:, None]
    v = jnp.arange(W)[None, :]
    d = u - v + 1
    valid = (d >= 0) & (d <= 2)
    d_clip = jnp.clip(d, 0, 2)
    cin, cout = int(w_hwio.shape[2]), int(w_hwio.shape[3])
    mats = []
    for ky in range(3):
        band = w_hwio[ky][d_clip]                           # (W, W, cin, cout)
        band = jnp.where(valid[:, :, None, None], band, 0.0)
        mats.append(band.transpose(2, 0, 3, 1).reshape(cin * W, cout * W))
    return jnp.stack(mats, 0)


def pack_params(params, *, roi_feat_size, weight_dtype=jnp.bfloat16):
    """Repack per-branch weights into the kernel's stacked, bf16, lane-dense
    layout:
      * conv weights -> (E, 3, cin*W, Cc*W) per-ky band matrices (3x smaller
        than the old 9-tap banding, bf16 halves it again),
      * conv biases  -> (E, 1, Cc*W) f32 with lane = co*W + w,
      * fc[0] weight -> (E, H, Cc*W, dfc), rows permuted CHW -> (h, c, w),
      * everything stacked on a leading branch axis.
    """
    H = W = roi_feat_size
    E = len(params["convs"])
    num_convs = len(params["convs"][0])
    num_fcs = len(params["fcs"][0])
    packed = {"conv_w": [], "conv_b": [], "fc_w": [], "fc_b": []}

    for l in range(num_convs):
        ws, bs = [], []
        for e in range(E):
            w, b = params["convs"][e][l]                    # (3,3,cin,cout)
            ws.append(_band_matrices(w, W).astype(weight_dtype))
            bs.append(jnp.repeat(b, W).reshape(1, -1))      # lane = co*W + w
        packed["conv_w"].append(jnp.stack(ws))              # (E,3,cin*W,Cc*W)
        packed["conv_b"].append(jnp.stack(bs).astype(jnp.float32))

    for l in range(num_fcs):
        ws, bs = [], []
        for e in range(E):
            w, b = params["fcs"][e][l]                      # (din, dout)
            if l == 0:
                dout = w.shape[1]
                c = w.shape[0] // (H * W)
                w = w.reshape(c, H, W, dout).transpose(1, 0, 2, 3)
                w = w.reshape(H, c * W, dout)               # (H, c*W, dout)
            ws.append(w.astype(weight_dtype))
            bs.append(b.reshape(1, -1))
        packed["fc_w"].append(jnp.stack(ws))
        packed["fc_b"].append(jnp.stack(bs).astype(jnp.float32))

    packed["off_w"] = jnp.stack(
        [params["fc_off"][e][0] for e in range(E)]).astype(weight_dtype)
    packed["off_b"] = jnp.stack(
        [params["fc_off"][e][1].reshape(1, -1) for e in range(E)]
    ).astype(jnp.float32)
    return packed


# -----------------------------------------------------------------------------
# Forward
# -----------------------------------------------------------------------------
def _default_num_groups(expand_feature_num):
    try:
        kind = jax.devices()[0].device_kind.lower()
    except Exception:
        kind = ""
    # v7x: 2 TensorCores -> keep 2 'parallel' grid steps so both get work.
    if "7" in kind and expand_feature_num % 2 == 0:
        return 2
    # v5e / v6e: 1 TensorCore -> collapse all branches into a single step.
    return 1


def offset_head_forward(x_nchw, packed, *, expand_feature_num, roi_feat_size,
                        num_groups=None, n_tile=None):
    N, Cin = int(x_nchw.shape[0]), int(x_nchw.shape[1])
    H = W = roi_feat_size
    E = expand_feature_num
    reg = int(packed["off_w"].shape[-1])
    if N == 0:
        # Faithful to PyTorch: x.new_empty(0, 2 * expand_feature_num).
        return jnp.zeros((0, 2 * E), x_nchw.dtype)

    num_convs = len(packed["conv_w"])
    num_fcs = len(packed["fc_w"])
    Cc = int(packed["conv_b"][0].shape[-1]) // W
    dfc = int(packed["fc_b"][0].shape[-1])
    CW = Cc * W

    if num_groups is None:
        num_groups = _default_num_groups(E)
    assert E % num_groups == 0
    G = E // num_groups

    # ROI tiling: one tile for small N; 256-ROI tiles for large N so the blocks
    # stay well inside v7x's 64 MiB VMEM.
    if n_tile is None:
        n_tile = N if N <= 256 else 256
    n_steps = -(-N // n_tile)
    Np = n_steps * n_tile

    # Rotation by {0,90,180,270} deg via affine_grid + grid_sample with the
    # module's theta on a square ROI feature is an exact pixel permutation
    # equal to rot90 — cheap XLA glue on the stacked input.
    x_in = x_nchw.astype(jnp.float32)
    if Np != N:
        x_in = jnp.pad(x_in, ((0, Np - N), (0, 0), (0, 0), (0, 0)))
    rots = jnp.stack([jnp.rot90(x_in, k=i, axes=(2, 3)) for i in range(E)], 0)
    # Channel-major lanes: (E, Np, H, Cin*W) with lane index = c*W + w.
    x_r = jnp.transpose(rots, (0, 1, 3, 2, 4)).reshape(E, Np, H, Cin * W)
    xpad = jnp.pad(x_r, ((0, 0), (0, 0), (1, 1), (0, 0)))   # h halo only

    inputs = [xpad]
    in_specs = [pl.BlockSpec((G, n_tile, H + 2, Cin * W),
                             lambda s, t: (s, t, 0, 0))]
    for l in range(num_convs):
        wcl, bcl = packed["conv_w"][l], packed["conv_b"][l]
        inputs += [wcl, bcl]
        in_specs += [pl.BlockSpec((G,) + wcl.shape[1:],
                                  lambda s, t: (s, 0, 0, 0)),
                     pl.BlockSpec((G,) + bcl.shape[1:],
                                  lambda s, t: (s, 0, 0))]
    for l in range(num_fcs):
        wfl, bfl = packed["fc_w"][l], packed["fc_b"][l]
        inputs += [wfl, bfl]
        wmap = ((lambda s, t: (s, 0, 0, 0)) if wfl.ndim == 4
                else (lambda s, t: (s, 0, 0)))
        in_specs += [pl.BlockSpec((G,) + wfl.shape[1:], wmap),
                     pl.BlockSpec((G,) + bfl.shape[1:],
                                  lambda s, t: (s, 0, 0))]
    inputs += [packed["off_w"], packed["off_b"]]
    in_specs += [pl.BlockSpec((G,) + packed["off_w"].shape[1:],
                              lambda s, t: (s, 0, 0)),
                 pl.BlockSpec((G,) + packed["off_b"].shape[1:],
                              lambda s, t: (s, 0, 0))]

    scratch = []
    if num_convs > 1:
        scratch = [pltpu.VMEM((n_tile, _VS + H + 1, CW), jnp.float32)]

    # Advisory cost estimate for XLA's scheduler around the kernel.
    flops = 0
    for l in range(num_convs):
        cin_l = Cin if l == 0 else Cc
        flops += 2 * E * N * H * W * 9 * cin_l * Cc
    flops += 2 * E * N * H * W * Cc * dfc
    flops += 2 * E * N * dfc * dfc * max(num_fcs - 1, 0)
    flops += 2 * E * N * dfc * reg
    w_bytes = sum(int(a.size) * a.dtype.itemsize
                  for a in (packed["conv_w"] + packed["conv_b"] +
                            packed["fc_w"] + packed["fc_b"] +
                            [packed["off_w"], packed["off_b"]]))
    bytes_accessed = int(w_bytes + xpad.size * xpad.dtype.itemsize
                         + num_groups * Np * G * reg * 4)
    ce = pl.CostEstimate(flops=int(flops), transcendentals=0,
                         bytes_accessed=bytes_accessed)

    kern = functools.partial(_fused_kernel, G=G, num_convs=num_convs,
                             num_fcs=num_fcs, Nt=n_tile, H=H, W=W,
                             Cin=Cin, Cc=Cc)
    out = pl.pallas_call(
        kern,
        out_shape=jax.ShapeDtypeStruct((num_groups, Np, G * reg), x_nchw.dtype),
        grid=(num_groups, n_steps),
        in_specs=in_specs,
        out_specs=pl.BlockSpec((1, n_tile, G * reg), lambda s, t: (s, t, 0)),
        scratch_shapes=scratch,
        compiler_params=pltpu.CompilerParams(
            dimension_semantics=("parallel", "arbitrary")),
        cost_estimate=ce,
    )(*inputs)

    # PyTorch: torch.cat(per_branch_offsets, dim=0) -> (E*N, reg_num), where
    # branch index e = group * G + g.
    out = out[:, :N, :].reshape(num_groups, N, G, reg)
    return jnp.transpose(out, (0, 2, 1, 3)).reshape(E * N, reg)


# -----------------------------------------------------------------------------
# Pure-JAX f32 reference (independent conv path + PyTorch CHW flatten order)
# -----------------------------------------------------------------------------
def _ref_forward(x_nchw, params, expand_feature_num):
    N = x_nchw.shape[0]
    x_nhwc = jnp.transpose(x_nchw, (0, 2, 3, 1))
    outs = []
    for idx in range(expand_feature_num):
        h = jnp.rot90(x_nhwc, k=idx, axes=(1, 2))
        for (w, b) in params["convs"][idx]:
            h = jax.lax.conv_general_dilated(
                h, w, (1, 1), "SAME",
                dimension_numbers=("NHWC", "HWIO", "NHWC"))
            h = jnp.maximum(h + b, 0.0)
        h = jnp.transpose(h, (0, 3, 1, 2)).reshape(N, -1)   # CHW flatten
        for (w, b) in params["fcs"][idx]:
            h = jnp.maximum(h @ w + b, 0.0)
        w, b = params["fc_off"][idx]
        outs.append(h @ w + b)
    return jnp.concatenate(outs, axis=0)


# -----------------------------------------------------------------------------
if __name__ == "__main__":
    N = 2                      # number of ROIs
    in_channels = 8
    conv_out_channels = 8
    fc_out_channels = 64
    num_convs = 2
    num_fcs = 2
    reg_num = 2
    expand_feature_num = 4
    roi_feat_size = 8          # square ROI feature

    key = jax.random.PRNGKey(0)
    key, kx = jax.random.split(key)
    x = jax.random.normal(kx, (N, in_channels, roi_feat_size, roi_feat_size),
                          jnp.float32)

    params = init_params(
        key,
        in_channels=in_channels,
        conv_out_channels=conv_out_channels,
        fc_out_channels=fc_out_channels,
        num_convs=num_convs,
        num_fcs=num_fcs,
        reg_num=reg_num,
        expand_feature_num=expand_feature_num,
        roi_feat_size=roi_feat_size,
    )
    packed = pack_params(params, roi_feat_size=roi_feat_size)

    fwd = jax.jit(functools.partial(offset_head_forward,
                                    expand_feature_num=expand_feature_num,
                                    roi_feat_size=roi_feat_size))
    out = jax.block_until_ready(fwd(x, packed))
    assert out.shape == (expand_feature_num * N, reg_num), out.shape

    ref = jax.block_until_ready(_ref_forward(x, params, expand_feature_num))
    # bf16 matmul operands (f32 accumulate): loosened tolerance vs f32 ref.
    max_err = float(jnp.max(jnp.abs(out - ref)))
    assert jnp.allclose(out, ref, atol=3e-2, rtol=3e-2), max_err

    print("KERNEL_OK")
</pallas_src>

<mosaic_0001>
module attributes {stable_mosaic.version = 11 : i64} {
  func.func @_fused_kernel(%arg0: i32, %arg1: i32, %arg2: memref<4x2x10x64xf32, #tpu.memory_space<vmem>>, %arg3: memref<4x3x64x64xbf16, #tpu.memory_space<vmem>>, %arg4: memref<4x1x64xf32, #tpu.memory_space<vmem>>, %arg5: memref<4x3x64x64xbf16, #tpu.memory_space<vmem>>, %arg6: memref<4x1x64xf32, #tpu.memory_space<vmem>>, %arg7: memref<4x8x64x64xbf16, #tpu.memory_space<vmem>>, %arg8: memref<4x1x64xf32, #tpu.memory_space<vmem>>, %arg9: memref<4x64x64xbf16, #tpu.memory_space<vmem>>, %arg10: memref<4x1x64xf32, #tpu.memory_space<vmem>>, %arg11: memref<4x64x2xbf16, #tpu.memory_space<vmem>>, %arg12: memref<4x1x2xf32, #tpu.memory_space<vmem>>, %arg13: memref<1x2x8xf32, #tpu.memory_space<vmem>>, %arg14: memref<2x17x64xf32, #tpu.memory_space<vmem>>) attributes {dimension_semantics = [#tpu.dimension_semantics<parallel>, #tpu.dimension_semantics<arbitrary>], iteration_bounds = array<i64: 1, 1>, scalar_prefetch = 0 : i64, scratch_operands = 1 : i64, tpu.core_type = #tpu.core_type<tc>, window_params = [{transform_indices = @transform_0, window_bounds = array<i64: 4, 2, 10, 64>}, {transform_indices = @transform_1, window_bounds = array<i64: 4, 3, 64, 64>}, {transform_indices = @transform_2, window_bounds = array<i64: 4, 1, 64>}, {transform_indices = @transform_3, window_bounds = array<i64: 4, 3, 64, 64>}, {transform_indices = @transform_4, window_bounds = array<i64: 4, 1, 64>}, {transform_indices = @transform_5, window_bounds = array<i64: 4, 8, 64, 64>}, {transform_indices = @transform_6, window_bounds = array<i64: 4, 1, 64>}, {transform_indices = @transform_7, window_bounds = array<i64: 4, 64, 64>}, {transform_indices = @transform_8, window_bounds = array<i64: 4, 1, 64>}, {transform_indices = @transform_9, window_bounds = array<i64: 4, 64, 2>}, {transform_indices = @transform_10, window_bounds = array<i64: 4, 1, 2>}, {transform_indices = @transform_11, window_bounds = array<i64: 1, 2, 8>}]} {
    %cst = arith.constant 0.000000e+00 : f32
    %0 = vector.broadcast %cst : f32 to vector<2x1x64xf32>
    %c0 = arith.constant 0 : index
    %c7 = arith.constant 7 : index
    %c0_0 = arith.constant 0 : index
    %1 = vector.load %arg14[%c0, %c7, %c0_0] : memref<2x17x64xf32, #tpu.memory_space<vmem>>, vector<2x1x64xf32>
    tpu.vector_store %arg14[%c0, %c7, %c0_0], %0 {strides = array<i32>} : memref<2x17x64xf32, #tpu.memory_space<vmem>>, vector<2x1x64xf32>,
    %c0_1 = arith.constant 0 : index
    %c16 = arith.constant 16 : index
    %c0_2 = arith.constant 0 : index
    %2 = vector.load %arg14[%c0_1, %c16, %c0_2] : memref<2x17x64xf32, #tpu.memory_space<vmem>>, vector<2x1x64xf32>
    tpu.vector_store %arg14[%c0_1, %c16, %c0_2], %0 {strides = array<i32>} : memref<2x17x64xf32, #tpu.memory_space<vmem>>, vector<2x1x64xf32>,
    %c0_3 = arith.constant 0 : index
    %c0_4 = arith.constant 0 : index
    %c0_5 = arith.constant 0 : index
    %c0_6 = arith.constant 0 : index
    %3 = vector.load %arg2[%c0_3, %c0_4, %c0_5, %c0_6] : memref<4x2x10x64xf32, #tpu.memory_space<vmem>>, vector<1x2x10x64xf32>
    %4 = vector.shape_cast %3 : vector<1x2x10x64xf32> to vector<2x10x64xf32>
    %cst_7 = arith.constant 0.000000e+00 : f32
    %5 = vector.broadcast %cst_7 : f32 to vector<16x64xf32>
    %6 = vector.extract_strided_slice %4 {offsets = [0, 0, 0], sizes = [2, 8, 64], strides = [1, 1, 1]} : vector<2x10x64xf32> to vector<2x8x64xf32>
    %7 = vector.shape_cast %6 : vector<2x8x64xf32> to vector<16x64xf32>
    %8 = arith.truncf %7 : vector<16x64xf32> to vector<16x64xbf16>
    %c0_8 = arith.constant 0 : index
    %c0_9 = arith.constant 0 : index
    %c0_10 = arith.constant 0 : index
    %c0_11 = arith.constant 0 : index
    %9 = vector.load %arg3[%c0_8, %c0_9, %c0_10, %c0_11] : memref<4x3x64x64xbf16, #tpu.memory_space<vmem>>, vector<1x1x64x64xbf16>
    %10 = vector.shape_cast %9 : vector<1x1x64x64xbf16> to vector<64x64xbf16>
    %cst_12 = arith.constant dense<0.000000e+00> : vector<16x64xf32>
    %11 = tpu.matmul %8, %10, %cst_12 {dimension_numbers = #tpu.dot_dimension_numbers<[1], [0], [0], [1], [0, 0, 1, 1], [], []>} : vector<16x64xbf16>, vector<64x64xbf16>, vector<16x64xf32> -> vector<16x64xf32>
    %12 = arith.addf %5, %11 : vector<16x64xf32>
    %13 = vector.extract_strided_slice %4 {offsets = [0, 1, 0], sizes = [2, 8, 64], strides = [1, 1, 1]} : vector<2x10x64xf32> to vector<2x8x64xf32>
    %14 = vector.shape_cast %13 : vector<2x8x64xf32> to vector<16x64xf32>
    %15 = arith.truncf %14 : vector<16x64xf32> to vector<16x64xbf16>
    %c0_13 = arith.constant 0 : index
    %c1 = arith.constant 1 : index
    %c0_14 = arith.constant 0 : index
    %c0_15 = arith.constant 0 : index
    %16 = vector.load %arg3[%c0_13, %c1, %c0_14, %c0_15] : memref<4x3x64x64xbf16, #tpu.memory_space<vmem>>, vector<1x1x64x64xbf16>
    %17 = vector.shape_cast %16 : vector<1x1x64x64xbf16> to vector<64x64xbf16>
    %cst_16 = arith.constant dense<0.000000e+00> : vector<16x64xf32>
    %18 = tpu.matmul %15, %17, %cst_16 {dimension_numbers = #tpu.dot_dimension_numbers<[1], [0], [0], [1], [0, 0, 1, 1], [], []>} : vector<16x64xbf16>, vector<64x64xbf16>, vector<16x64xf32> -> vector<16x64xf32>
    %19 = arith.addf %12, %18 : vector<16x64xf32>
    %20 = vector.extract_strided_slice %4 {offsets = [0, 2, 0], sizes = [2, 8, 64], strides = [1, 1, 1]} : vector<2x10x64xf32> to vector<2x8x64xf32>
    %21 = vector.shape_cast %20 : vector<2x8x64xf32> to vector<16x64xf32>
    %22 = arith.truncf %21 : vector<16x64xf32> to vector<16x64xbf16>
    %c0_17 = arith.constant 0 : index
    %c2 = arith.constant 2 : index
    %c0_18 = arith.constant 0 : index
    %c0_19 = arith.constant 0 : index
    %23 = vector.load %arg3[%c0_17, %c2, %c0_18, %c0_19] : memref<4x3x64x64xbf16, #tpu.memory_space<vmem>>, vector<1x1x64x64xbf16>
    %24 = vector.shape_cast %23 : vector<1x1x64x64xbf16> to vector<64x64xbf16>
    %cst_20 = arith.constant dense<0.000000e+00> : vector<16x64xf32>
    %25 = tpu.matmul %22, %24, %cst_20 {dimension_numbers = #tpu.dot_dimension_numbers<[1], [0], [0], [1], [0, 0, 1, 1], [], []>} : vector<16x64xbf16>, vector<64x64xbf16>, vector<16x64xf32> -> vector<16x64xf32>
    %26 = arith.addf %19, %25 : vector<16x64xf32>
    %c0_21 = arith.constant 0 : index
    %c0_22 = arith.constant 0 : index
    %c0_23 = arith.constant 0 : index
    %27 = vector.load %arg4[%c0_21, %c0_22, %c0_23] : memref<4x1x64xf32, #tpu.memory_space<vmem>>, vector<1x1x64xf32>
    %28 = vector.shape_cast %27 : vector<1x1x64xf32> to vector<1x64xf32>
    %29 = vector.broadcast %28 : vector<1x64xf32> to vector<16x64xf32>
    %30 = arith.addf %26, %29 : vector<16x64xf32>
    %cst_24 = arith.constant 0.000000e+00 : f32
    %31 = vector.broadcast %cst_24 : f32 to vector<16x64xf32>
    %32 = arith.maximumf %30, %31 : vector<16x64xf32>
    %33 = vector.shape_cast %32 : vector<16x64xf32> to vector<2x8x64xf32>
    %c0_25 = arith.constant 0 : index
    %c8 = arith.constant 8 : index
    %c0_26 = arith.constant 0 : index
    %34 = vector.load %arg14[%c0_25, %c8, %c0_26] : memref<2x17x64xf32, #tpu.memory_space<vmem>>, vector<2x8x64xf32>
    tpu.vector_store %arg14[%c0_25, %c8, %c0_26], %33 {strides = array<i32>} : memref<2x17x64xf32, #tpu.memory_space<vmem>>, vector<2x8x64xf32>,
    %cst_27 = arith.constant 0.000000e+00 : f32
    %35 = vector.broadcast %cst_27 : f32 to vector<16x64xf32>
    %c0_28 = arith.constant 0 : index
    %c7_29 = arith.constant 7 : index
    %c0_30 = arith.constant 0 : index
    %36 = vector.load %arg14[%c0_28, %c7_29, %c0_30] : memref<2x17x64xf32, #tpu.memory_space<vmem>>, vector<2x8x64xf32>
    %37 = vector.shape_cast %36 : vector<2x8x64xf32> to vector<16x64xf32>
    %38 = arith.truncf %37 : vector<16x64xf32> to vector<16x64xbf16>
    %c0_31 = arith.constant 0 : index
    %c0_32 = arith.constant 0 : index
    %c0_33 = arith.constant 0 : index
    %c0_34 = arith.constant 0 : index
    %39 = vector.load %arg5[%c0_31, %c0_32, %c0_33, %c0_34] : memref<4x3x64x64xbf16, #tpu.memory_space<vmem>>, vector<1x1x64x64xbf16>
    %40 = vector.shape_cast %39 : vector<1x1x64x64xbf16> to vector<64x64xbf16>
    %cst_35 = arith.constant dense<0.000000e+00> : vector<16x64xf32>
    %41 = tpu.matmul %38, %40, %cst_35 {dimension_numbers = #tpu.dot_dimension_numbers<[1], [0], [0], [1], [0, 0, 1, 1], [], []>} : vector<16x64xbf16>, vector<64x64xbf16>, vector<16x64xf32> -> vector<16x64xf32>
    %42 = arith.addf %35, %41 : vector<16x64xf32>
    %c0_36 = arith.constant 0 : index
    %c8_37 = arith.constant 8 : index
    %c0_38 = arith.constant 0 : index
    %43 = vector.load %arg14[%c0_36, %c8_37, %c0_38] : memref<2x17x64xf32, #tpu.memory_space<vmem>>, vector<2x8x64xf32>
    %44 = vector.shape_cast %43 : vector<2x8x64xf32> to vector<16x64xf32>
    %45 = arith.truncf %44 : vector<16x64xf32> to vector<16x64xbf16>
    %c0_39 = arith.constant 0 : index
    %c1_40 = arith.constant 1 : index
    %c0_41 = arith.constant 0 : index
    %c0_42 = arith.constant 0 : index
    %46 = vector.load %arg5[%c0_39, %c1_40, %c0_41, %c0_42] : memref<4x3x64x64xbf16, #tpu.memory_space<vmem>>, vector<1x1x64x64xbf16>
    %47 = vector.shape_cast %46 : vector<1x1x64x64xbf16> to vector<64x64xbf16>
    %cst_43 = arith.constant dense<0.000000e+00> : vector<16x64xf32>
    %48 = tpu.matmul %45, %47, %cst_43 {dimension_numbers = #tpu.dot_dimension_numbers<[1], [0], [0], [1], [0, 0, 1, 1], [], []>} : vector<16x64xbf16>, vector<64x64xbf16>, vector<16x64xf32> -> vector<16x64xf32>
    %49 = arith.addf %42, %48 : vector<16x64xf32>
    %c0_44 = arith.constant 0 : index
    %c9 = arith.constant 9 : index
    %c0_45 = arith.constant 0 : index
    %50 = vector.load %arg14[%c0_44, %c9, %c0_45] : memref<2x17x64xf32, #tpu.memory_space<vmem>>, vector<2x8x64xf32>
    %51 = vector.shape_cast %50 : vector<2x8x64xf32> to vector<16x64xf32>
    %52 = arith.truncf %51 : vector<16x64xf32> to vector<16x64xbf16>
    %c0_46 = arith.constant 0 : index
    %c2_47 = arith.constant 2 : index
    %c0_48 = arith.constant 0 : index
    %c0_49 = arith.constant 0 : index
    %53 = vector.load %arg5[%c0_46, %c2_47, %c0_48, %c0_49] : memref<4x3x64x64xbf16, #tpu.memory_space<vmem>>, vector<1x1x64x64xbf16>
    %54 = vector.shape_cast %53 : vector<1x1x64x64xbf16> to vector<64x64xbf16>
    %cst_50 = arith.constant dense<0.000000e+00> : vector<16x64xf32>
    %55 = tpu.matmul %52, %54, %cst_50 {dimension_numbers = #tpu.dot_dimension_numbers<[1], [0], [0], [1], [0, 0, 1, 1], [], []>} : vector<16x64xbf16>, vector<64x64xbf16>, vector<16x64xf32> -> vector<16x64xf32>
    %56 = arith.addf %49, %55 : vector<16x64xf32>
    %c0_51 = arith.constant 0 : index
    %c0_52 = arith.constant 0 : index
    %c0_53 = arith.constant 0 : index
    %57 = vector.load %arg6[%c0_51, %c0_52, %c0_53] : memref<4x1x64xf32, #tpu.memory_space<vmem>>, vector<1x1x64xf32>
    %58 = vector.shape_cast %57 : vector<1x1x64xf32> to vector<1x64xf32>
    %59 = vector.broadcast %58 : vector<1x64xf32> to vector<16x64xf32>
    %60 = arith.addf %56, %59 : vector<16x64xf32>
    %cst_54 = arith.constant 0.000000e+00 : f32
    %61 = vector.broadcast %cst_54 : f32 to vector<16x64xf32>
    %62 = arith.maximumf %60, %61 : vector<16x64xf32>
    %63 = vector.shape_cast %62 : vector<16x64xf32> to vector<2x8x64xf32>
    %cst_55 = arith.constant 0.000000e+00 : f32
    %64 = vector.broadcast %cst_55 : f32 to vector<2x64xf32>
    %65 = vector.extract_strided_slice %63 {offsets = [0, 0, 0], sizes = [2, 1, 64], strides = [1, 1, 1]} : vector<2x8x64xf32> to vector<2x1x64xf32>
    %66 = vector.shape_cast %65 : vector<2x1x64xf32> to vector<2x64xf32>
    %67 = arith.truncf %66 : vector<2x64xf32> to vector<2x64xbf16>
    %c0_56 = arith.constant 0 : index
    %c0_57 = arith.constant 0 : index
    %c0_58 = arith.constant 0 : index
    %c0_59 = arith.constant 0 : index
    %68 = vector.load %arg7[%c0_56, %c0_57, %c0_58, %c0_59] : memref<4x8x64x64xbf16, #tpu.memory_space<vmem>>, vector<1x1x64x64xbf16>
    %69 = vector.shape_cast %68 : vector<1x1x64x64xbf16> to vector<64x64xbf16>
    %cst_60 = arith.constant dense<0.000000e+00> : vector<2x64xf32>
    %70 = tpu.matmul %67, %69, %cst_60 {dimension_numbers = #tpu.dot_dimension_numbers<[1], [0], [0], [1], [0, 0, 1, 1], [], []>} : vector<2x64xbf16>, vector<64x64xbf16>, vector<2x64xf32> -> vector<2x64xf32>
    %71 = arith.addf %64, %70 : vector<2x64xf32>
    %72 = vector.extract_strided_slice %63 {offsets = [0, 1, 0], sizes = [2, 1, 64], strides = [1, 1, 1]} : vector<2x8x64xf32> to vector<2x1x64xf32>
    %73 = vector.shape_cast %72 : vector<2x1x64xf32> to vector<2x64xf32>
    %74 = arith.truncf %73 : vector<2x64xf32> to vector<2x64xbf16>
    %c0_61 = arith.constant 0 : index
    %c1_62 = arith.constant 1 : index
    %c0_63 = arith.constant 0 : index
    %c0_64 = arith.constant 0 : index
    %75 = vector.load %arg7[%c0_61, %c1_62, %c0_63, %c0_64] : memref<4x8x64x64xbf16, #tpu.memory_space<vmem>>, vector<1x1x64x64xbf16>
    %76 = vector.shape_cast %75 : vector<1x1x64x64xbf16> to vector<64x64xbf16>
    %cst_65 = arith.constant dense<0.000000e+00> : vector<2x64xf32>
    %77 = tpu.matmul %74, %76, %cst_65 {dimension_numbers = #tpu.dot_dimension_numbers<[1], [0], [0], [1], [0, 0, 1, 1], [], []>} : vector<2x64xbf16>, vector<64x64xbf16>, vector<2x64xf32> -> vector<2x64xf32>
    %78 = arith.addf %71, %77 : vector<2x64xf32>
    %79 = vector.extract_strided_slice %63 {offsets = [0, 2, 0], sizes = [2, 1, 64], strides = [1, 1, 1]} : vector<2x8x64xf32> to vector<2x1x64xf32>
    %80 = vector.shape_cast %79 : vector<2x1x64xf32> to vector<2x64xf32>
    %81 = arith.truncf %80 : vector<2x64xf32> to vector<2x64xbf16>
    %c0_66 = arith.constant 0 : index
    %c2_67 = arith.constant 2 : index
    %c0_68 = arith.constant 0 : index
    %c0_69 = arith.constant 0 : index
    %82 = vector.load %arg7[%c0_66, %c2_67, %c0_68, %c0_69] : memref<4x8x64x64xbf16, #tpu.memory_space<vmem>>, vector<1x1x64x64xbf16>
    %83 = vector.shape_cast %82 : vector<1x1x64x64xbf16> to vector<64x64xbf16>
    %cst_70 = arith.constant dense<0.000000e+00> : vector<2x64xf32>
    %84 = tpu.matmul %81, %83, %cst_70 {dimension_numbers = #tpu.dot_dimension_numbers<[1], [0], [0], [1], [0, 0, 1, 1], [], []>} : vector<2x64xbf16>, vector<64x64xbf16>, vector<2x64xf32> -> vector<2x64xf32>
    %85 = arith.addf %78, %84 : vector<2x64xf32>
    %86 = vector.extract_strided_slice %63 {offsets = [0, 3, 0], sizes = [2, 1, 64], strides = [1, 1, 1]} : vector<2x8x64xf32> to vector<2x1x64xf32>
    %87 = vector.shape_cast %86 : vector<2x1x64xf32> to vector<2x64xf32>
    %88 = arith.truncf %87 : vector<2x64xf32> to vector<2x64xbf16>
    %c0_71 = arith.constant 0 : index
    %c3 = arith.constant 3 : index
    %c0_72 = arith.constant 0 : index
    %c0_73 = arith.constant 0 : index
    %89 = vector.load %arg7[%c0_71, %c3, %c0_72, %c0_73] : memref<4x8x64x64xbf16, #tpu.memory_space<vmem>>, vector<1x1x64x64xbf16>
    %90 = vector.shape_cast %89 : vector<1x1x64x64xbf16> to vector<64x64xbf16>
    %cst_74 = arith.constant dense<0.000000e+00> : vector<2x64xf32>
    %91 = tpu.matmul %88, %90, %cst_74 {dimension_numbers = #tpu.dot_dimension_numbers<[1], [0], [0], [1], [0, 0, 1, 1], [], []>} : vector<2x64xbf16>, vector<64x64xbf16>, vector<2x64xf32> -> vector<2x64xf32>
    %92 = arith.addf %85, %91 : vector<2x64xf32>
    %93 = vector.extract_strided_slice %63 {offsets = [0, 4, 0], sizes = [2, 1, 64], strides = [1, 1, 1]} : vector<2x8x64xf32> to vector<2x1x64xf32>
    %94 = vector.shape_cast %93 : vector<2x1x64xf32> to vector<2x64xf32>
    %95 = arith.truncf %94 : vector<2x64xf32> to vector<2x64xbf16>
    %c0_75 = arith.constant 0 : index
    %c4 = arith.constant 4 : index
    %c0_76 = arith.constant 0 : index
    %c0_77 = arith.constant 0 : index
    %96 = vector.load %arg7[%c0_75, %c4, %c0_76, %c0_77] : memref<4x8x64x64xbf16, #tpu.memory_space<vmem>>, vector<1x1x64x64xbf16>
    %97 = vector.shape_cast %96 : vector<1x1x64x64xbf16> to vector<64x64xbf16>
    %cst_78 = arith.constant dense<0.000000e+00> : vector<2x64xf32>
    %98 = tpu.matmul %95, %97, %cst_78 {dimension_numbers = #tpu.dot_dimension_numbers<[1], [0], [0], [1], [0, 0, 1, 1], [], []>} : vector<2x64xbf16>, vector<64x64xbf16>, vector<2x64xf32> -> vector<2x64xf32>
    %99 = arith.addf %92, %98 : vector<2x64xf32>
    %100 = vector.extract_strided_slice %63 {offsets = [0, 5, 0], sizes = [2, 1, 64], strides = [1, 1, 1]} : vector<2x8x64xf32> to vector<2x1x64xf32>
    %101 = vector.shape_cast %100 : vector<2x1x64xf32> to vector<2x64xf32>
    %102 = arith.truncf %101 : vector<2x64xf32> to vector<2x64xbf16>
    %c0_79 = arith.constant 0 : index
    %c5 = arith.constant 5 : index
    %c0_80 = arith.constant 0 : index
    %c0_81 = arith.constant 0 : index
    %103 = vector.load %arg7[%c0_79, %c5, %c0_80, %c0_81] : memref<4x8x64x64xbf16, #tpu.memory_space<vmem>>, vector<1x1x64x64xbf16>
    %104 = vector.shape_cast %103 : vector<1x1x64x64xbf16> to vector<64x64xbf16>
    %cst_82 = arith.constant dense<0.000000e+00> : vector<2x64xf32>
    %105 = tpu.matmul %102, %104, %cst_82 {dimension_numbers = #tpu.dot_dimension_numbers<[1], [0], [0], [1], [0, 0, 1, 1], [], []>} : vector<2x64xbf16>, vector<64x64xbf16>, vector<2x64xf32> -> vector<2x64xf32>
    %106 = arith.addf %99, %105 : vector<2x64xf32>
    %107 = vector.extract_strided_slice %63 {offsets = [0, 6, 0], sizes = [2, 1, 64], strides = [1, 1, 1]} : vector<2x8x64xf32> to vector<2x1x64xf32>
    %108 = vector.shape_cast %107 : vector<2x1x64xf32> to vector<2x64xf32>
    %109 = arith.truncf %108 : vector<2x64xf32> to vector<2x64xbf16>
    %c0_83 = arith.constant 0 : index
    %c6 = arith.constant 6 : index
    %c0_84 = arith.constant 0 : index
    %c0_85 = arith.constant 0 : index
    %110 = vector.load %arg7[%c0_83, %c6, %c0_84, %c0_85] : memref<4x8x64x64xbf16, #tpu.memory_space<vmem>>, vector<1x1x64x64xbf16>
    %111 = vector.shape_cast %110 : vector<1x1x64x64xbf16> to vector<64x64xbf16>
    %cst_86 = arith.constant dense<0.000000e+00> : vector<2x64xf32>
    %112 = tpu.matmul %109, %111, %cst_86 {dimension_numbers = #tpu.dot_dimension_numbers<[1], [0], [0], [1], [0, 0, 1, 1], [], []>} : vector<2x64xbf16>, vector<64x64xbf16>, vector<2x64xf32> -> vector<2x64xf32>
    %113 = arith.addf %106, %112 : vector<2x64xf32>
    %114 = vector.extract_strided_slice %63 {offsets = [0, 7, 0], sizes = [2, 1, 64], strides = [1, 1, 1]} : vector<2x8x64xf32> to vector<2x1x64xf32>
    %115 = vector.shape_cast %114 : vector<2x1x64xf32> to vector<2x64xf32>
    %116 = arith.truncf %115 : vector<2x64xf32> to vector<2x64xbf16>
    %c0_87 = arith.constant 0 : index
    %c7_88 = arith.constant 7 : index
    %c0_89 = arith.constant 0 : index
    %c0_90 = arith.constant 0 : index
    %117 = vector.load %arg7[%c0_87, %c7_88, %c0_89, %c0_90] : memref<4x8x64x64xbf16, #tpu.memory_space<vmem>>, vector<1x1x64x64xbf16>
    %118 = vector.shape_cast %117 : vector<1x1x64x64xbf16> to vector<64x64xbf16>
    %cst_91 = arith.constant dense<0.000000e+00> : vector<2x64xf32>
    %119 = tpu.matmul %116, %118, %cst_91 {dimension_numbers = #tpu.dot_dimension_numbers<[1], [0], [0], [1], [0, 0, 1, 1], [], []>} : vector<2x64xbf16>, vector<64x64xbf16>, vector<2x64xf32> -> vector<2x64xf32>
    %120 = arith.addf %113, %119 : vector<2x64xf32>
    %c0_92 = arith.constant 0 : index
    %c0_93 = arith.constant 0 : index
    %c0_94 = arith.constant 0 : index
    %121 = vector.load %arg8[%c0_92, %c0_93, %c0_94] : memref<4x1x64xf32, #tpu.memory_space<vmem>>, vector<1x1x64xf32>
    %122 = vector.shape_cast %121 : vector<1x1x64xf32> to vector<1x64xf32>
    %123 = vector.broadcast %122 : vector<1x64xf32> to vector<2x64xf32>
    %124 = arith.addf %120, %123 : vector<2x64xf32>
    %cst_95 = arith.constant 0.000000e+00 : f32
    %125 = vector.broadcast %cst_95 : f32 to vector<2x64xf32>
    %126 = arith.maximumf %124, %125 : vector<2x64xf32>
    %127 = arith.truncf %126 : vector<2x64xf32> to vector<2x64xbf16>
    %c0_96 = arith.constant 0 : index
    %c0_97 = arith.constant 0 : index
    %c0_98 = arith.constant 0 : index
    %128 = vector.load %arg9[%c0_96, %c0_97, %c0_98] : memref<4x64x64xbf16, #tpu.memory_space<vmem>>, vector<1x64x64xbf16>
    %129 = vector.shape_cast %128 : vector<1x64x64xbf16> to vector<64x64xbf16>
    %cst_99 = arith.constant dense<0.000000e+00> : vector<2x64xf32>
    %130 = tpu.matmul %127, %129, %cst_99 {dimension_numbers = #tpu.dot_dimension_numbers<[1], [0], [0], [1], [0, 0, 1, 1], [], []>} : vector<2x64xbf16>, vector<64x64xbf16>, vector<2x64xf32> -> vector<2x64xf32>
    %c0_100 = arith.constant 0 : index
    %c0_101 = arith.constant 0 : index
    %c0_102 = arith.constant 0 : index
    %131 = vector.load %arg10[%c0_100, %c0_101, %c0_102] : memref<4x1x64xf32, #tpu.memory_space<vmem>>, vector<1x1x64xf32>
    %132 = vector.shape_cast %131 : vector<1x1x64xf32> to vector<1x64xf32>
    %133 = vector.broadcast %132 : vector<1x64xf32> to vector<2x64xf32>
    %134 = arith.addf %130, %133 : vector<2x64xf32>
    %cst_103 = arith.constant 0.000000e+00 : f32
    %135 = vector.broadcast %cst_103 : f32 to vector<2x64xf32>
    %136 = arith.maximumf %134, %135 : vector<2x64xf32>
    %137 = arith.truncf %136 : vector<2x64xf32> to vector<2x64xbf16>
    %c0_104 = arith.constant 0 : index
    %c0_105 = arith.constant 0 : index
    %c0_106 = arith.constant 0 : index
    %138 = vector.load %arg11[%c0_104, %c0_105, %c0_106] : memref<4x64x2xbf16, #tpu.memory_space<vmem>>, vector<1x64x2xbf16>
    %139 = vector.shape_cast %138 : vector<1x64x2xbf16> to vector<64x2xbf16>
    %cst_107 = arith.constant dense<0.000000e+00> : vector<2x2xf32>
    %140 = tpu.matmul %137, %139, %cst_107 {dimension_numbers = #tpu.dot_dimension_numbers<[1], [0], [0], [1], [0, 0, 1, 1], [], []>} : vector<2x64xbf16>, vector<64x2xbf16>, vector<2x2xf32> -> vector<2x2xf32>
    %c0_108 = arith.constant 0 : index
    %c0_109 = arith.constant 0 : index
    %c0_110 = arith.constant 0 : index
    %141 = vector.load %arg12[%c0_108, %c0_109, %c0_110] : memref<4x1x2xf32, #tpu.memory_space<vmem>>, vector<1x1x2xf32>
    %142 = vector.shape_cast %141 : vector<1x1x2xf32> to vector<1x2xf32>
    %143 = vector.broadcast %142 : vector<1x2xf32> to vector<2x2xf32>
    %144 = arith.addf %140, %143 : vector<2x2xf32>
    %c1_111 = arith.constant 1 : index
    %c0_112 = arith.constant 0 : index
    %c0_113 = arith.constant 0 : index
    %c0_114 = arith.constant 0 : index
    %145 = vector.load %arg2[%c1_111, %c0_112, %c0_113, %c0_114] : memref<4x2x10x64xf32, #tpu.memory_space<vmem>>, vector<1x2x10x64xf32>
    %146 = vector.shape_cast %145 : vector<1x2x10x64xf32> to vector<2x10x64xf32>
    %cst_115 = arith.constant 0.000000e+00 : f32
    %147 = vector.broadcast %cst_115 : f32 to vector<16x64xf32>
    %148 = vector.extract_strided_slice %146 {offsets = [0, 0, 0], sizes = [2, 8, 64], strides = [1, 1, 1]} : vector<2x10x64xf32> to vector<2x8x64xf32>
    %149 = vector.shape_cast %148 : vector<2x8x64xf32> to vector<16x64xf32>
    %150 = arith.truncf %149 : vector<16x64xf32> to vector<16x64xbf16>
    %c1_116 = arith.constant 1 : index
    %c0_117 = arith.constant 0 : index
    %c0_118 = arith.constant 0 : index
    %c0_119 = arith.constant 0 : index
    %151 = vector.load %arg3[%c1_116, %c0_117, %c0_118, %c0_119] : memref<4x3x64x64xbf16, #tpu.memory_space<vmem>>, vector<1x1x64x64xbf16>
    %152 = vector.shape_cast %151 : vector<1x1x64x64xbf16> to vector<64x64xbf16>
    %cst_120 = arith.constant dense<0.000000e+00> : vector<16x64xf32>
    %153 = tpu.matmul %150, %152, %cst_120 {dimension_numbers = #tpu.dot_dimension_numbers<[1], [0], [0], [1], [0, 0, 1, 1], [], []>} : vector<16x64xbf16>, vector<64x64xbf16>, vector<16x64xf32> -> vector<16x64xf32>
    %154 = arith.addf %147, %153 : vector<16x64xf32>
    %155 = vector.extract_strided_slice %146 {offsets = [0, 1, 0], sizes = [2, 8, 64], strides = [1, 1, 1]} : vector<2x10x64xf32> to vector<2x8x64xf32>
    %156 = vector.shape_cast %155 : vector<2x8x64xf32> to vector<16x64xf32>
    %157 = arith.truncf %156 : vector<16x64xf32> to vector<16x64xbf16>
    %c1_121 = arith.constant 1 : index
    %c1_122 = arith.constant 1 : index
    %c0_123 = arith.constant 0 : index
    %c0_124 = arith.constant 0 : index
    %158 = vector.load %arg3[%c1_121, %c1_122, %c0_123, %c0_124] : memref<4x3x64x64xbf16, #tpu.memory_space<vmem>>, vector<1x1x64x64xbf16>
    %159 = vector.shape_cast %158 : vector<1x1x64x64xbf16> to vector<64x64xbf16>
    %cst_125 = arith.constant dense<0.000000e+00> : vector<16x64xf32>
    %160 = tpu.matmul %157, %159, %cst_125 {dimension_numbers = #tpu.dot_dimension_numbers<[1], [0], [0], [1], [0, 0, 1, 1], [], []>} : vector<16x64xbf16>, vector<64x64xbf16>, vector<16x64xf32> -> vector<16x64xf32>
    %161 = arith.addf %154, %160 : vector<16x64xf32>
    %162 = vector.extract_strided_slice %146 {offsets = [0, 2, 0], sizes = [2, 8, 64], strides = [1, 1, 1]} : vector<2x10x64xf32> to vector<2x8x64xf32>
    %163 = vector.shape_cast %162 : vector<2x8x64xf32> to vector<16x64xf32>
    %164 = arith.truncf %163 : vector<16x64xf32> to vector<16x64xbf16>
    %c1_126 = arith.constant 1 : index
    %c2_127 = arith.constant 2 : index
    %c0_128 = arith.constant 0 : index
    %c0_129 = arith.constant 0 : index
    %165 = vector.load %arg3[%c1_126, %c2_127, %c0_128, %c0_129] : memref<4x3x64x64xbf16, #tpu.memory_space<vmem>>, vector<1x1x64x64xbf16>
    %166 = vector.shape_cast %165 : vector<1x1x64x64xbf16> to vector<64x64xbf16>
    %cst_130 = arith.constant dense<0.000000e+00> : vector<16x64xf32>
    %167 = tpu.matmul %164, %166, %cst_130 {dimension_numbers = #tpu.dot_dimension_numbers<[1], [0], [0], [1], [0, 0, 1, 1], [], []>} : vector<16x64xbf16>, vector<64x64xbf16>, vector<16x64xf32> -> vector<16x64xf32>
    %168 = arith.addf %161, %167 : vector<16x64xf32>
    %c1_131 = arith.constant 1 : index
    %c0_132 = arith.constant 0 : index
    %c0_133 = arith.constant 0 : index
    %169 = vector.load %arg4[%c1_131, %c0_132, %c0_133] : memref<4x1x64xf32, #tpu.memory_space<vmem>>, vector<1x1x64xf32>
    %170 = vector.shape_cast %169 : vector<1x1x64xf32> to vector<1x64xf32>
    %171 = vector.broadcast %170 : vector<1x64xf32> to vector<16x64xf32>
    %172 = arith.addf %168, %171 : vector<16x64xf32>
    %cst_134 = arith.constant 0.000000e+00 : f32
    %173 = vector.broadcast %cst_134 : f32 to vector<16x64xf32>
    %174 = arith.maximumf %172, %173 : vector<16x64xf32>
    %175 = vector.shape_cast %174 : vector<16x64xf32> to vector<2x8x64xf32>
    %c0_135 = arith.constant 0 : index
    %c8_136 = arith.constant 8 : index
    %c0_137 = arith.constant 0 : index
    %176 = vector.load %arg14[%c0_135, %c8_136, %c0_137] : memref<2x17x64xf32, #tpu.memory_space<vmem>>, vector<2x8x64xf32>
    tpu.vector_store %arg14[%c0_135, %c8_136, %c0_137], %175 {strides = array<i32>} : memref<2x17x64xf32, #tpu.memory_space<vmem>>, vector<2x8x64xf32>,
    %cst_138 = arith.constant 0.000000e+00 : f32
    %177 = vector.broadcast %cst_138 : f32 to vector<16x64xf32>
    %c0_139 = arith.constant 0 : index
    %c7_140 = arith.constant 7 : index
    %c0_141 = arith.constant 0 : index
    %178 = vector.load %arg14[%c0_139, %c7_140, %c0_141] : memref<2x17x64xf32, #tpu.memory_space<vmem>>, vector<2x8x64xf32>
    %179 = vector.shape_cast %178 : vector<2x8x64xf32> to vector<16x64xf32>
    %180 = arith.truncf %179 : vector<16x64xf32> to vector<16x64xbf16>
    %c1_142 = arith.constant 1 : index
    %c0_143 = arith.constant 0 : index
    %c0_144 = arith.constant 0 : index
    %c0_145 = arith.constant 0 : index
    %181 = vector.load %arg5[%c1_142, %c0_143, %c0_144, %c0_145] : memref<4x3x64x64xbf16, #tpu.memory_space<vmem>>, vector<1x1x64x64xbf16>
    %182 = vector.shape_cast %181 : vector<1x1x64x64xbf16> to vector<64x64xbf16>
    %cst_146 = arith.constant dense<0.000000e+00> : vector<16x64xf32>
    %183 = tpu.matmul %180, %182, %cst_146 {dimension_numbers = #tpu.dot_dimension_numbers<[1], [0], [0], [1], [0, 0, 1, 1], [], []>} : vector<16x64xbf16>, vector<64x64xbf16>, vector<16x64xf32> -> vector<16x64xf32>
    %184 = arith.addf %177, %183 : vector<16x64xf32>
    %c0_147 = arith.constant 0 : index
    %c8_148 = arith.constant 8 : index
    %c0_149 = arith.constant 0 : index
    %185 = vector.load %arg14[%c0_147, %c8_148, %c0_149] : memref<2x17x64xf32, #tpu.memory_space<vmem>>, vector<2x8x64xf32>
    %186 = vector.shape_cast %185 : vector<2x8x64xf32> to vector<16x64xf32>
    %187 = arith.truncf %186 : vector<16x64xf32> to vector<16x64xbf16>
    %c1_150 = arith.constant 1 : index
    %c1_151 = arith.constant 1 : index
    %c0_152 = arith.constant 0 : index
    %c0_153 = arith.constant 0 : index
    %188 = vector.load %arg5[%c1_150, %c1_151, %c0_152, %c0_153] : memref<4x3x64x64xbf16, #tpu.memory_space<vmem>>, vector<1x1x64x64xbf16>
    %189 = vector.shape_cast %188 : vector<1x1x64x64xbf16> to vector<64x64xbf16>
    %cst_154 = arith.constant dense<0.000000e+00> : vector<16x64xf32>
    %190 = tpu.matmul %187, %189, %cst_154 {dimension_numbers = #tpu.dot_dimension_numbers<[1], [0], [0], [1], [0, 0, 1, 1], [], []>} : vector<16x64xbf16>, vector<64x64xbf16>, vector<16x64xf32> -> vector<16x64xf32>
    %191 = arith.addf %184, %190 : vector<16x64xf32>
    %c0_155 = arith.constant 0 : index
    %c9_156 = arith.constant 9 : index
    %c0_157 = arith.constant 0 : index
    %192 = vector.load %arg14[%c0_155, %c9_156, %c0_157] : memref<2x17x64xf32, #tpu.memory_space<vmem>>, vector<2x8x64xf32>
    %193 = vector.shape_cast %192 : vector<2x8x64xf32> to vector<16x64xf32>
    %194 = arith.truncf %193 : vector<16x64xf32> to vector<16x64xbf16>
    %c1_158 = arith.constant 1 : index
    %c2_159 = arith.constant 2 : index
    %c0_160 = arith.constant 0 : index
    %c0_161 = arith.constant 0 : index
    %195 = vector.load %arg5[%c1_158, %c2_159, %c0_160, %c0_161] : memref<4x3x64x64xbf16, #tpu.memory_space<vmem>>, vector<1x1x64x64xbf16>
    %196 = vector.shape_cast %195 : vector<1x1x64x64xbf16> to vector<64x64xbf16>
    %cst_162 = arith.constant dense<0.000000e+00> : vector<16x64xf32>
    %197 = tpu.matmul %194, %196, %cst_162 {dimension_numbers = #tpu.dot_dimension_numbers<[1], [0], [0], [1], [0, 0, 1, 1], [], []>} : vector<16x64xbf16>, vector<64x64xbf16>, vector<16x64xf32> -> vector<16x64xf32>
    %198 = arith.addf %191, %197 : vector<16x64xf32>
    %c1_163 = arith.constant 1 : index
    %c0_164 = arith.constant 0 : index
    %c0_165 = arith.constant 0 : index
    %199 = vector.load %arg6[%c1_163, %c0_164, %c0_165] : memref<4x1x64xf32, #tpu.memory_space<vmem>>, vector<1x1x64xf32>
    %200 = vector.shape_cast %199 : vector<1x1x64xf32> to vector<1x64xf32>
    %201 = vector.broadcast %200 : vector<1x64xf32> to vector<16x64xf32>
    %202 = arith.addf %198, %201 : vector<16x64xf32>
    %cst_166 = arith.constant 0.000000e+00 : f32
    %203 = vector.broadcast %cst_166 : f32 to vector<16x64xf32>
    %204 = arith.maximumf %202, %203 : vector<16x64xf32>
    %205 = vector.shape_cast %204 : vector<16x64xf32> to vector<2x8x64xf32>
    %cst_167 = arith.constant 0.000000e+00 : f32
    %206 = vector.broadcast %cst_167 : f32 to vector<2x64xf32>
    %207 = vector.extract_strided_slice %205 {offsets = [0, 0, 0], sizes = [2, 1, 64], strides = [1, 1, 1]} : vector<2x8x64xf32> to vector<2x1x64xf32>
    %208 = vector.shape_cast %207 : vector<2x1x64xf32> to vector<2x64xf32>
    %209 = arith.truncf %208 : vector<2x64xf32> to vector<2x64xbf16>
    %c1_168 = arith.constant 1 : index
    %c0_169 = arith.constant 0 : index
    %c0_170 = arith.constant 0 : index
    %c0_171 = arith.constant 0 : index
    %210 = vector.load %arg7[%c1_168, %c0_169, %c0_170, %c0_171] : memref<4x8x64x64xbf16, #tpu.memory_space<vmem>>, vector<1x1x64x64xbf16>
    %211 = vector.shape_cast %210 : vector<1x1x64x64xbf16> to vector<64x64xbf16>
    %cst_172 = arith.constant dense<0.000000e+00> : vector<2x64xf32>
    %212 = tpu.matmul %209, %211, %cst_172 {dimension_numbers = #tpu.dot_dimension_numbers<[1], [0], [0], [1], [0, 0, 1, 1], [], []>} : vector<2x64xbf16>, vector<64x64xbf16>, vector<2x64xf32> -> vector<2x64xf32>
    %213 = arith.addf %206, %212 : vector<2x64xf32>
    %214 = vector.extract_strided_slice %205 {offsets = [0, 1, 0], sizes = [2, 1, 64], strides = [1, 1, 1]} : vector<2x8x64xf32> to vector<2x1x64xf32>
    %215 = vector.shape_cast %214 : vector<2x1x64xf32> to vector<2x64xf32>
    %216 = arith.truncf %215 : vector<2x64xf32> to vector<2x64xbf16>
    %c1_173 = arith.constant 1 : index
    %c1_174 = arith.constant 1 : index
    %c0_175 = arith.constant 0 : index
    %c0_176 = arith.constant 0 : index
    %217 = vector.load %arg7[%c1_173, %c1_174, %c0_175, %c0_176] : memref<4x8x64x64xbf16, #tpu.memory_space<vmem>>, vector<1x1x64x64xbf16>
    %218 = vector.shape_cast %217 : vector<1x1x64x64xbf16> to vector<64x64xbf16>
    %cst_177 = arith.constant dense<0.000000e+00> : vector<2x64xf32>
    %219 = tpu.matmul %216, %218, %cst_177 {dimension_numbers = #tpu.dot_dimension_numbers<[1], [0], [0], [1], [0, 0, 1, 1], [], []>} : vector<2x64xbf16>, vector<64x64xbf16>, vector<2x64xf32> -> vector<2x64xf32>
    %220 = arith.addf %213, %219 : vector<2x64xf32>
    %221 = vector.extract_strided_slice %205 {offsets = [0, 2, 0], sizes = [2, 1, 64], strides = [1, 1, 1]} : vector<2x8x64xf32> to vector<2x1x64xf32>
    %222 = vector.shape_cast %221 : vector<2x1x64xf32> to vector<2x64xf32>
    %223 = arith.truncf %222 : vector<2x64xf32> to vector<2x64xbf16>
    %c1_178 = arith.constant 1 : index
    %c2_179 = arith.constant 2 : index
    %c0_180 = arith.constant 0 : index
    %c0_181 = arith.constant 0 : index
    %224 = vector.load %arg7[%c1_178, %c2_179, %c0_180, %c0_181] : memref<4x8x64x64xbf16, #tpu.memory_space<vmem>>, vector<1x1x64x64xbf16>
    %225 = vector.shape_cast %224 : vector<1x1x64x64xbf16> to vector<64x64xbf16>
    %cst_182 = arith.constant dense<0.000000e+00> : vector<2x64xf32>
    %226 = tpu.matmul %223, %225, %cst_182 {dimension_numbers = #tpu.dot_dimension_numbers<[1], [0], [0], [1], [0, 0, 1, 1], [], []>} : vector<2x64xbf16>, vector<64x64xbf16>, vector<2x64xf32> -> vector<2x64xf32>
    %227 = arith.addf %220, %226 : vector<2x64xf32>
    %228 = vector.extract_strided_slice %205 {offsets = [0, 3, 0], sizes = [2, 1, 64], strides = [1, 1, 1]} : vector<2x8x64xf32> to vector<2x1x64xf32>
    %229 = vector.shape_cast %228 : vector<2x1x64xf32> to vector<2x64xf32>
    %230 = arith.truncf %229 : vector<2x64xf32> to vector<2x64xbf16>
    %c1_183 = arith.constant 1 : index
    %c3_184 = arith.constant 3 : index
    %c0_185 = arith.constant 0 : index
    %c0_186 = arith.constant 0 : index
    %231 = vector.load %arg7[%c1_183, %c3_184, %c0_185, %c0_186] : memref<4x8x64x64xbf16, #tpu.memory_space<vmem>>, vector<1x1x64x64xbf16>
    %232 = vector.shape_cast %231 : vector<1x1x64x64xbf16> to vector<64x64xbf16>
    %cst_187 = arith.constant dense<0.000000e+00> : vector<2x64xf32>
    %233 = tpu.matmul %230, %232, %cst_187 {dimension_numbers = #tpu.dot_dimension_numbers<[1], [0], [0], [1], [0, 0, 1, 1], [], []>} : vector<2x64xbf16>, vector<64x64xbf16>, vector<2x64xf32> -> vector<2x64xf32>
    %234 = arith.addf %227, %233 : vector<2x64xf32>
    %235 = vector.extract_strided_slice %205 {offsets = [0, 4, 0], sizes = [2, 1, 64], strides = [1, 1, 1]} : vector<2x8x64xf32> to vector<2x1x64xf32>
    %236 = vector.shape_cast %235 : vector<2x1x64xf32> to vector<2x64xf32>
    %237 = arith.truncf %236 : vector<2x64xf32> to vector<2x64xbf16>
    %c1_188 = arith.constant 1 : index
    %c4_189 = arith.constant 4 : index
    %c0_190 = arith.constant 0 : index
    %c0_191 = arith.constant 0 : index
    %238 = vector.load %arg7[%c1_188, %c4_189, %c0_190, %c0_191] : memref<4x8x64x64xbf16, #tpu.memory_space<vmem>>, vector<1x1x64x64xbf16>
    %239 = vector.shape_cast %238 : vector<1x1x64x64xbf16> to vector<64x64xbf16>
    %cst_192 = arith.constant dense<0.000000e+00> : vector<2x64xf32>
    %240 = tpu.matmul %237, %239, %cst_192 {dimension_numbers = #tpu.dot_dimension_numbers<[1], [0], [0], [1], [0, 0, 1, 1], [], []>} : vector<2x64xbf16>, vector<64x64xbf16>, vector<2x64xf32> -> vector<2x64xf32>
    %241 = arith.addf %234, %240 : vector<2x64xf32>
    %242 = vector.extract_strided_slice %205 {offsets = [0, 5, 0], sizes = [2, 1, 64], strides = [1, 1, 1]} : vector<2x8x64xf32> to vector<2x1x64xf32>
    %243 = vector.shape_cast %242 : vector<2x1x64xf32> to vector<2x64xf32>
    %244 = arith.truncf %243 : vector<2x64xf32> to vector<2x64xbf16>
    %c1_193 = arith.constant 1 : index
    %c5_194 = arith.constant 5 : index
    %c0_195 = arith.constant 0 : index
    %c0_196 = arith.constant 0 : index
    %245 = vector.load %arg7[%c1_193, %c5_194, %c0_195, %c0_196] : memref<4x8x64x64xbf16, #tpu.memory_space<vmem>>, vector<1x1x64x64xbf16>
    %246 = vector.shape_cast %245 : vector<1x1x64x64xbf16> to vector<64x64xbf16>
    %cst_197 = arith.constant dense<0.000000e+00> : vector<2x64xf32>
    %247 = tpu.matmul %244, %246, %cst_197 {dimension_numbers = #tpu.dot_dimension_numbers<[1], [0], [0], [1], [0, 0, 1, 1], [], []>} : vector<2x64xbf16>, vector<64x64xbf16>, vector<2x64xf32> -> vector<2x64xf32>
    %248 = arith.addf %241, %247 : vector<2x64xf32>
    %249 = vector.extract_strided_slice %205 {offsets = [0, 6, 0], sizes = [2, 1, 64], strides = [1, 1, 1]} : vector<2x8x64xf32> to vector<2x1x64xf32>
    %250 = vector.shape_cast %249 : vector<2x1x64xf32> to vector<2x64xf32>
    %251 = arith.truncf %250 : vector<2x64xf32> to vector<2x64xbf16>
    %c1_198 = arith.constant 1 : index
    %c6_199 = arith.constant 6 : index
    %c0_200 = arith.constant 0 : index
    %c0_201 = arith.constant 0 : index
    %252 = vector.load %arg7[%c1_198, %c6_199, %c0_200, %c0_201] : memref<4x8x64x64xbf16, #tpu.memory_space<vmem>>, vector<1x1x64x64xbf16>
    %253 = vector.shape_cast %252 : vector<1x1x64x64xbf16> to vector<64x64xbf16>
    %cst_202 = arith.constant dense<0.000000e+00> : vector<2x64xf32>
    %254 = tpu.matmul %251, %253, %cst_202 {dimension_numbers = #tpu.dot_dimension_numbers<[1], [0], [0], [1], [0, 0, 1, 1], [], []>} : vector<2x64xbf16>, vector<64x64xbf16>, vector<2x64xf32> -> vector<2x64xf32>
    %255 = arith.addf %248, %254 : vector<2x64xf32>
    %256 = vector.extract_strided_slice %205 {offsets = [0, 7, 0], sizes = [2, 1, 64], strides = [1, 1, 1]} : vector<2x8x64xf32> to vector<2x1x64xf32>
    %257 = vector.shape_cast %256 : vector<2x1x64xf32> to vector<2x64xf32>
    %258 = arith.truncf %257 : vector<2x64xf32> to vector<2x64xbf16>
    %c1_203 = arith.constant 1 : index
    %c7_204 = arith.constant 7 : index
    %c0_205 = arith.constant 0 : index
    %c0_206 = arith.constant 0 : index
    %259 = vector.load %arg7[%c1_203, %c7_204, %c0_205, %c0_206] : memref<4x8x64x64xbf16, #tpu.memory_space<vmem>>, vector<1x1x64x64xbf16>
    %260 = vector.shape_cast %259 : vector<1x1x64x64xbf16> to vector<64x64xbf16>
    %cst_207 = arith.constant dense<0.000000e+00> : vector<2x64xf32>
    %261 = tpu.matmul %258, %260, %cst_207 {dimension_numbers = #tpu.dot_dimension_numbers<[1], [0], [0], [1], [0, 0, 1, 1], [], []>} : vector<2x64xbf16>, vector<64x64xbf16>, vector<2x64xf32> -> vector<2x64xf32>
    %262 = arith.addf %255, %261 : vector<2x64xf32>
    %c1_208 = arith.constant 1 : index
    %c0_209 = arith.constant 0 : index
    %c0_210 = arith.constant 0 : index
    %263 = vector.load %arg8[%c1_208, %c0_209, %c0_210] : memref<4x1x64xf32, #tpu.memory_space<vmem>>, vector<1x1x64xf32>
    %264 = vector.shape_cast %263 : vector<1x1x64xf32> to vector<1x64xf32>
    %265 = vector.broadcast %264 : vector<1x64xf32> to vector<2x64xf32>
    %266 = arith.addf %262, %265 : vector<2x64xf32>
    %cst_211 = arith.constant 0.000000e+00 : f32
    %267 = vector.broadcast %cst_211 : f32 to vector<2x64xf32>
    %268 = arith.maximumf %266, %267 : vector<2x64xf32>
    %269 = arith.truncf %268 : vector<2x64xf32> to vector<2x64xbf16>
    %c1_212 = arith.constant 1 : index
    %c0_213 = arith.constant 0 : index
    %c0_214 = arith.constant 0 : index
    %270 = vector.load %arg9[%c1_212, %c0_213, %c0_214] : memref<4x64x64xbf16, #tpu.memory_space<vmem>>, vector<1x64x64xbf16>
    %271 = vector.shape_cast %270 : vector<1x64x64xbf16> to vector<64x64xbf16>
    %cst_215 = arith.constant dense<0.000000e+00> : vector<2x64xf32>
    %272 = tpu.matmul %269, %271, %cst_215 {dimension_numbers = #tpu.dot_dimension_numbers<[1], [0], [0], [1], [0, 0, 1, 1], [], []>} : vector<2x64xbf16>, vector<64x64xbf16>, vector<2x64xf32> -> vector<2x64xf32>
    %c1_216 = arith.constant 1 : index
    %c0_217 = arith.constant 0 : index
    %c0_218 = arith.constant 0 : index
    %273 = vector.load %arg10[%c1_216, %c0_217, %c0_218] : memref<4x1x64xf32, #tpu.memory_space<vmem>>, vector<1x1x64xf32>
    %274 = vector.shape_cast %273 : vector<1x1x64xf32> to vector<1x64xf32>
    %275 = vector.broadcast %274 : vector<1x64xf32> to vector<2x64xf32>
    %276 = arith.addf %272, %275 : vector<2x64xf32>
    %cst_219 = arith.constant 0.000000e+00 : f32
    %277 = vector.broadcast %cst_219 : f32 to vector<2x64xf32>
    %278 = arith.maximumf %276, %277 : vector<2x64xf32>
    %279 = arith.truncf %278 : vector<2x64xf32> to vector<2x64xbf16>
    %c1_220 = arith.constant 1 : index
    %c0_221 = arith.constant 0 : index
    %c0_222 = arith.constant 0 : index
    %280 = vector.load %arg11[%c1_220, %c0_221, %c0_222] : memref<4x64x2xbf16, #tpu.memory_space<vmem>>, vector<1x64x2xbf16>
    %281 = vector.shape_cast %280 : vector<1x64x2xbf16> to vector<64x2xbf16>
    %cst_223 = arith.constant dense<0.000000e+00> : vector<2x2xf32>
    %282 = tpu.matmul %279, %281, %cst_223 {dimension_numbers = #tpu.dot_dimension_numbers<[1], [0], [0], [1], [0, 0, 1, 1], [], []>} : vector<2x64xbf16>, vector<64x2xbf16>, vector<2x2xf32> -> vector<2x2xf32>
    %c1_224 = arith.constant 1 : index
    %c0_225 = arith.constant 0 : index
    %c0_226 = arith.constant 0 : index
    %283 = vector.load %arg12[%c1_224, %c0_225, %c0_226] : memref<4x1x2xf32, #tpu.memory_space<vmem>>, vector<1x1x2xf32>
    %284 = vector.shape_cast %283 : vector<1x1x2xf32> to vector<1x2xf32>
    %285 = vector.broadcast %284 : vector<1x2xf32> to vector<2x2xf32>
    %286 = arith.addf %282, %285 : vector<2x2xf32>
    %c2_227 = arith.constant 2 : index
    %c0_228 = arith.constant 0 : index
    %c0_229 = arith.constant 0 : index
    %c0_230 = arith.constant 0 : index
    %287 = vector.load %arg2[%c2_227, %c0_228, %c0_229, %c0_230] : memref<4x2x10x64xf32, #tpu.memory_space<vmem>>, vector<1x2x10x64xf32>
    %288 = vector.shape_cast %287 : vector<1x2x10x64xf32> to vector<2x10x64xf32>
    %cst_231 = arith.constant 0.000000e+00 : f32
    %289 = vector.broadcast %cst_231 : f32 to vector<16x64xf32>
    %290 = vector.extract_strided_slice %288 {offsets = [0, 0, 0], sizes = [2, 8, 64], strides = [1, 1, 1]} : vector<2x10x64xf32> to vector<2x8x64xf32>
    %291 = vector.shape_cast %290 : vector<2x8x64xf32> to vector<16x64xf32>
    %292 = arith.truncf %291 : vector<16x64xf32> to vector<16x64xbf16>
    %c2_232 = arith.constant 2 : index
    %c0_233 = arith.constant 0 : index
    %c0_234 = arith.constant 0 : index
    %c0_235 = arith.constant 0 : index
    %293 = vector.load %arg3[%c2_232, %c0_233, %c0_234, %c0_235] : memref<4x3x64x64xbf16, #tpu.memory_space<vmem>>, vector<1x1x64x64xbf16>
    %294 = vector.shape_cast %293 : vector<1x1x64x64xbf16> to vector<64x64xbf16>
    %cst_236 = arith.constant dense<0.000000e+00> : vector<16x64xf32>
    %295 = tpu.matmul %292, %294, %cst_236 {dimension_numbers = #tpu.dot_dimension_numbers<[1], [0], [0], [1], [0, 0, 1, 1], [], []>} : vector<16x64xbf16>, vector<64x64xbf16>, vector<16x64xf32> -> vector<16x64xf32>
    %296 = arith.addf %289, %295 : vector<16x64xf32>
    %297 = vector.extract_strided_slice %288 {offsets = [0, 1, 0], sizes = [2, 8, 64], strides = [1, 1, 1]} : vector<2x10x64xf32> to vector<2x8x64xf32>
    %298 = vector.shape_cast %297 : vector<2x8x64xf32> to vector<16x64xf32>
    %299 = arith.truncf %298 : vector<16x64xf32> to vector<16x64xbf16>
    %c2_237 = arith.constant 2 : index
    %c1_238 = arith.constant 1 : index
    %c0_239 = arith.constant 0 : index
    %c0_240 = arith.constant 0 : index
    %300 = vector.load %arg3[%c2_237, %c1_238, %c0_239, %c0_240] : memref<4x3x64x64xbf16, #tpu.memory_space<vmem>>, vector<1x1x64x64xbf16>
    %301 = vector.shape_cast %300 : vector<1x1x64x64xbf16> to vector<64x64xbf16>
    %cst_241 = arith.constant dense<0.000000e+00> : vector<16x64xf32>
    %302 = tpu.matmul %299, %301, %cst_241 {dimension_numbers = #tpu.dot_dimension_numbers<[1], [0], [0], [1], [0, 0, 1, 1], [], []>} : vector<16x64xbf16>, vector<64x64xbf16>, vector<16x64xf32> -> vector<16x64xf32>
    %303 = arith.addf %296, %302 : vector<16x64xf32>
    %304 = vector.extract_strided_slice %288 {offsets = [0, 2, 0], sizes = [2, 8, 64], strides = [1, 1, 1]} : vector<2x10x64xf32> to vector<2x8x64xf32>
    %305 = vector.shape_cast %304 : vector<2x8x64xf32> to vector<16x64xf32>
    %306 = arith.truncf %305 : vector<16x64xf32> to vector<16x64xbf16>
    %c2_242 = arith.constant 2 : index
    %c2_243 = arith.constant 2 : index
    %c0_244 = arith.constant 0 : index
    %c0_245 = arith.constant 0 : index
    %307 = vector.load %arg3[%c2_242, %c2_243, %c0_244, %c0_245] : memref<4x3x64x64xbf16, #tpu.memory_space<vmem>>, vector<1x1x64x64xbf16>
    %308 = vector.shape_cast %307 : vector<1x1x64x64xbf16> to vector<64x64xbf16>
    %cst_246 = arith.constant dense<0.000000e+00> : vector<16x64xf32>
    %309 = tpu.matmul %306, %308, %cst_246 {dimension_numbers = #tpu.dot_dimension_numbers<[1], [0], [0], [1], [0, 0, 1, 1], [], []>} : vector<16x64xbf16>, vector<64x64xbf16>, vector<16x64xf32> -> vector<16x64xf32>
    %310 = arith.addf %303, %309 : vector<16x64xf32>
    %c2_247 = arith.constant 2 : index
    %c0_248 = arith.constant 0 : index
    %c0_249 = arith.constant 0 : index
    %311 = vector.load %arg4[%c2_247, %c0_248, %c0_249] : memref<4x1x64xf32, #tpu.memory_space<vmem>>, vector<1x1x64xf32>
    %312 = vector.shape_cast %311 : vector<1x1x64xf32> to vector<1x64xf32>
    %313 = vector.broadcast %312 : vector<1x64xf32> to vector<16x64xf32>
    %314 = arith.addf %310, %313 : vector<16x64xf32>
    %cst_250 = arith.constant 0.000000e+00 : f32
    %315 = vector.broadcast %cst_250 : f32 to vector<16x64xf32>
    %316 = arith.maximumf %314, %315 : vector<16x64xf32>
    %317 = vector.shape_cast %316 : vector<16x64xf32> to vector<2x8x64xf32>
    %c0_251 = arith.constant 0 : index
    %c8_252 = arith.constant 8 : index
    %c0_253 = arith.constant 0 : index
    %318 = vector.load %arg14[%c0_251, %c8_252, %c0_253] : memref<2x17x64xf32, #tpu.memory_space<vmem>>, vector<2x8x64xf32>
    tpu.vector_store %arg14[%c0_251, %c8_252, %c0_253], %317 {strides = array<i32>} : memref<2x17x64xf32, #tpu.memory_space<vmem>>, vector<2x8x64xf32>,
    %cst_254 = arith.constant 0.000000e+00 : f32
    %319 = vector.broadcast %cst_254 : f32 to vector<16x64xf32>
    %c0_255 = arith.constant 0 : index
    %c7_256 = arith.constant 7 : index
    %c0_257 = arith.constant 0 : index
    %320 = vector.load %arg14[%c0_255, %c7_256, %c0_257] : memref<2x17x64xf32, #tpu.memory_space<vmem>>, vector<2x8x64xf32>
    %321 = vector.shape_cast %320 : vector<2x8x64xf32> to vector<16x64xf32>
    %322 = arith.truncf %321 : vector<16x64xf32> to vector<16x64xbf16>
    %c2_258 = arith.constant 2 : index
    %c0_259 = arith.constant 0 : index
    %c0_260 = arith.constant 0 : index
    %c0_261 = arith.constant 0 : index
    %323 = vector.load %arg5[%c2_258, %c0_259, %c0_260, %c0_261] : memref<4x3x64x64xbf16, #tpu.memory_space<vmem>>, vector<1x1x64x64xbf16>
    %324 = vector.shape_cast %323 : vector<1x1x64x64xbf16> to vector<64x64xbf16>
    %cst_262 = arith.constant dense<0.000000e+00> : vector<16x64xf32>
    %325 = tpu.matmul %322, %324, %cst_262 {dimension_numbers = #tpu.dot_dimension_numbers<[1], [0], [0], [1], [0, 0, 1, 1], [], []>} : vector<16x64xbf16>, vector<64x64xbf16>, vector<16x64xf32> -> vector<16x64xf32>
    %326 = arith.addf %319, %325 : vector<16x64xf32>
    %c0_263 = arith.constant 0 : index
    %c8_264 = arith.constant 8 : index
    %c0_265 = arith.constant 0 : index
    %327 = vector.load %arg14[%c0_263, %c8_264, %c0_265] : memref<2x17x64xf32, #tpu.memory_space<vmem>>, vector<2x8x64xf32>
    %328 = vector.shape_cast %327 : vector<2x8x64xf32> to vector<16x64xf32>
    %329 = arith.truncf %328 : vector<16x64xf32> to vector<16x64xbf16>
    %c2_266 = arith.constant 2 : index
    %c1_267 = arith.constant 1 : index
    %c0_268 = arith.constant 0 : index
    %c0_269 = arith.constant 0 : index
    %330 = vector.load %arg5[%c2_266, %c1_267, %c0_268, %c0_269] : memref<4x3x64x64xbf16, #tpu.memory_space<vmem>>, vector<1x1x64x64xbf16>
    %331 = vector.shape_cast %330 : vector<1x1x64x64xbf16> to vector<64x64xbf16>
    %cst_270 = arith.constant dense<0.000000e+00> : vector<16x64xf32>
    %332 = tpu.matmul %329, %331, %cst_270 {dimension_numbers = #tpu.dot_dimension_numbers<[1], [0], [0], [1], [0, 0, 1, 1], [], []>} : vector<16x64xbf16>, vector<64x64xbf16>, vector<16x64xf32> -> vector<16x64xf32>
    %333 = arith.addf %326, %332 : vector<16x64xf32>
    %c0_271 = arith.constant 0 : index
    %c9_272 = arith.constant 9 : index
    %c0_273 = arith.constant 0 : index
    %334 = vector.load %arg14[%c0_271, %c9_272, %c0_273] : memref<2x17x64xf32, #tpu.memory_space<vmem>>, vector<2x8x64xf32>
    %335 = vector.shape_cast %334 : vector<2x8x64xf32> to vector<16x64xf32>
    %336 = arith.truncf %335 : vector<16x64xf32> to vector<16x64xbf16>
    %c2_274 = arith.constant 2 : index
    %c2_275 = arith.constant 2 : index
    %c0_276 = arith.constant 0 : index
    %c0_277 = arith.constant 0 : index
    %337 = vector.load %arg5[%c2_274, %c2_275, %c0_276, %c0_277] : memref<4x3x64x64xbf16, #tpu.memory_space<vmem>>, vector<1x1x64x64xbf16>
    %338 = vector.shape_cast %337 : vector<1x1x64x64xbf16> to vector<64x64xbf16>
    %cst_278 = arith.constant dense<0.000000e+00> : vector<16x64xf32>
    %339 = tpu.matmul %336, %338, %cst_278 {dimension_numbers = #tpu.dot_dimension_numbers<[1], [0], [0], [1], [0, 0, 1, 1], [], []>} : vector<16x64xbf16>, vector<64x64xbf16>, vector<16x64xf32> -> vector<16x64xf32>
    %340 = arith.addf %333, %339 : vector<16x64xf32>
    %c2_279 = arith.constant 2 : index
    %c0_280 = arith.constant 0 : index
    %c0_281 = arith.constant 0 : index
    %341 = vector.load %arg6[%c2_279, %c0_280, %c0_281] : memref<4x1x64xf32, #tpu.memory_space<vmem>>, vector<1x1x64xf32>
    %342 = vector.shape_cast %341 : vector<1x1x64xf32> to vector<1x64xf32>
    %343 = vector.broadcast %342 : vector<1x64xf32> to vector<16x64xf32>
    %344 = arith.addf %340, %343 : vector<16x64xf32>
    %cst_282 = arith.constant 0.000000e+00 : f32
    %345 = vector.broadcast %cst_282 : f32 to vector<16x64xf32>
    %346 = arith.maximumf %344, %345 : vector<16x64xf32>
    %347 = vector.shape_cast %346 : vector<16x64xf32> to vector<2x8x64xf32>
    %cst_283 = arith.constant 0.000000e+00 : f32
    %348 = vector.broadcast %cst_283 : f32 to vector<2x64xf32>
    %349 = vector.extract_strided_slice %347 {offsets = [0, 0, 0], sizes = [2, 1, 64], strides = [1, 1, 1]} : vector<2x8x64xf32> to vector<2x1x64xf32>
    %350 = vector.shape_cast %349 : vector<2x1x64xf32> to vector<2x64xf32>
    %351 = arith.truncf %350 : vector<2x64xf32> to vector<2x64xbf16>
    %c2_284 = arith.constant 2 : index
    %c0_285 = arith.constant 0 : index
    %c0_286 = arith.constant 0 : index
    %c0_287 = arith.constant 0 : index
    %352 = vector.load %arg7[%c2_284, %c0_285, %c0_286, %c0_287] : memref<4x8x64x64xbf16, #tpu.memory_space<vmem>>, vector<1x1x64x64xbf16>
    %353 = vector.shape_cast %352 : vector<1x1x64x64xbf16> to vector<64x64xbf16>
    %cst_288 = arith.constant dense<0.000000e+00> : vector<2x64xf32>
    %354 = tpu.matmul %351, %353, %cst_288 {dimension_numbers = #tpu.dot_dimension_numbers<[1], [0], [0], [1], [0, 0, 1, 1], [], []>} : vector<2x64xbf16>, vector<64x64xbf16>, vector<2x64xf32> -> vector<2x64xf32>
    %355 = arith.addf %348, %354 : vector<2x64xf32>
    %356 = vector.extract_strided_slice %347 {offsets = [0, 1, 0], sizes = [2, 1, 64], strides = [1, 1, 1]} : vector<2x8x64xf32> to vector<2x1x64xf32>
    %357 = vector.shape_cast %356 : vector<2x1x64xf32> to vector<2x64xf32>
    %358 = arith.truncf %357 : vector<2x64xf32> to vector<2x64xbf16>
    %c2_289 = arith.constant 2 : index
    %c1_290 = arith.constant 1 : index
    %c0_291 = arith.constant 0 : index
    %c0_292 = arith.constant 0 : index
    %359 = vector.load %arg7[%c2_289, %c1_290, %c0_291, %c0_292] : memref<4x8x64x64xbf16, #tpu.memory_space<vmem>>, vector<1x1x64x64xbf16>
    %360 = vector.shape_cast %359 : vector<1x1x64x64xbf16> to vector<64x64xbf16>
    %cst_293 = arith.constant dense<0.000000e+00> : vector<2x64xf32>
    %361 = tpu.matmul %358, %360, %cst_293 {dimension_numbers = #tpu.dot_dimension_numbers<[1], [0], [0], [1], [0, 0, 1, 1], [], []>} : vector<2x64xbf16>, vector<64x64xbf16>, vector<2x64xf32> -> vector<2x64xf32>
    %362 = arith.addf %355, %361 : vector<2x64xf32>
    %363 = vector.extract_strided_slice %347 {offsets = [0, 2, 0], sizes = [2, 1, 64], strides = [1, 1, 1]} : vector<2x8x64xf32> to vector<2x1x64xf32>
    %364 = vector.shape_cast %363 : vector<2x1x64xf32> to vector<2x64xf32>
    %365 = arith.truncf %364 : vector<2x64xf32> to vector<2x64xbf16>
    %c2_294 = arith.constant 2 : index
    %c2_295 = arith.constant 2 : index
    %c0_296 = arith.constant 0 : index
    %c0_297 = arith.constant 0 : index
    %366 = vector.load %arg7[%c2_294, %c2_295, %c0_296, %c0_297] : memref<4x8x64x64xbf16, #tpu.memory_space<vmem>>, vector<1x1x64x64xbf16>
    %367 = vector.shape_cast %366 : vector<1x1x64x64xbf16> to vector<64x64xbf16>
    %cst_298 = arith.constant dense<0.000000e+00> : vector<2x64xf32>
    %368 = tpu.matmul %365, %367, %cst_298 {dimension_numbers = #tpu.dot_dimension_numbers<[1], [0], [0], [1], [0, 0, 1, 1], [], []>} : vector<2x64xbf16>, vector<64x64xbf16>, vector<2x64xf32> -> vector<2x64xf32>
    %369 = arith.addf %362, %368 : vector<2x64xf32>
    %370 = vector.extract_strided_slice %347 {offsets = [0, 3, 0], sizes = [2, 1, 64], strides = [1, 1, 1]} : vector<2x8x64xf32> to vector<2x1x64xf32>
    %371 = vector.shape_cast %370 : vector<2x1x64xf32> to vector<2x64xf32>
    %372 = arith.truncf %371 : vector<2x64xf32> to vector<2x64xbf16>
    %c2_299 = arith.constant 2 : index
    %c3_300 = arith.constant 3 : index
    %c0_301 = arith.constant 0 : index
    %c0_302 = arith.constant 0 : index
    %373 = vector.load %arg7[%c2_299, %c3_300, %c0_301, %c0_302] : memref<4x8x64x64xbf16, #tpu.memory_space<vmem>>, vector<1x1x64x64xbf16>
    %374 = vector.shape_cast %373 : vector<1x1x64x64xbf16> to vector<64x64xbf16>
    %cst_303 = arith.constant dense<0.000000e+00> : vector<2x64xf32>
    %375 = tpu.matmul %372, %374, %cst_303 {dimension_numbers = #tpu.dot_dimension_numbers<[1], [0], [0], [1], [0, 0, 1, 1], [], []>} : vector<2x64xbf16>, vector<64x64xbf16>, vector<2x64xf32> -> vector<2x64xf32>
    %376 = arith.addf %369, %375 : vector<2x64xf32>
    %377 = vector.extract_strided_slice %347 {offsets = [0, 4, 0], sizes = [2, 1, 64], strides = [1, 1, 1]} : vector<2x8x64xf32> to vector<2x1x64xf32>
    %378 = vector.shape_cast %377 : vector<2x1x64xf32> to vector<2x64xf32>
    %379 = arith.truncf %378 : vector<2x64xf32> to vector<2x64xbf16>
    %c2_304 = arith.constant 2 : index
    %c4_305 = arith.constant 4 : index
    %c0_306 = arith.constant 0 : index
    %c0_307 = arith.constant 0 : index
    %380 = vector.load %arg7[%c2_304, %c4_305, %c0_306, %c0_307] : memref<4x8x64x64xbf16, #tpu.memory_space<vmem>>, vector<1x1x64x64xbf16>
    %381 = vector.shape_cast %380 : vector<1x1x64x64xbf16> to vector<64x64xbf16>
    %cst_308 = arith.constant dense<0.000000e+00> : vector<2x64xf32>
    %382 = tpu.matmul %379, %381, %cst_308 {dimension_numbers = #tpu.dot_dimension_numbers<[1], [0], [0], [1], [0, 0, 1, 1], [], []>} : vector<2x64xbf16>, vector<64x64xbf16>, vector<2x64xf32> -> vector<2x64xf32>
    %383 = arith.addf %376, %382 : vector<2x64xf32>
    %384 = vector.extract_strided_slice %347 {offsets = [0, 5, 0], sizes = [2, 1, 64], strides = [1, 1, 1]} : vector<2x8x64xf32> to vector<2x1x64xf32>
    %385 = vector.shape_cast %384 : vector<2x1x64xf32> to vector<2x64xf32>
    %386 = arith.truncf %385 : vector<2x64xf32> to vector<2x64xbf16>
    %c2_309 = arith.constant 2 : index
    %c5_310 = arith.constant 5 : index
    %c0_311 = arith.constant 0 : index
    %c0_312 = arith.constant 0 : index
    %387 = vector.load %arg7[%c2_309, %c5_310, %c0_311, %c0_312] : memref<4x8x64x64xbf16, #tpu.memory_space<vmem>>, vector<1x1x64x64xbf16>
    %388 = vector.shape_cast %387 : vector<1x1x64x64xbf16> to vector<64x64xbf16>
    %cst_313 = arith.constant dense<0.000000e+00> : vector<2x64xf32>
    %389 = tpu.matmul %386, %388, %cst_313 {dimension_numbers = #tpu.dot_dimension_numbers<[1], [0], [0], [1], [0, 0, 1, 1], [], []>} : vector<2x64xbf16>, vector<64x64xbf16>, vector<2x64xf32> -> vector<2x64xf32>
    %390 = arith.addf %383, %389 : vector<2x64xf32>
    %391 = vector.extract_strided_slice %347 {offsets = [0, 6, 0], sizes = [2, 1, 64], strides = [1, 1, 1]} : vector<2x8x64xf32> to vector<2x1x64xf32>
    %392 = vector.shape_cast %391 : vector<2x1x64xf32> to vector<2x64xf32>
    %393 = arith.truncf %392 : vector<2x64xf32> to vector<2x64xbf16>
    %c2_314 = arith.constant 2 : index
    %c6_315 = arith.constant 6 : index
    %c0_316 = arith.constant 0 : index
    %c0_317 = arith.constant 0 : index
    %394 = vector.load %arg7[%c2_314, %c6_315, %c0_316, %c0_317] : memref<4x8x64x64xbf16, #tpu.memory_space<vmem>>, vector<1x1x64x64xbf16>
    %395 = vector.shape_cast %394 : vector<1x1x64x64xbf16> to vector<64x64xbf16>
    %cst_318 = arith.constant dense<0.000000e+00> : vector<2x64xf32>
    %396 = tpu.matmul %393, %395, %cst_318 {dimension_numbers = #tpu.dot_dimension_numbers<[1], [0], [0], [1], [0, 0, 1, 1], [], []>} : vector<2x64xbf16>, vector<64x64xbf16>, vector<2x64xf32> -> vector<2x64xf32>
    %397 = arith.addf %390, %396 : vector<2x64xf32>
    %398 = vector.extract_strided_slice %347 {offsets = [0, 7, 0], sizes = [2, 1, 64], strides = [1, 1, 1]} : vector<2x8x64xf32> to vector<2x1x64xf32>
    %399 = vector.shape_cast %398 : vector<2x1x64xf32> to vector<2x64xf32>
    %400 = arith.truncf %399 : vector<2x64xf32> to vector<2x64xbf16>
    %c2_319 = arith.constant 2 : index
    %c7_320 = arith.constant 7 : index
    %c0_321 = arith.constant 0 : index
    %c0_322 = arith.constant 0 : index
    %401 = vector.load %arg7[%c2_319, %c7_320, %c0_321, %c0_322] : memref<4x8x64x64xbf16, #tpu.memory_space<vmem>>, vector<1x1x64x64xbf16>
    %402 = vector.shape_cast %401 : vector<1x1x64x64xbf16> to vector<64x64xbf16>
    %cst_323 = arith.constant dense<0.000000e+00> : vector<2x64xf32>
    %403 = tpu.matmul %400, %402, %cst_323 {dimension_numbers = #tpu.dot_dimension_numbers<[1], [0], [0], [1], [0, 0, 1, 1], [], []>} : vector<2x64xbf16>, vector<64x64xbf16>, vector<2x64xf32> -> vector<2x64xf32>
    %404 = arith.addf %397, %403 : vector<2x64xf32>
    %c2_324 = arith.constant 2 : index
    %c0_325 = arith.constant 0 : index
    %c0_326 = arith.constant 0 : index
    %405 = vector.load %arg8[%c2_324, %c0_325, %c0_326] : memref<4x1x64xf32, #tpu.memory_space<vmem>>, vector<1x1x64xf32>
    %406 = vector.shape_cast %405 : vector<1x1x64xf32> to vector<1x64xf32>
    %407 = vector.broadcast %406 : vector<1x64xf32> to vector<2x64xf32>
    %408 = arith.addf %404, %407 : vector<2x64xf32>
    %cst_327 = arith.constant 0.000000e+00 : f32
    %409 = vector.broadcast %cst_327 : f32 to vector<2x64xf32>
    %410 = arith.maximumf %408, %409 : vector<2x64xf32>
    %411 = arith.truncf %410 : vector<2x64xf32> to vector<2x64xbf16>
    %c2_328 = arith.constant 2 : index
    %c0_329 = arith.constant 0 : index
    %c0_330 = arith.constant 0 : index
    %412 = vector.load %arg9[%c2_328, %c0_329, %c0_330] : memref<4x64x64xbf16, #tpu.memory_space<vmem>>, vector<1x64x64xbf16>
    %413 = vector.shape_cast %412 : vector<1x64x64xbf16> to vector<64x64xbf16>
    %cst_331 = arith.constant dense<0.000000e+00> : vector<2x64xf32>
    %414 = tpu.matmul %411, %413, %cst_331 {dimension_numbers = #tpu.dot_dimension_numbers<[1], [0], [0], [1], [0, 0, 1, 1], [], []>} : vector<2x64xbf16>, vector<64x64xbf16>, vector<2x64xf32> -> vector<2x64xf32>
    %c2_332 = arith.constant 2 : index
    %c0_333 = arith.constant 0 : index
    %c0_334 = arith.constant 0 : index
    %415 = vector.load %arg10[%c2_332, %c0_333, %c0_334] : memref<4x1x64xf32, #tpu.memory_space<vmem>>, vector<1x1x64xf32>
    %416 = vector.shape_cast %415 : vector<1x1x64xf32> to vector<1x64xf32>
    %417 = vector.broadcast %416 : vector<1x64xf32> to vector<2x64xf32>
    %418 = arith.addf %414, %417 : vector<2x64xf32>
    %cst_335 = arith.constant 0.000000e+00 : f32
    %419 = vector.broadcast %cst_335 : f32 to vector<2x64xf32>
    %420 = arith.maximumf %418, %419 : vector<2x64xf32>
    %421 = arith.truncf %420 : vector<2x64xf32> to vector<2x64xbf16>
    %c2_336 = arith.constant 2 : index
    %c0_337 = arith.constant 0 : index
    %c0_338 = arith.constant 0 : index
    %422 = vector.load %arg11[%c2_336, %c0_337, %c0_338] : memref<4x64x2xbf16, #tpu.memory_space<vmem>>, vector<1x64x2xbf16>
    %423 = vector.shape_cast %422 : vector<1x64x2xbf16> to vector<64x2xbf16>
    %cst_339 = arith.constant dense<0.000000e+00> : vector<2x2xf32>
    %424 = tpu.matmul %421, %423, %cst_339 {dimension_numbers = #tpu.dot_dimension_numbers<[1], [0], [0], [1], [0, 0, 1, 1], [], []>} : vector<2x64xbf16>, vector<64x2xbf16>, vector<2x2xf32> -> vector<2x2xf32>
    %c2_340 = arith.constant 2 : index
    %c0_341 = arith.constant 0 : index
    %c0_342 = arith.constant 0 : index
    %425 = vector.load %arg12[%c2_340, %c0_341, %c0_342] : memref<4x1x2xf32, #tpu.memory_space<vmem>>, vector<1x1x2xf32>
    %426 = vector.shape_cast %425 : vector<1x1x2xf32> to vector<1x2xf32>
    %427 = vector.broadcast %426 : vector<1x2xf32> to vector<2x2xf32>
    %428 = arith.addf %424, %427 : vector<2x2xf32>
    %c3_343 = arith.constant 3 : index
    %c0_344 = arith.constant 0 : index
    %c0_345 = arith.constant 0 : index
    %c0_346 = arith.constant 0 : index
    %429 = vector.load %arg2[%c3_343, %c0_344, %c0_345, %c0_346] : memref<4x2x10x64xf32, #tpu.memory_space<vmem>>, vector<1x2x10x64xf32>
    %430 = vector.shape_cast %429 : vector<1x2x10x64xf32> to vector<2x10x64xf32>
    %cst_347 = arith.constant 0.000000e+00 : f32
    %431 = vector.broadcast %cst_347 : f32 to vector<16x64xf32>
    %432 = vector.extract_strided_slice %430 {offsets = [0, 0, 0], sizes = [2, 8, 64], strides = [1, 1, 1]} : vector<2x10x64xf32> to vector<2x8x64xf32>
    %433 = vector.shape_cast %432 : vector<2x8x64xf32> to vector<16x64xf32>
    %434 = arith.truncf %433 : vector<16x64xf32> to vector<16x64xbf16>
    %c3_348 = arith.constant 3 : index
    %c0_349 = arith.constant 0 : index
    %c0_350 = arith.constant 0 : index
    %c0_351 = arith.constant 0 : index
    %435 = vector.load %arg3[%c3_348, %c0_349, %c0_350, %c0_351] : memref<4x3x64x64xbf16, #tpu.memory_space<vmem>>, vector<1x1x64x64xbf16>
    %436 = vector.shape_cast %435 : vector<1x1x64x64xbf16> to vector<64x64xbf16>
    %cst_352 = arith.constant dense<0.000000e+00> : vector<16x64xf32>
    %437 = tpu.matmul %434, %436, %cst_352 {dimension_numbers = #tpu.dot_dimension_numbers<[1], [0], [0], [1], [0, 0, 1, 1], [], []>} : vector<16x64xbf16>, vector<64x64xbf16>, vector<16x64xf32> -> vector<16x64xf32>
    %438 = arith.addf %431, %437 : vector<16x64xf32>
    %439 = vector.extract_strided_slice %430 {offsets = [0, 1, 0], sizes = [2, 8, 64], strides = [1, 1, 1]} : vector<2x10x64xf32> to vector<2x8x64xf32>
    %440 = vector.shape_cast %439 : vector<2x8x64xf32> to vector<16x64xf32>
    %441 = arith.truncf %440 : vector<16x64xf32> to vector<16x64xbf16>
    %c3_353 = arith.constant 3 : index
    %c1_354 = arith.constant 1 : index
    %c0_355 = arith.constant 0 : index
    %c0_356 = arith.constant 0 : index
    %442 = vector.load %arg3[%c3_353, %c1_354, %c0_355, %c0_356] : memref<4x3x64x64xbf16, #tpu.memory_space<vmem>>, vector<1x1x64x64xbf16>
    %443 = vector.shape_cast %442 : vector<1x1x64x64xbf16> to vector<64x64xbf16>
    %cst_357 = arith.constant dense<0.000000e+00> : vector<16x64xf32>
    %444 = tpu.matmul %441, %443, %cst_357 {dimension_numbers = #tpu.dot_dimension_numbers<[1], [0], [0], [1], [0, 0, 1, 1], [], []>} : vector<16x64xbf16>, vector<64x64xbf16>, vector<16x64xf32> -> vector<16x64xf32>
    %445 = arith.addf %438, %444 : vector<16x64xf32>
    %446 = vector.extract_strided_slice %430 {offsets = [0, 2, 0], sizes = [2, 8, 64], strides = [1, 1, 1]} : vector<2x10x64xf32> to vector<2x8x64xf32>
    %447 = vector.shape_cast %446 : vector<2x8x64xf32> to vector<16x64xf32>
    %448 = arith.truncf %447 : vector<16x64xf32> to vector<16x64xbf16>
    %c3_358 = arith.constant 3 : index
    %c2_359 = arith.constant 2 : index
    %c0_360 = arith.constant 0 : index
    %c0_361 = arith.constant 0 : index
    %449 = vector.load %arg3[%c3_358, %c2_359, %c0_360, %c0_361] : memref<4x3x64x64xbf16, #tpu.memory_space<vmem>>, vector<1x1x64x64xbf16>
    %450 = vector.shape_cast %449 : vector<1x1x64x64xbf16> to vector<64x64xbf16>
    %cst_362 = arith.constant dense<0.000000e+00> : vector<16x64xf32>
    %451 = tpu.matmul %448, %450, %cst_362 {dimension_numbers = #tpu.dot_dimension_numbers<[1], [0], [0], [1], [0, 0, 1, 1], [], []>} : vector<16x64xbf16>, vector<64x64xbf16>, vector<16x64xf32> -> vector<16x64xf32>
    %452 = arith.addf %445, %451 : vector<16x64xf32>
    %c3_363 = arith.constant 3 : index
    %c0_364 = arith.constant 0 : index
    %c0_365 = arith.constant 0 : index
    %453 = vector.load %arg4[%c3_363, %c0_364, %c0_365] : memref<4x1x64xf32, #tpu.memory_space<vmem>>, vector<1x1x64xf32>
    %454 = vector.shape_cast %453 : vector<1x1x64xf32> to vector<1x64xf32>
    %455 = vector.broadcast %454 : vector<1x64xf32> to vector<16x64xf32>
    %456 = arith.addf %452, %455 : vector<16x64xf32>
    %cst_366 = arith.constant 0.000000e+00 : f32
    %457 = vector.broadcast %cst_366 : f32 to vector<16x64xf32>
    %458 = arith.maximumf %456, %457 : vector<16x64xf32>
    %459 = vector.shape_cast %458 : vector<16x64xf32> to vector<2x8x64xf32>
    %c0_367 = arith.constant 0 : index
    %c8_368 = arith.constant 8 : index
    %c0_369 = arith.constant 0 : index
    %460 = vector.load %arg14[%c0_367, %c8_368, %c0_369] : memref<2x17x64xf32, #tpu.memory_space<vmem>>, vector<2x8x64xf32>
    tpu.vector_store %arg14[%c0_367, %c8_368, %c0_369], %459 {strides = array<i32>} : memref<2x17x64xf32, #tpu.memory_space<vmem>>, vector<2x8x64xf32>,
    %cst_370 = arith.constant 0.000000e+00 : f32
    %461 = vector.broadcast %cst_370 : f32 to vector<16x64xf32>
    %c0_371 = arith.constant 0 : index
    %c7_372 = arith.constant 7 : index
    %c0_373 = arith.constant 0 : index
    %462 = vector.load %arg14[%c0_371, %c7_372, %c0_373] : memref<2x17x64xf32, #tpu.memory_space<vmem>>, vector<2x8x64xf32>
    %463 = vector.shape_cast %462 : vector<2x8x64xf32> to vector<16x64xf32>
    %464 = arith.truncf %463 : vector<16x64xf32> to vector<16x64xbf16>
    %c3_374 = arith.constant 3 : index
    %c0_375 = arith.constant 0 : index
    %c0_376 = arith.constant 0 : index
    %c0_377 = arith.constant 0 : index
    %465 = vector.load %arg5[%c3_374, %c0_375, %c0_376, %c0_377] : memref<4x3x64x64xbf16, #tpu.memory_space<vmem>>, vector<1x1x64x64xbf16>
    %466 = vector.shape_cast %465 : vector<1x1x64x64xbf16> to vector<64x64xbf16>
    %cst_378 = arith.constant dense<0.000000e+00> : vector<16x64xf32>
    %467 = tpu.matmul %464, %466, %cst_378 {dimension_numbers = #tpu.dot_dimension_numbers<[1], [0], [0], [1], [0, 0, 1, 1], [], []>} : vector<16x64xbf16>, vector<64x64xbf16>, vector<16x64xf32> -> vector<16x64xf32>
    %468 = arith.addf %461, %467 : vector<16x64xf32>
    %c0_379 = arith.constant 0 : index
    %c8_380 = arith.constant 8 : index
    %c0_381 = arith.constant 0 : index
    %469 = vector.load %arg14[%c0_379, %c8_380, %c0_381] : memref<2x17x64xf32, #tpu.memory_space<vmem>>, vector<2x8x64xf32>
    %470 = vector.shape_cast %469 : vector<2x8x64xf32> to vector<16x64xf32>
    %471 = arith.truncf %470 : vector<16x64xf32> to vector<16x64xbf16>
    %c3_382 = arith.constant 3 : index
    %c1_383 = arith.constant 1 : index
    %c0_384 = arith.constant 0 : index
    %c0_385 = arith.constant 0 : index
    %472 = vector.load %arg5[%c3_382, %c1_383, %c0_384, %c0_385] : memref<4x3x64x64xbf16, #tpu.memory_space<vmem>>, vector<1x1x64x64xbf16>
    %473 = vector.shape_cast %472 : vector<1x1x64x64xbf16> to vector<64x64xbf16>
    %cst_386 = arith.constant dense<0.000000e+00> : vector<16x64xf32>
    %474 = tpu.matmul %471, %473, %cst_386 {dimension_numbers = #tpu.dot_dimension_numbers<[1], [0], [0], [1], [0, 0, 1, 1], [], []>} : vector<16x64xbf16>, vector<64x64xbf16>, vector<16x64xf32> -> vector<16x64xf32>
    %475 = arith.addf %468, %474 : vector<16x64xf32>
    %c0_387 = arith.constant 0 : index
    %c9_388 = arith.constant 9 : index
    %c0_389 = arith.constant 0 : index
    %476 = vector.load %arg14[%c0_387, %c9_388, %c0_389] : memref<2x17x64xf32, #tpu.memory_space<vmem>>, vector<2x8x64xf32>
    %477 = vector.shape_cast %476 : vector<2x8x64xf32> to vector<16x64xf32>
    %478 = arith.truncf %477 : vector<16x64xf32> to vector<16x64xbf16>
    %c3_390 = arith.constant 3 : index
    %c2_391 = arith.constant 2 : index
    %c0_392 = arith.constant 0 : index
    %c0_393 = arith.constant 0 : index
    %479 = vector.load %arg5[%c3_390, %c2_391, %c0_392, %c0_393] : memref<4x3x64x64xbf16, #tpu.memory_space<vmem>>, vector<1x1x64x64xbf16>
    %480 = vector.shape_cast %479 : vector<1x1x64x64xbf16> to vector<64x64xbf16>
    %cst_394 = arith.constant dense<0.000000e+00> : vector<16x64xf32>
    %481 = tpu.matmul %478, %480, %cst_394 {dimension_numbers = #tpu.dot_dimension_numbers<[1], [0], [0], [1], [0, 0, 1, 1], [], []>} : vector<16x64xbf16>, vector<64x64xbf16>, vector<16x64xf32> -> vector<16x64xf32>
    %482 = arith.addf %475, %481 : vector<16x64xf32>
    %c3_395 = arith.constant 3 : index
    %c0_396 = arith.constant 0 : index
    %c0_397 = arith.constant 0 : index
    %483 = vector.load %arg6[%c3_395, %c0_396, %c0_397] : memref<4x1x64xf32, #tpu.memory_space<vmem>>, vector<1x1x64xf32>
    %484 = vector.shape_cast %483 : vector<1x1x64xf32> to vector<1x64xf32>
    %485 = vector.broadcast %484 : vector<1x64xf32> to vector<16x64xf32>
    %486 = arith.addf %482, %485 : vector<16x64xf32>
    %cst_398 = arith.constant 0.000000e+00 : f32
    %487 = vector.broadcast %cst_398 : f32 to vector<16x64xf32>
    %488 = arith.maximumf %486, %487 : vector<16x64xf32>
    %489 = vector.shape_cast %488 : vector<16x64xf32> to vector<2x8x64xf32>
    %cst_399 = arith.constant 0.000000e+00 : f32
    %490 = vector.broadcast %cst_399 : f32 to vector<2x64xf32>
    %491 = vector.extract_strided_slice %489 {offsets = [0, 0, 0], sizes = [2, 1, 64], strides = [1, 1, 1]} : vector<2x8x64xf32> to vector<2x1x64xf32>
    %492 = vector.shape_cast %491 : vector<2x1x64xf32> to vector<2x64xf32>
    %493 = arith.truncf %492 : vector<2x64xf32> to vector<2x64xbf16>
    %c3_400 = arith.constant 3 : index
    %c0_401 = arith.constant 0 : index
    %c0_402 = arith.constant 0 : index
    %c0_403 = arith.constant 0 : index
    %494 = vector.load %arg7[%c3_400, %c0_401, %c0_402, %c0_403] : memref<4x8x64x64xbf16, #tpu.memory_space<vmem>>, vector<1x1x64x64xbf16>
    %495 = vector.shape_cast %494 : vector<1x1x64x64xbf16> to vector<64x64xbf16>
    %cst_404 = arith.constant dense<0.000000e+00> : vector<2x64xf32>
    %496 = tpu.matmul %493, %495, %cst_404 {dimension_numbers = #tpu.dot_dimension_numbers<[1], [0], [0], [1], [0, 0, 1, 1], [], []>} : vector<2x64xbf16>, vector<64x64xbf16>, vector<2x64xf32> -> vector<2x64xf32>
    %497 = arith.addf %490, %496 : vector<2x64xf32>
    %498 = vector.extract_strided_slice %489 {offsets = [0, 1, 0], sizes = [2, 1, 64], strides = [1, 1, 1]} : vector<2x8x64xf32> to vector<2x1x64xf32>
    %499 = vector.shape_cast %498 : vector<2x1x64xf32> to vector<2x64xf32>
    %500 = arith.truncf %499 : vector<2x64xf32> to vector<2x64xbf16>
    %c3_405 = arith.constant 3 : index
    %c1_406 = arith.constant 1 : index
    %c0_407 = arith.constant 0 : index
    %c0_408 = arith.constant 0 : index
    %501 = vector.load %arg7[%c3_405, %c1_406, %c0_407, %c0_408] : memref<4x8x64x64xbf16, #tpu.memory_space<vmem>>, vector<1x1x64x64xbf16>
    %502 = vector.shape_cast %501 : vector<1x1x64x64xbf16> to vector<64x64xbf16>
    %cst_409 = arith.constant dense<0.000000e+00> : vector<2x64xf32>
    %503 = tpu.matmul %500, %502, %cst_409 {dimension_numbers = #tpu.dot_dimension_numbers<[1], [0], [0], [1], [0, 0, 1, 1], [], []>} : vector<2x64xbf16>, vector<64x64xbf16>, vector<2x64xf32> -> vector<2x64xf32>
    %504 = arith.addf %497, %503 : vector<2x64xf32>
    %505 = vector.extract_strided_slice %489 {offsets = [0, 2, 0], sizes = [2, 1, 64], strides = [1, 1, 1]} : vector<2x8x64xf32> to vector<2x1x64xf32>
    %506 = vector.shape_cast %505 : vector<2x1x64xf32> to vector<2x64xf32>
    %507 = arith.truncf %506 : vector<2x64xf32> to vector<2x64xbf16>
    %c3_410 = arith.constant 3 : index
    %c2_411 = arith.constant 2 : index
    %c0_412 = arith.constant 0 : index
    %c0_413 = arith.constant 0 : index
    %508 = vector.load %arg7[%c3_410, %c2_411, %c0_412, %c0_413] : memref<4x8x64x64xbf16, #tpu.memory_space<vmem>>, vector<1x1x64x64xbf16>
    %509 = vector.shape_cast %508 : vector<1x1x64x64xbf16> to vector<64x64xbf16>
    %cst_414 = arith.constant dense<0.000000e+00> : vector<2x64xf32>
    %510 = tpu.matmul %507, %509, %cst_414 {dimension_numbers = #tpu.dot_dimension_numbers<[1], [0], [0], [1], [0, 0, 1, 1], [], []>} : vector<2x64xbf16>, vector<64x64xbf16>, vector<2x64xf32> -> vector<2x64xf32>
    %511 = arith.addf %504, %510 : vector<2x64xf32>
    %512 = vector.extract_strided_slice %489 {offsets = [0, 3, 0], sizes = [2, 1, 64], strides = [1, 1, 1]} : vector<2x8x64xf32> to vector<2x1x64xf32>
    %513 = vector.shape_cast %512 : vector<2x1x64xf32> to vector<2x64xf32>
    %514 = arith.truncf %513 : vector<2x64xf32> to vector<2x64xbf16>
    %c3_415 = arith.constant 3 : index
    %c3_416 = arith.constant 3 : index
    %c0_417 = arith.constant 0 : index
    %c0_418 = arith.constant 0 : index
    %515 = vector.load %arg7[%c3_415, %c3_416, %c0_417, %c0_418] : memref<4x8x64x64xbf16, #tpu.memory_space<vmem>>, vector<1x1x64x64xbf16>
    %516 = vector.shape_cast %515 : vector<1x1x64x64xbf16> to vector<64x64xbf16>
    %cst_419 = arith.constant dense<0.000000e+00> : vector<2x64xf32>
    %517 = tpu.matmul %514, %516, %cst_419 {dimension_numbers = #tpu.dot_dimension_numbers<[1], [0], [0], [1], [0, 0, 1, 1], [], []>} : vector<2x64xbf16>, vector<64x64xbf16>, vector<2x64xf32> -> vector<2x64xf32>
    %518 = arith.addf %511, %517 : vector<2x64xf32>
    %519 = vector.extract_strided_slice %489 {offsets = [0, 4, 0], sizes = [2, 1, 64], strides = [1, 1, 1]} : vector<2x8x64xf32> to vector<2x1x64xf32>
    %520 = vector.shape_cast %519 : vector<2x1x64xf32> to vector<2x64xf32>
    %521 = arith.truncf %520 : vector<2x64xf32> to vector<2x64xbf16>
    %c3_420 = arith.constant 3 : index
    %c4_421 = arith.constant 4 : index
    %c0_422 = arith.constant 0 : index
    %c0_423 = arith.constant 0 : index
    %522 = vector.load %arg7[%c3_420, %c4_421, %c0_422, %c0_423] : memref<4x8x64x64xbf16, #tpu.memory_space<vmem>>, vector<1x1x64x64xbf16>
    %523 = vector.shape_cast %522 : vector<1x1x64x64xbf16> to vector<64x64xbf16>
    %cst_424 = arith.constant dense<0.000000e+00> : vector<2x64xf32>
    %524 = tpu.matmul %521, %523, %cst_424 {dimension_numbers = #tpu.dot_dimension_numbers<[1], [0], [0], [1], [0, 0, 1, 1], [], []>} : vector<2x64xbf16>, vector<64x64xbf16>, vector<2x64xf32> -> vector<2x64xf32>
    %525 = arith.addf %518, %524 : vector<2x64xf32>
    %526 = vector.extract_strided_slice %489 {offsets = [0, 5, 0], sizes = [2, 1, 64], strides = [1, 1, 1]} : vector<2x8x64xf32> to vector<2x1x64xf32>
    %527 = vector.shape_cast %526 : vector<2x1x64xf32> to vector<2x64xf32>
    %528 = arith.truncf %527 : vector<2x64xf32> to vector<2x64xbf16>
    %c3_425 = arith.constant 3 : index
    %c5_426 = arith.constant 5 : index
    %c0_427 = arith.constant 0 : index
    %c0_428 = arith.constant 0 : index
    %529 = vector.load %arg7[%c3_425, %c5_426, %c0_427, %c0_428] : memref<4x8x64x64xbf16, #tpu.memory_space<vmem>>, vector<1x1x64x64xbf16>
    %530 = vector.shape_cast %529 : vector<1x1x64x64xbf16> to vector<64x64xbf16>
    %cst_429 = arith.constant dense<0.000000e+00> : vector<2x64xf32>
    %531 = tpu.matmul %528, %530, %cst_429 {dimension_numbers = #tpu.dot_dimension_numbers<[1], [0], [0], [1], [0, 0, 1, 1], [], []>} : vector<2x64xbf16>, vector<64x64xbf16>, vector<2x64xf32> -> vector<2x64xf32>
    %532 = arith.addf %525, %531 : vector<2x64xf32>
    %533 = vector.extract_strided_slice %489 {offsets = [0, 6, 0], sizes = [2, 1, 64], strides = [1, 1, 1]} : vector<2x8x64xf32> to vector<2x1x64xf32>
    %534 = vector.shape_cast %533 : vector<2x1x64xf32> to vector<2x64xf32>
    %535 = arith.truncf %534 : vector<2x64xf32> to vector<2x64xbf16>
    %c3_430 = arith.constant 3 : index
    %c6_431 = arith.constant 6 : index
    %c0_432 = arith.constant 0 : index
    %c0_433 = arith.constant 0 : index
    %536 = vector.load %arg7[%c3_430, %c6_431, %c0_432, %c0_433] : memref<4x8x64x64xbf16, #tpu.memory_space<vmem>>, vector<1x1x64x64xbf16>
    %537 = vector.shape_cast %536 : vector<1x1x64x64xbf16> to vector<64x64xbf16>
    %cst_434 = arith.constant dense<0.000000e+00> : vector<2x64xf32>
    %538 = tpu.matmul %535, %537, %cst_434 {dimension_numbers = #tpu.dot_dimension_numbers<[1], [0], [0], [1], [0, 0, 1, 1], [], []>} : vector<2x64xbf16>, vector<64x64xbf16>, vector<2x64xf32> -> vector<2x64xf32>
    %539 = arith.addf %532, %538 : vector<2x64xf32>
    %540 = vector.extract_strided_slice %489 {offsets = [0, 7, 0], sizes = [2, 1, 64], strides = [1, 1, 1]} : vector<2x8x64xf32> to vector<2x1x64xf32>
    %541 = vector.shape_cast %540 : vector<2x1x64xf32> to vector<2x64xf32>
    %542 = arith.truncf %541 : vector<2x64xf32> to vector<2x64xbf16>
    %c3_435 = arith.constant 3 : index
    %c7_436 = arith.constant 7 : index
    %c0_437 = arith.constant 0 : index
    %c0_438 = arith.constant 0 : index
    %543 = vector.load %arg7[%c3_435, %c7_436, %c0_437, %c0_438] : memref<4x8x64x64xbf16, #tpu.memory_space<vmem>>, vector<1x1x64x64xbf16>
    %544 = vector.shape_cast %543 : vector<1x1x64x64xbf16> to vector<64x64xbf16>
    %cst_439 = arith.constant dense<0.000000e+00> : vector<2x64xf32>
    %545 = tpu.matmul %542, %544, %cst_439 {dimension_numbers = #tpu.dot_dimension_numbers<[1], [0], [0], [1], [0, 0, 1, 1], [], []>} : vector<2x64xbf16>, vector<64x64xbf16>, vector<2x64xf32> -> vector<2x64xf32>
    %546 = arith.addf %539, %545 : vector<2x64xf32>
    %c3_440 = arith.constant 3 : index
    %c0_441 = arith.constant 0 : index
    %c0_442 = arith.constant 0 : index
    %547 = vector.load %arg8[%c3_440, %c0_441, %c0_442] : memref<4x1x64xf32, #tpu.memory_space<vmem>>, vector<1x1x64xf32>
    %548 = vector.shape_cast %547 : vector<1x1x64xf32> to vector<1x64xf32>
    %549 = vector.broadcast %548 : vector<1x64xf32> to vector<2x64xf32>
    %550 = arith.addf %546, %549 : vector<2x64xf32>
    %cst_443 = arith.constant 0.000000e+00 : f32
    %551 = vector.broadcast %cst_443 : f32 to vector<2x64xf32>
    %552 = arith.maximumf %550, %551 : vector<2x64xf32>
    %553 = arith.truncf %552 : vector<2x64xf32> to vector<2x64xbf16>
    %c3_444 = arith.constant 3 : index
    %c0_445 = arith.constant 0 : index
    %c0_446 = arith.constant 0 : index
    %554 = vector.load %arg9[%c3_444, %c0_445, %c0_446] : memref<4x64x64xbf16, #tpu.memory_space<vmem>>, vector<1x64x64xbf16>
    %555 = vector.shape_cast %554 : vector<1x64x64xbf16> to vector<64x64xbf16>
    %cst_447 = arith.constant dense<0.000000e+00> : vector<2x64xf32>
    %556 = tpu.matmul %553, %555, %cst_447 {dimension_numbers = #tpu.dot_dimension_numbers<[1], [0], [0], [1], [0, 0, 1, 1], [], []>} : vector<2x64xbf16>, vector<64x64xbf16>, vector<2x64xf32> -> vector<2x64xf32>
    %c3_448 = arith.constant 3 : index
    %c0_449 = arith.constant 0 : index
    %c0_450 = arith.constant 0 : index
    %557 = vector.load %arg10[%c3_448, %c0_449, %c0_450] : memref<4x1x64xf32, #tpu.memory_space<vmem>>, vector<1x1x64xf32>
    %558 = vector.shape_cast %557 : vector<1x1x64xf32> to vector<1x64xf32>
    %559 = vector.broadcast %558 : vector<1x64xf32> to vector<2x64xf32>
    %560 = arith.addf %556, %559 : vector<2x64xf32>
    %cst_451 = arith.constant 0.000000e+00 : f32
    %561 = vector.broadcast %cst_451 : f32 to vector<2x64xf32>
    %562 = arith.maximumf %560, %561 : vector<2x64xf32>
    %563 = arith.truncf %562 : vector<2x64xf32> to vector<2x64xbf16>
    %c3_452 = arith.constant 3 : index
    %c0_453 = arith.constant 0 : index
    %c0_454 = arith.constant 0 : index
    %564 = vector.load %arg11[%c3_452, %c0_453, %c0_454] : memref<4x64x2xbf16, #tpu.memory_space<vmem>>, vector<1x64x2xbf16>
    %565 = vector.shape_cast %564 : vector<1x64x2xbf16> to vector<64x2xbf16>
    %cst_455 = arith.constant dense<0.000000e+00> : vector<2x2xf32>
    %566 = tpu.matmul %563, %565, %cst_455 {dimension_numbers = #tpu.dot_dimension_numbers<[1], [0], [0], [1], [0, 0, 1, 1], [], []>} : vector<2x64xbf16>, vector<64x2xbf16>, vector<2x2xf32> -> vector<2x2xf32>
    %c3_456 = arith.constant 3 : index
    %c0_457 = arith.constant 0 : index
    %c0_458 = arith.constant 0 : index
    %567 = vector.load %arg12[%c3_456, %c0_457, %c0_458] : memref<4x1x2xf32, #tpu.memory_space<vmem>>, vector<1x1x2xf32>
    %568 = vector.shape_cast %567 : vector<1x1x2xf32> to vector<1x2xf32>
    %569 = vector.broadcast %568 : vector<1x2xf32> to vector<2x2xf32>
    %570 = arith.addf %566, %569 : vector<2x2xf32>
    %571 = tpu.concatenate %144, %286, %428, %570 in 1 : vector<2x2xf32>, vector<2x2xf32>, vector<2x2xf32>, vector<2x2xf32> -> vector<2x8xf32>
    %c0_459 = arith.constant 0 : index
    %c0_460 = arith.constant 0 : index
    %c0_461 = arith.constant 0 : index
    %572 = vector.load %arg13[%c0_459, %c0_460, %c0_461] : memref<1x2x8xf32, #tpu.memory_space<vmem>>, vector<1x2x8xf32>
    %573 = vector.shape_cast %572 : vector<1x2x8xf32> to vector<2x8xf32>
    %574 = vector.shape_cast %571 : vector<2x8xf32> to vector<1x2x8xf32>
    tpu.vector_store %arg13[%c0_459, %c0_460, %c0_461], %574 {strides = array<i32>} : memref<1x2x8xf32, #tpu.memory_space<vmem>>, vector<1x2x8xf32>,
    return
  }
  func.func @transform_0(%arg0: i32, %arg1: i32) -> (i32, i32, i32, i32) {
    %c0_i32 = arith.constant 0 : i32
    %c0_i32_0 = arith.constant 0 : i32
    %c0_i32_1 = arith.constant 0 : i32
    return %arg0, %arg1, %c0_i32, %c0_i32_0 : i32, i32, i32, i32
  }
  func.func @transform_1(%arg0: i32, %arg1: i32) -> (i32, i32, i32, i32) {
    %c0_i32 = arith.constant 0 : i32
    %c0_i32_0 = arith.constant 0 : i32
    %c0_i32_1 = arith.constant 0 : i32
    %c0_i32_2 = arith.constant 0 : i32
    return %arg0, %c0_i32, %c0_i32_0, %c0_i32_1 : i32, i32, i32, i32
  }
  func.func @transform_2(%arg0: i32, %arg1: i32) -> (i32, i32, i32) {
    %c0_i32 = arith.constant 0 : i32
    %c0_i32_0 = arith.constant 0 : i32
    %c0_i32_1 = arith.constant 0 : i32
    return %arg0, %c0_i32, %c0_i32_0 : i32, i32, i32
  }
  func.func @transform_3(%arg0: i32, %arg1: i32) -> (i32, i32, i32, i32) {
    %c0_i32 = arith.constant 0 : i32
    %c0_i32_0 = arith.constant 0 : i32
    %c0_i32_1 = arith.constant 0 : i32
    %c0_i32_2 = arith.constant 0 : i32
    return %arg0, %c0_i32, %c0_i32_0, %c0_i32_1 : i32, i32, i32, i32
  }
  func.func @transform_4(%arg0: i32, %arg1: i32) -> (i32, i32, i32) {
    %c0_i32 = arith.constant 0 : i32
    %c0_i32_0 = arith.constant 0 : i32
    %c0_i32_1 = arith.constant 0 : i32
    return %arg0, %c0_i32, %c0_i32_0 : i32, i32, i32
  }
  func.func @transform_5(%arg0: i32, %arg1: i32) -> (i32, i32, i32, i32) {
    %c0_i32 = arith.constant 0 : i32
    %c0_i32_0 = arith.constant 0 : i32
    %c0_i32_1 = arith.constant 0 : i32
    %c0_i32_2 = arith.constant 0 : i32
    return %arg0, %c0_i32, %c0_i32_0, %c0_i32_1 : i32, i32, i32, i32
  }
  func.func @transform_6(%arg0: i32, %arg1: i32) -> (i32, i32, i32) {
    %c0_i32 = arith.constant 0 : i32
    %c0_i32_0 = arith.constant 0 : i32
    %c0_i32_1 = arith.constant 0 : i32
    return %arg0, %c0_i32, %c0_i32_0 : i32, i32, i32
  }
  func.func @transform_7(%arg0: i32, %arg1: i32) -> (i32, i32, i32) {
    %c0_i32 = arith.constant 0 : i32
    %c0_i32_0 = arith.constant 0 : i32
    %c0_i32_1 = arith.constant 0 : i32
    return %arg0, %c0_i32, %c0_i32_0 : i32, i32, i32
  }
  func.func @transform_8(%arg0: i32, %arg1: i32) -> (i32, i32, i32) {
    %c0_i32 = arith.constant 0 : i32
    %c0_i32_0 = arith.constant 0 : i32
    %c0_i32_1 = arith.constant 0 : i32
    return %arg0, %c0_i32, %c0_i32_0 : i32, i32, i32
  }
  func.func @transform_9(%arg0: i32, %arg1: i32) -> (i32, i32, i32) {
    %c0_i32 = arith.constant 0 : i32
    %c0_i32_0 = arith.constant 0 : i32
    %c0_i32_1 = arith.constant 0 : i32
    return %arg0, %c0_i32, %c0_i32_0 : i32, i32, i32
  }
  func.func @transform_10(%arg0: i32, %arg1: i32) -> (i32, i32, i32) {
    %c0_i32 = arith.constant 0 : i32
    %c0_i32_0 = arith.constant 0 : i32
    %c0_i32_1 = arith.constant 0 : i32
    return %arg0, %c0_i32, %c0_i32_0 : i32, i32, i32
  }
  func.func @transform_11(%arg0: i32, %arg1: i32) -> (i32, i32, i32) {
    %c0_i32 = arith.constant 0 : i32
    %c0_i32_0 = arith.constant 0 : i32
    return %arg0, %arg1, %c0_i32 : i32, i32, i32
  }
}

</mosaic_0001>

<bundles_post_ra>
// kernel: offset_head_forward.1
= control target key start
LH: loop header
LB: loop body
LE: loop exit
PB: predicated region body
PF: predicated region fallthrough
CT: control target
= control target key end

     0   :  { %vm61_vm0 = vcmask 1046528   ;;  %vm163_vm1 = vcmask 1045504   ;;  %vm104_vm2 = vcmask 523264   ;;  %vm39_vm3 = vcmask 516096   ;;  %s5581_s23 = smov 2   ;;  %s5583_s25 = smov 6   ;;  %s6646_s1 = inlined_call_operand.vmem [shape: bf16[4,3,64,64], index: 1, kind: input, shape index: {}]   ;;  %s6647_s0 = inlined_call_operand.vmem [shape: f32[4,2,10,64], index: 0, kind: input, shape index: {}]   ;;  %s6648_s2 = inlined_call_operand.vmem [shape: f32[4,1,64], index: 2, kind: input, shape index: {}]   ;;  %s6649_s3 = inlined_call_operand.vmem [shape: bf16[4,3,64,64], index: 3, kind: input, shape index: {}]   ;;  %s6650_s4 = inlined_call_operand.vmem [shape: f32[4,1,64], index: 4, kind: input, shape index: {}]   ;;  %s6651_s5 = inlined_call_operand.vmem [shape: bf16[4,8,64,64], index: 5, kind: input, shape index: {}]   ;;  %s6652_s6 = inlined_call_operand.vmem [shape: f32[4,1,64], index: 6, kind: input, shape index: {}]   ;;  %s6653_s8 = inlined_call_operand.vmem [shape: f32[4,1,64], index: 8, kind: input, shape index: {}]   ;;  %s6654_s7 = inlined_call_operand.vmem [shape: bf16[4,64,64], index: 7, kind: input, shape index: {}]   ;;  %s6655_s9 = inlined_call_operand.vmem [shape: bf16[4,64,2], index: 9, kind: input, shape index: {}]   ;;  %s6656_s10 = inlined_call_operand.vmem [shape: f32[4,1,2], index: 10, kind: input, shape index: {}]   ;;  %s6657_s11 = inlined_call_operand.vmem [shape: f32[1,2,8], index: 11, kind: output, shape index: {}]  }
   0x1   :  { %v5307_v0 = vld [vmem:[%s6646_s1 + $0x38] sm:$0xff]  ;;  %v5306_v3 = vld [vmem:[%s6646_s1 + $0x30] sm:$0xff]  ;;  %v44_v6 = vld [vmem:[%s6647_s0] sm:$0xff]  ;;  %v5580_v31 = vmov 0.0   ;;  %vm427_vm4 = vcmask 1041409   ;;  %vm3701_vm5 = vcmask 15360  }
   0x2   :  { %v5303_v1 = vld [vmem:[%s6646_s1 + $0x18] sm:$0xff]  ;;  %112 = vmatpush.bf16.msra.mxu0 %v5307_v0  ;;  %v5302_v4 = vld [vmem:[%s6646_s1 + $0x10] sm:$0xff]  ;;  %v45_v7 = vld [vmem:[%s6647_s0 + $0x8] sm:$0x3]  ;;  %v62_v12 = vrot.slane %v44_v6, 1  ;;  %v164_v17 = vrot.slane %v44_v6, 2 }
   0x3   :  { %v5311_v2 = vld [vmem:[%s6646_s1 + $0x58] sm:$0xff]  ;;  %153 = vmatpush.bf16.msra.mxu1 %v5303_v1  ;;  %v5310_v5 = vld [vmem:[%s6646_s1 + $0x50] sm:$0xff]  ;;  %v5305_v10 = vld [vmem:[%s6646_s1 + $0x28] sm:$0xff]  ;;  %v63_v13 = vrot.slane %v45_v7, 1  ;;  %v165_v18 = vrot.slane %v45_v7, 2  ;;  %vm3703_vm6 = vcmask 31744  }
   0x4   :  { %213 = vmatpush.bf16.msra.mxu2 %v5311_v2  ;;  %v46_v8 = vld [vmem:[%s6647_s0 + $0x10] sm:$0xff]  ;;  %v47_v9 = vld [vmem:[%s6647_s0 + $0x18] sm:$0x3]  ;;  %v5301_v11 = vld [vmem:[%s6646_s1 + $0x8] sm:$0xff]  ;;  %40 = vst.msk [vmem:[#allocation2 + $0x7] sm:$0x1] %vm39_vm3, %v5580_v31 }
   0x5   :  { %v65_v14 = vrot.slane %v46_v8, 1  ;;  %v66_v15 = vrot.slane %v47_v9, 1  ;;  %v5309_v16 = vld [vmem:[%s6646_s1 + $0x48] sm:$0xff]  ;;  %v167_v19 = vrot.slane %v46_v8, 2  ;;  %v168_v20 = vrot.slane %v47_v9, 2  ;;  %v5304_v21 = vld [vmem:[%s6646_s1 + $0x20] sm:$0xff] }
   0x6   :  { %113 = vmatpush.bf16.msra.mxu0 %v5306_v3  ;;  %v5300_v22 = vld [vmem:[%s6646_s1] sm:$0xff]  ;;  %v64_v23 = vsel %vm61_vm0, %v62_v12, %v63_v13  ;;  %v166_v26 = vsel %vm163_vm1, %v164_v17, %v165_v18  ;;  %v48_v29 = vpack.c.bf16 %v46_v8, %v44_v6  ;;  %v5319_v32 = vld [vmem:[%s6649_s3 + $0x38] sm:$0xff]  ;;  %41 = vst.msk [vmem:[#allocation2 + $0x1f] sm:$0x1] %vm39_vm3, %v5580_v31  ;;  %v5318_v35 = vld [vmem:[%s6649_s3 + $0x30] sm:$0xff]  ;;  %vm3705_vm7 = vcmask 48128  }
   0x7   :  { %154 = vmatpush.bf16.msra.mxu1 %v5302_v4  ;;  %v67_v24 = vsel %vm61_vm0, %v65_v14, %v66_v15  ;;  %v5308_v25 = vld [vmem:[%s6646_s1 + $0x40] sm:$0xff]  ;;  %v169_v27 = vsel %vm163_vm1, %v167_v19, %v168_v20  ;;  %v5315_v33 = vld [vmem:[%s6649_s3 + $0x18] sm:$0xff]  ;;  %42 = vst.msk [vmem:[#allocation2 + $0x10] sm:$0x1] %vm39_vm3, %v5580_v31  ;;  %289 = vmatpush.bf16.msra.mxu3 %v5319_v32  ;;  %v5314_v36 = vld [vmem:[%s6649_s3 + $0x10] sm:$0xff]  ;;  %vm3707_vm8 = vcmask 58368  }
   0x8   :  { %214 = vmatpush.bf16.msra.mxu2 %v5310_v5  ;;  %v70_v28 = vpack.c.bf16 %v67_v24, %v64_v23  ;;  %v172_v30 = vpack.c.bf16 %v169_v27, %v166_v26  ;;  %v5323_v34 = vld [vmem:[%s6649_s3 + $0x58] sm:$0xff]  ;;  %43 = vst.msk [vmem:[#allocation2 + $0x28] sm:$0x1] %vm39_vm3, %v5580_v31  ;;  %v5322_v37 = vld [vmem:[%s6649_s3 + $0x50] sm:$0xff]  ;;  %v5317_v38 = vld [vmem:[%s6649_s3 + $0x28] sm:$0xff] }
   0x9   :  { %v5313_v39 = vld [vmem:[%s6649_s3 + $0x8] sm:$0xff]  ;;  %v5316_v41 = vld [vmem:[%s6649_s3 + $0x20] sm:$0xff]  ;;  %v5331_v4 = vld [vmem:[%s6651_s5 + $0x38] sm:$0xff] }
   0xa   :  { %114 = vmatpush.bf16.msra.mxu0 %v5305_v10  ;;  %v5321_v40 = vld [vmem:[%s6649_s3 + $0x48] sm:$0xff]  ;;  %v5312_v42 = vld [vmem:[%s6649_s3] sm:$0xff]  ;;  %v5327_v5 = vld [vmem:[%s6651_s5 + $0x18] sm:$0xff] }
   0xb   :  { %155 = vmatpush.bf16.msra.mxu1 %v5301_v11  ;;  %290 = vmatpush.bf16.msra.mxu3 %v5318_v35  ;;  %v5320_v43 = vld [vmem:[%s6649_s3 + $0x40] sm:$0xff]  ;;  %v5335_v6 = vld [vmem:[%s6651_s5 + $0x58] sm:$0xff]  ;;  %v5330_v8 = vld [vmem:[%s6651_s5 + $0x30] sm:$0xff] }
   0xc   :  { %215 = vmatpush.bf16.msra.mxu2 %v5309_v16  ;;  %v5560_v47 = vld [vmem:[%s6648_s2] ss:$0 sm:$0xff]  ;;  %v5339_v7 = vld [vmem:[%s6651_s5 + $0x78] sm:$0xff]  ;;  %v5326_v9 = vld [vmem:[%s6651_s5 + $0x10] sm:$0xff] }
   0xd   :  { %v5334_v10 = vld [vmem:[%s6651_s5 + $0x50] sm:$0xff]  ;;  %v5329_v12 = vld [vmem:[%s6651_s5 + $0x28] sm:$0xff]  ;;  %v5328_v16 = vld [vmem:[%s6651_s5 + $0x20] sm:$0xff] }
   0xe   :  { %115 = vmatpush.bf16.msra.mxu0 %v5304_v21  ;;  %v5338_v11 = vld [vmem:[%s6651_s5 + $0x70] sm:$0xff]  ;;  %v5325_v13 = vld [vmem:[%s6651_s5 + $0x8] sm:$0xff]  ;;  %v5324_v17 = vld [vmem:[%s6651_s5] sm:$0xff] }
   0xf   :  { %156 = vmatpush.bf16.msra.mxu1 %v5300_v22  ;;  %291 = vmatpush.bf16.msra.mxu3 %v5317_v38  ;;  %v5333_v14 = vld [vmem:[%s6651_s5 + $0x48] sm:$0xff]  ;;  %v5332_v18 = vld [vmem:[%s6651_s5 + $0x40] sm:$0xff]  ;;  %v5343_v20 = vld [vmem:[%s6651_s5 + $0x98] sm:$0xff] }
  0x10   :  { %216 = vmatpush.bf16.msra.mxu2 %v5308_v25  ;;  %v5337_v15 = vld [vmem:[%s6651_s5 + $0x68] sm:$0xff]  ;;  %v5336_v19 = vld [vmem:[%s6651_s5 + $0x60] sm:$0xff]  ;;  %v5347_v21 = vld [vmem:[%s6651_s5 + $0xb8] sm:$0xff] }
  0x11   :  { %3737 = vmatmul.msk.bf16.vlgmr.msra.gmra.mxu0 %vm104_vm2, %v70_v28  ;;  %v5351_v22 = vld [vmem:[%s6651_s5 + $0xd8] sm:$0xff]  ;;  %v5342_v24 = vld [vmem:[%s6651_s5 + $0x90] sm:$0xff]  ;;  %v5345_v32 = vld [vmem:[%s6651_s5 + $0xa8] sm:$0xff] }
  0x12   :  { %3754 = vmatmul.msk.bf16.vlgmr.msra.gmra.mxu1 %vm104_vm2, %v48_v29  ;;  %330 = vmatpush.bf16.msrb.mxu0 %v5315_v33  ;;  %v5355_v23 = vld [vmem:[%s6651_s5 + $0xf8] sm:$0xff]  ;;  %v5346_v25 = vld [vmem:[%s6651_s5 + $0xb0] sm:$0xff]  ;;  %v5341_v29 = vld [vmem:[%s6651_s5 + $0x88] sm:$0xff] }
  0x13   :  { %3779 = vmatmul.msk.bf16.vlgmr.msra.gmra.mxu2 %vm104_vm2, %v172_v30  ;;  %383 = vmatpush.bf16.msrb.mxu1 %v5323_v34  ;;  %v5350_v26 = vld [vmem:[%s6651_s5 + $0xd0] sm:$0xff]  ;;  %v5349_v33 = vld [vmem:[%s6651_s5 + $0xc8] sm:$0xff]  ;;  %v5561_v35 = vld [vmem:[%s6650_s4] ss:$0 sm:$0xff] }
  0x14   :  { %292 = vmatpush.bf16.msra.mxu3 %v5316_v41  ;;  %461 = vmatpush.bf16.msrb.mxu2 %v5331_v4  ;;  %v5354_v27 = vld [vmem:[%s6651_s5 + $0xf0] sm:$0xff] }
  0x16   :  { %331 = vmatpush.bf16.msrb.mxu0 %v5314_v36  ;;  %v5353_v36 = vld [vmem:[%s6651_s5 + $0xe8] sm:$0xff] }
  0x17   :  { %384 = vmatpush.bf16.msrb.mxu1 %v5322_v37  ;;  %v5340_v37 = vld [vmem:[%s6651_s5 + $0x80] sm:$0xff] }
  0x18   :  { %504 = vmatpush.bf16.msrb.mxu3 %v5327_v5  ;;  %462 = vmatpush.bf16.msrb.mxu2 %v5330_v8 }
  0x1a   :  { %332 = vmatpush.bf16.msrb.mxu0 %v5313_v39  ;;  %v5344_v39 = vld [vmem:[%s6651_s5 + $0xa0] sm:$0xff] }
  0x1b   :  { %385 = vmatpush.bf16.msrb.mxu1 %v5321_v40  ;;  %v5348_v40 = vld [vmem:[%s6651_s5 + $0xc0] sm:$0xff] }
  0x1c   :  { %505 = vmatpush.bf16.msrb.mxu3 %v5326_v9  ;;  %463 = vmatpush.bf16.msrb.mxu2 %v5329_v12 }
  0x1e   :  { %333 = vmatpush.bf16.msrb.mxu0 %v5312_v42  ;;  %v5352_v42 = vld [vmem:[%s6651_s5 + $0xe0] sm:$0xff] }
  0x1f   :  { %386 = vmatpush.bf16.msrb.mxu1 %v5320_v43 }
  0x20   :  { %506 = vmatpush.bf16.msrb.mxu3 %v5325_v13  ;;  %464 = vmatpush.bf16.msrb.mxu2 %v5328_v16 }
  0x22   :  { %557 = vmatpush.bf16.msra.mxu0 %v5335_v6 }
  0x23   :  { %611 = vmatpush.bf16.msra.mxu1 %v5339_v7 }
  0x24   :  { %507 = vmatpush.bf16.msrb.mxu3 %v5324_v17  ;;  %665 = vmatpush.bf16.msra.mxu2 %v5343_v20 }
  0x26   :  { %558 = vmatpush.bf16.msra.mxu0 %v5334_v10 }
  0x27   :  { %612 = vmatpush.bf16.msra.mxu1 %v5338_v11 }
  0x28   :  { %666 = vmatpush.bf16.msra.mxu2 %v5342_v24 }
  0x2a   :  { %559 = vmatpush.bf16.msra.mxu0 %v5333_v14 }
  0x2b   :  { %613 = vmatpush.bf16.msra.mxu1 %v5337_v15 }
  0x2c   :  { %667 = vmatpush.bf16.msra.mxu2 %v5341_v29  ;;  %v5375_v29 = vld [vmem:[%s6646_s1 + $0xb8] sm:$0xff] }
  0x2e   :  { %560 = vmatpush.bf16.msra.mxu0 %v5332_v18 }
  0x2f   :  { %614 = vmatpush.bf16.msra.mxu1 %v5336_v19 }
  0x30   :  { %668 = vmatpush.bf16.msra.mxu2 %v5340_v37  ;;  %v4074_v37 = vld [vmem:[%s6647_s0 + $0x28] sm:$0x3] }
  0x8e   :  { %v117_v44 = vpop.f32.mrf.mxu0 }
  0x8f   :  { %v158_v45 = vpop.f32.mrf.mxu1 }
  0x90   :  { %v159_v46 = vadd.f32 %v158_v45, %v117_v44 }
  0x96   :  { %v218_v48 = vpop.f32.mrf.mxu2  ;;  %v119_v51 = vpop.f32.mrf.mxu0 }
  0x97   :  { %v223_v49 = vadd.f32 %v218_v48, %v159_v46  ;;  %v160_v52 = vpop.f32.mrf.mxu1 }
  0x98   :  { %v161_v54 = vadd.f32 %v160_v52, %v119_v51 }
  0x99   :  { %v229_v50 = vadd.f32 %v5560_v47, %v223_v49 }
  0x9b   :  { %v231_v53 = vmax.f32 %v229_v50, 0.0 }
  0x9d   :  { %233 = vst.msk [vmem:[#allocation2 + $0x8] sm:$0xff] %vm104_vm2, %v231_v53 }
  0x9e   :  { %v220_v55 = vpop.f32.mrf.mxu2 }
  0x9f   :  { %v224_v56 = vadd.f32 %v220_v55, %v161_v54 }
  0xa1   :  { %v230_v57 = vadd.f32 %v5560_v47, %v224_v56 }
  0xa3   :  { %v232_v58 = vmax.f32 %v230_v57, 0.0 }
  0xa4   :  { %v246_v59 = vld [vmem:[#allocation2 + $0x8] sm:$0xff] }
  0xa5   :  { %234 = vst.msk [vmem:[#allocation2 + $0x20] sm:$0xff] %vm104_vm2, %v232_v58  ;;  %v235_v60 = vld [vmem:[#allocation2 + $0x7] sm:$0xff] }
  0xa6   :  { %v340_v61 = vld [vmem:[#allocation2 + $0x9] sm:$0xff] }
  0xac   :  { %v247_v62 = vld [vmem:[#allocation2 + $0x20] sm:$0xff] }
  0xad   :  { %v236_v63 = vld [vmem:[#allocation2 + $0x1f] sm:$0xff]  ;;  %v248_v1 = vpack.c.bf16 %v247_v62, %v246_v59 }
  0xae   :  { %v341_v0 = vld [vmem:[#allocation2 + $0x21] sm:$0xff]  ;;  %v237_v2 = vpack.c.bf16 %v236_v63, %v235_v60 }
  0xaf   :  { %v342_v3 = vpack.c.bf16 %v341_v0, %v340_v61  ;;  %3804 = vmatmul.msk.bf16.vlgmr.msra.gmra.mxu3 %vm104_vm2, %v248_v1 }
  0xb0   :  { %3821 = vmatmul.msk.bf16.vlgmr.msrb.gmra.mxu0 %vm104_vm2, %v237_v2  ;;  %719 = vmatpush.bf16.msra.mxu3 %v5347_v21  ;;  %v5359_v21 = vld [vmem:[%s6654_s7 + $0x18] sm:$0xff] }
  0xb1   :  { %3846 = vmatmul.msk.bf16.vlgmr.msrb.gmra.mxu1 %vm104_vm2, %v342_v3  ;;  %773 = vmatpush.bf16.msrb.mxu0 %v5351_v22  ;;  %v5358_v22 = vld [vmem:[%s6654_s7 + $0x10] sm:$0xff] }
  0xb2   :  { %827 = vmatpush.bf16.msrb.mxu1 %v5355_v23  ;;  %v5357_v23 = vld [vmem:[%s6654_s7 + $0x8] sm:$0xff] }
  0xb4   :  { %720 = vmatpush.bf16.msra.mxu3 %v5346_v25  ;;  %v5356_v25 = vld [vmem:[%s6654_s7] sm:$0xff] }
  0xb5   :  { %774 = vmatpush.bf16.msrb.mxu0 %v5350_v26  ;;  %v5371_v26 = vld [vmem:[%s6646_s1 + $0x98] sm:$0xff] }
  0xb6   :  { %828 = vmatpush.bf16.msrb.mxu1 %v5354_v27  ;;  %v5367_v27 = vld [vmem:[%s6646_s1 + $0x78] sm:$0xff] }
  0xb8   :  { %721 = vmatpush.bf16.msra.mxu3 %v5345_v32 }
  0xb9   :  { %775 = vmatpush.bf16.msrb.mxu0 %v5349_v33  ;;  %v5374_v33 = vld [vmem:[%s6646_s1 + $0xb0] sm:$0xff] }
  0xba   :  { %829 = vmatpush.bf16.msrb.mxu1 %v5353_v36  ;;  %v4073_v36 = vld [vmem:[%s6647_s0 + $0x20] sm:$0xff] }
  0xbc   :  { %722 = vmatpush.bf16.msra.mxu3 %v5344_v39  ;;  %v5365_v39 = vld [vmem:[%s6646_s1 + $0x68] sm:$0xff] }
  0xbd   :  { %776 = vmatpush.bf16.msrb.mxu0 %v5348_v40  ;;  %v4076_v40 = vld [vmem:[%s6647_s0 + $0x38] sm:$0x3] }
  0xbe   :  { %830 = vmatpush.bf16.msrb.mxu1 %v5352_v42  ;;  %v970_v42 = vrot.slane %v4074_v37, 1 }
 0x12d   :  { %v335_v28 = vpop.f32.mrf.mxu0 }
 0x12e   :  { %v388_v30 = vpop.f32.mrf.mxu1 }
 0x132   :  { %v294_v31 = vpop.f32.mrf.mxu3 }
 0x133   :  { %v336_v34 = vadd.f32 %v335_v28, %v294_v31  ;;  %v5366_v31 = vld [vmem:[%s6646_s1 + $0x70] sm:$0xff] }
 0x135   :  { %v393_v38 = vadd.f32 %v388_v30, %v336_v34  ;;  %v337_v44 = vpop.f32.mrf.mxu0  ;;  %v5370_v30 = vld [vmem:[%s6646_s1 + $0x90] sm:$0xff]  ;;  %v5369_v34 = vld [vmem:[%s6646_s1 + $0x88] sm:$0xff] }
 0x136   :  { %v390_v47 = vpop.f32.mrf.mxu1 }
 0x137   :  { %v399_v41 = vadd.f32 %v5561_v35, %v393_v38  ;;  %v4075_v38 = vld [vmem:[%s6647_s0 + $0x30] sm:$0xff] }
 0x139   :  { %v401_v43 = vmax.f32 %v399_v41, 0.0  ;;  %v969_v41 = vrot.slane %v4073_v36, 1 }
 0x13a   :  { %v296_v45 = vpop.f32.mrf.mxu3 }
 0x13b   :  { %v338_v46 = vadd.f32 %v337_v44, %v296_v45  ;;  %v403_v48 = vpack.c.bf16 %v401_v43, %v401_v43  ;;  %v972_v43 = vrot.slane %v4075_v38, 1  ;;  %v973_v45 = vrot.slane %v4076_v40, 1 }
 0x13d   :  { %v394_v49 = vadd.f32 %v390_v47, %v338_v46  ;;  %v424_v51 = vunpack.c.l.b16 %v403_v48  ;;  %v5373_v47 = vld [vmem:[%s6646_s1 + $0xa8] sm:$0xff]  ;;  %v5368_v48 = vld [vmem:[%s6646_s1 + $0x80] sm:$0xff] }
 0x13f   :  { %v400_v50 = vadd.f32 %v5561_v35, %v394_v49  ;;  %v426_v55 = vrot.slane %v424_v51, 1  ;;  %v522_v56 = vrot.slane %v424_v51, 2  ;;  %v576_v57 = vrot.slane %v424_v51, 3 }
 0x140   :  { %v630_v6 = vrot.slane %v424_v51, 4  ;;  %v684_v11 = vrot.slane %v424_v51, 5  ;;  %v738_v12 = vrot.slane %v424_v51, 6  ;;  %v792_v13 = vrot.slane %v424_v51, 7 }
 0x141   :  { %v402_v52 = vmax.f32 %v400_v50, 0.0  ;;  %v971_v49 = vsel %vm61_vm0, %v969_v41, %v970_v42  ;;  %v974_v50 = vsel %vm61_vm0, %v972_v43, %v973_v45 }
 0x143   :  { %v404_v53 = vpack.c.bf16 %v402_v52, %v402_v52  ;;  %v5364_v52 = vld [vmem:[%s6646_s1 + $0x60] sm:$0xff] }
 0x145   :  { %v425_v54 = vunpack.c.l.b16 %v404_v53 }
 0x147   :  { %v428_v58 = vsel %vm427_vm4, %v425_v54, %v426_v55  ;;  %v470_v59 = vrot.slane %v425_v54, 7  ;;  %v523_v60 = vrot.slane %v425_v54, 1  ;;  %v577_v61 = vrot.slane %v425_v54, 2  ;;  %v5372_v55 = vld [vmem:[%s6646_s1 + $0xa0] sm:$0xff] }
 0x148   :  { %v429_v62 = vpack.c.b16 %v428_v58, %v428_v58  ;;  %v631_v5 = vrot.slane %v425_v54, 3  ;;  %v685_v7 = vrot.slane %v425_v54, 4  ;;  %v739_v8 = vrot.slane %v425_v54, 5 }
 0x149   :  { %v471_v63 = vsel %vm427_vm4, %v470_v59, %v424_v51  ;;  %v524_v0 = vsel %vm427_vm4, %v523_v60, %v522_v56  ;;  %v578_v1 = vsel %vm427_vm4, %v577_v61, %v576_v57  ;;  %v793_v9 = vrot.slane %v425_v54, 6 }
 0x14a   :  { %3871 = vmatmul.msk.bf16.vlgmr.msrb.gmra.mxu2 %vm104_vm2, %v429_v62  ;;  %v472_v2 = vpack.c.b16 %v471_v63, %v471_v63  ;;  %v525_v3 = vpack.c.b16 %v524_v0, %v524_v0  ;;  %v579_v4 = vpack.c.b16 %v578_v1, %v578_v1  ;;  %v632_v10 = vsel %vm427_vm4, %v631_v5, %v630_v6  ;;  %v5363_v62 = vld [vmem:[%s6655_s9 + $0x18] sm:$0xff]  ;;  %v5362_v1 = vld [vmem:[%s6655_s9 + $0x10] sm:$0xff]  ;;  %v5562_v6 = vld [vmem:[%s6652_s6] ss:$0 sm:$0xff] }
 0x14b   :  { %v686_v14 = vsel %vm427_vm4, %v685_v7, %v684_v11  ;;  %v740_v15 = vsel %vm427_vm4, %v739_v8, %v738_v12  ;;  %v633_v16 = vpack.c.b16 %v632_v10, %v632_v10  ;;  %v794_v17 = vsel %vm427_vm4, %v793_v9, %v792_v13  ;;  %887 = vmatpush.bf16.msrb.mxu2 %v5359_v21  ;;  %v5361_v21 = vld [vmem:[%s6655_s9 + $0x8] sm:$0xff] }
 0x14c   :  { %3888 = vmatmul.msk.bf16.vlgmr.msrb.gmra.mxu3 %vm104_vm2, %v472_v2  ;;  %3913 = vmatmul.msk.bf16.vlgmr.msra.gmra.mxu0 %vm104_vm2, %v525_v3  ;;  %v687_v18 = vpack.c.b16 %v686_v14, %v686_v14  ;;  %v741_v19 = vpack.c.b16 %v740_v15, %v740_v15  ;;  %v795_v20 = vpack.c.b16 %v794_v17, %v794_v17  ;;  %v1069_v14 = vrot.slane %v4073_v36, 2 }
 0x14d   :  { %3938 = vmatmul.msk.bf16.vlgmr.msra.gmra.mxu1 %vm104_vm2, %v579_v4  ;;  %1018 = vmatpush.bf16.msra.mxu0 %v5371_v26  ;;  %v977_v54 = vpack.c.bf16 %v974_v50, %v971_v49  ;;  %v955_v57 = vpack.c.bf16 %v4075_v38, %v4073_v36  ;;  %v1070_v15 = vrot.slane %v4074_v37, 2  ;;  %v1073_v17 = vrot.slane %v4076_v40, 2  ;;  %v5563_v26 = vld [vmem:[%s6653_s8] ss:$0 sm:$0xff] }
 0x14e   :  { %1059 = vmatpush.bf16.msra.mxu1 %v5367_v27  ;;  %941 = vmatpush.bf16.msrb.mxu3 %v5363_v62  ;;  %v5382_v27 = vld [vmem:[%s6649_s3 + $0x90] sm:$0xff]  ;;  %v5380_v36 = vld [vmem:[%s6649_s3 + $0x80] sm:$0xff] }
 0x14f   :  { %888 = vmatpush.bf16.msrb.mxu2 %v5358_v22  ;;  %v5360_v22 = vld [vmem:[%s6655_s9] sm:$0xff] }
 0x150   :  { %v5376_v37 = vld [vmem:[%s6649_s3 + $0x60] sm:$0xff] }
 0x151   :  { %1019 = vmatpush.bf16.msra.mxu0 %v5370_v30 }
 0x152   :  { %1060 = vmatpush.bf16.msra.mxu1 %v5366_v31  ;;  %942 = vmatpush.bf16.msrb.mxu3 %v5362_v1  ;;  %v5381_v31 = vld [vmem:[%s6649_s3 + $0x88] sm:$0xff] }
 0x153   :  { %889 = vmatpush.bf16.msrb.mxu2 %v5357_v23  ;;  %v5383_v23 = vld [vmem:[%s6649_s3 + $0x98] sm:$0xff] }
 0x155   :  { %1020 = vmatpush.bf16.msra.mxu0 %v5369_v34  ;;  %v5385_v34 = vld [vmem:[%s6649_s3 + $0xa8] sm:$0xff] }
 0x156   :  { %1061 = vmatpush.bf16.msra.mxu1 %v5365_v39  ;;  %943 = vmatpush.bf16.msrb.mxu3 %v5361_v21  ;;  %v5384_v39 = vld [vmem:[%s6649_s3 + $0xa0] sm:$0xff]  ;;  %v5415_v21 = vld [vmem:[%s6651_s5 + $0x1d8] sm:$0xff] }
 0x157   :  { %890 = vmatpush.bf16.msrb.mxu2 %v5356_v25  ;;  %v5387_v25 = vld [vmem:[%s6649_s3 + $0xb8] sm:$0xff] }
 0x159   :  { %1021 = vmatpush.bf16.msra.mxu0 %v5368_v48 }
 0x15a   :  { %3963 = vmatmul.msk.bf16.vlgmr.msra.gmra.mxu2 %vm104_vm2, %v633_v16  ;;  %1062 = vmatpush.bf16.msra.mxu1 %v5364_v52  ;;  %v1072_v16 = vrot.slane %v4075_v38, 2 }
 0x15b   :  { %1118 = vmatpush.bf16.msra.mxu2 %v5375_v29  ;;  %944 = vmatpush.bf16.msrb.mxu3 %v5360_v22  ;;  %v5386_v29 = vld [vmem:[%s6649_s3 + $0xb0] sm:$0xff]  ;;  %v5419_v22 = vld [vmem:[%s6651_s5 + $0x1f8] sm:$0xff] }
 0x15c   :  { %3988 = vmatmul.msk.bf16.vlgmr.msra.gmra.mxu3 %vm104_vm2, %v687_v18  ;;  %4013 = vmatmul.msk.bf16.vlgmr.msrb.gmra.mxu0 %vm104_vm2, %v741_v19  ;;  %v1071_v18 = vsel %vm163_vm1, %v1069_v14, %v1070_v15  ;;  %v1074_v19 = vsel %vm163_vm1, %v1072_v16, %v1073_v17  ;;  %v5401_v14 = vld [vmem:[%s6651_s5 + $0x168] sm:$0xff]  ;;  %v5392_v15 = vld [vmem:[%s6651_s5 + $0x120] sm:$0xff] }
 0x15d   :  { %4038 = vmatmul.msk.bf16.vlgmr.msrb.gmra.mxu1 %vm104_vm2, %v795_v20  ;;  %v1077_v20 = vpack.c.bf16 %v1074_v19, %v1071_v18  ;;  %v5388_v16 = vld [vmem:[%s6651_s5 + $0x100] sm:$0xff]  ;;  %v5407_v19 = vld [vmem:[%s6651_s5 + $0x198] sm:$0xff] }
 0x15e   :  { %1290 = vmatpush.bf16.msrb.mxu1 %v5387_v25  ;;  %v5396_v17 = vld [vmem:[%s6651_s5 + $0x140] sm:$0xff]  ;;  %v5414_v25 = vld [vmem:[%s6651_s5 + $0x1d0] sm:$0xff] }
 0x15f   :  { %1119 = vmatpush.bf16.msra.mxu2 %v5374_v33  ;;  %1196 = vmatpush.bf16.msra.mxu3 %v5383_v23  ;;  %v5400_v18 = vld [vmem:[%s6651_s5 + $0x160] sm:$0xff]  ;;  %v5406_v23 = vld [vmem:[%s6651_s5 + $0x190] sm:$0xff] }
 0x162   :  { %1291 = vmatpush.bf16.msrb.mxu1 %v5386_v29 }
 0x163   :  { %1120 = vmatpush.bf16.msra.mxu2 %v5373_v47  ;;  %1197 = vmatpush.bf16.msra.mxu3 %v5382_v27  ;;  %v5418_v27 = vld [vmem:[%s6651_s5 + $0x1f0] sm:$0xff] }
 0x166   :  { %1292 = vmatpush.bf16.msrb.mxu1 %v5385_v34  ;;  %v5413_v34 = vld [vmem:[%s6651_s5 + $0x1c8] sm:$0xff] }
 0x167   :  { %1121 = vmatpush.bf16.msra.mxu2 %v5372_v55  ;;  %1198 = vmatpush.bf16.msra.mxu3 %v5381_v31 }
 0x16a   :  { %1293 = vmatpush.bf16.msrb.mxu1 %v5384_v39  ;;  %v5408_v39 = vld [vmem:[%s6651_s5 + $0x1a0] sm:$0xff] }
 0x16b   :  { %1199 = vmatpush.bf16.msra.mxu3 %v5380_v36  ;;  %v5404_v36 = vld [vmem:[%s6651_s5 + $0x180] sm:$0xff] }
 0x16c   :  { %4109 = vmatmul.msk.bf16.vlgmr.msra.gmra.mxu0 %vm104_vm2, %v977_v54 }
 0x16d   :  { %4126 = vmatmul.msk.bf16.vlgmr.msra.gmra.mxu1 %vm104_vm2, %v955_v57 }
 0x1c9   :  { %v562_v24 = vpop.f32.mrf.mxu0 }
 0x1ca   :  { %v616_v28 = vpop.f32.mrf.mxu1 }
 0x1cd   :  { %v466_v32 = vpop.f32.mrf.mxu2 }
 0x1cf   :  { %v509_v35 = vpop.f32.mrf.mxu3 }
 0x1d0   :  { %v510_v51 = vadd.f32 %v509_v35, %v466_v32  ;;  %v5377_v32 = vld [vmem:[%s6649_s3 + $0x68] sm:$0xff] }
 0x1d1   :  { %v564_v44 = vpop.f32.mrf.mxu0 }
 0x1d2   :  { %v618_v46 = vpop.f32.mrf.mxu1  ;;  %v566_v58 = vadd.f32 %v562_v24, %v510_v51  ;;  %v5379_v24 = vld [vmem:[%s6649_s3 + $0x78] sm:$0xff]  ;;  %v5564_v44 = vld [vmem:[%s6648_s2 + $0x1] ss:$0 sm:$0xff] }
 0x1d3   :  { %1237 = vmatpush.bf16.msrb.mxu0 %v5379_v24  ;;  %v5410_v24 = vld [vmem:[%s6651_s5 + $0x1b0] sm:$0xff] }
 0x1d4   :  { %v620_v61 = vadd.f32 %v616_v28, %v566_v58  ;;  %v5378_v28 = vld [vmem:[%s6649_s3 + $0x70] sm:$0xff] }
 0x1d5   :  { %v468_v53 = vpop.f32.mrf.mxu2 }
 0x1d7   :  { %v511_v56 = vpop.f32.mrf.mxu3  ;;  %1238 = vmatpush.bf16.msrb.mxu0 %v5378_v28  ;;  %v5405_v28 = vld [vmem:[%s6651_s5 + $0x188] sm:$0xff] }
 0x1d9   :  { %v778_v59 = vpop.f32.mrf.mxu0 }
 0x1da   :  { %v832_v60 = vpop.f32.mrf.mxu1 }
 0x1db   :  { %1239 = vmatpush.bf16.msrb.mxu0 %v5377_v32  ;;  %v5566_v32 = vld [vmem:[%s6650_s4 + $0x1] ss:$0 sm:$0xff] }
 0x1dd   :  { %v670_v63 = vpop.f32.mrf.mxu2 }
 0x1de   :  { %v674_v0 = vadd.f32 %v670_v63, %v620_v61 }
 0x1df   :  { %v724_v2 = vpop.f32.mrf.mxu3  ;;  %1240 = vmatpush.bf16.msrb.mxu0 %v5376_v37 }
 0x1e0   :  { %v728_v3 = vadd.f32 %v724_v2, %v674_v0 }
 0x1e1   :  { %v780_v4 = vpop.f32.mrf.mxu0 }
 0x1e2   :  { %v782_v5 = vadd.f32 %v778_v59, %v728_v3  ;;  %v834_v7 = vpop.f32.mrf.mxu1  ;;  %v5395_v3 = vld [vmem:[%s6651_s5 + $0x138] sm:$0xff] }
 0x1e3   :  { %v5391_v4 = vld [vmem:[%s6651_s5 + $0x118] sm:$0xff]  ;;  %v5394_v7 = vld [vmem:[%s6651_s5 + $0x130] sm:$0xff] }
 0x1e4   :  { %v836_v8 = vadd.f32 %v832_v60, %v782_v5  ;;  %v5399_v5 = vld [vmem:[%s6651_s5 + $0x158] sm:$0xff] }
 0x1e5   :  { %v672_v9 = vpop.f32.mrf.mxu2  ;;  %1465 = vmatpush.bf16.msra.mxu0 %v5399_v5 }
 0x1e6   :  { %v841_v10 = vadd.f32 %v5562_v6, %v836_v8  ;;  %v5403_v6 = vld [vmem:[%s6651_s5 + $0x178] sm:$0xff]  ;;  %v5390_v8 = vld [vmem:[%s6651_s5 + $0x110] sm:$0xff] }
 0x1e7   :  { %v726_v11 = vpop.f32.mrf.mxu3  ;;  %1519 = vmatpush.bf16.msra.mxu1 %v5403_v6  ;;  %v5398_v9 = vld [vmem:[%s6651_s5 + $0x150] sm:$0xff] }
 0x1e8   :  { %v842_v12 = vmax.f32 %v841_v10, 0.0  ;;  %v5402_v10 = vld [vmem:[%s6651_s5 + $0x170] sm:$0xff]  ;;  %v5393_v11 = vld [vmem:[%s6651_s5 + $0x128] sm:$0xff] }
 0x1e9   :  { %v1023_v41 = vpop.f32.mrf.mxu0  ;;  %1466 = vmatpush.bf16.msra.mxu0 %v5398_v9 }
 0x1ea   :  { %v843_v13 = vpack.c.bf16 %v842_v12, %v842_v12  ;;  %v1064_v42 = vpop.f32.mrf.mxu1  ;;  %v5389_v12 = vld [vmem:[%s6651_s5 + $0x108] sm:$0xff] }
 0x1eb   :  { %v1065_v43 = vadd.f32 %v1064_v42, %v1023_v41  ;;  %1520 = vmatpush.bf16.msra.mxu1 %v5402_v10  ;;  %v5416_v41 = vld [vmem:[%s6651_s5 + $0x1e0] sm:$0xff] }
 0x1ec   :  { %4055 = vmatmul.msk.bf16.vlgmr.msrb.gmra.mxu2 %vm104_vm2, %v843_v13  ;;  %v5397_v13 = vld [vmem:[%s6651_s5 + $0x148] sm:$0xff] }
 0x1ed   :  { %1369 = vmatpush.bf16.msrb.mxu2 %v5395_v3  ;;  %1467 = vmatpush.bf16.msra.mxu0 %v5397_v13 }
 0x1ef   :  { %1521 = vmatpush.bf16.msra.mxu1 %v5401_v14 }
 0x1f1   :  { %v1025_v48 = vpop.f32.mrf.mxu0  ;;  %1370 = vmatpush.bf16.msrb.mxu2 %v5394_v7  ;;  %1468 = vmatpush.bf16.msra.mxu0 %v5396_v17 }
 0x1f2   :  { %v1066_v49 = vpop.f32.mrf.mxu1 }
 0x1f3   :  { %v1067_v51 = vadd.f32 %v1066_v49, %v1025_v48  ;;  %1522 = vmatpush.bf16.msra.mxu1 %v5400_v18 }
 0x1f5   :  { %1371 = vmatpush.bf16.msrb.mxu2 %v5393_v11 }
 0x1f9   :  { %1372 = vmatpush.bf16.msrb.mxu2 %v5392_v15 }
 0x1fc   :  { %4151 = vmatmul.msk.bf16.vlgmr.msra.gmra.mxu2 %vm104_vm2, %v1077_v20  ;;  %v5411_v20 = vld [vmem:[%s6651_s5 + $0x1b8] sm:$0xff] }
 0x1fd   :  { %1573 = vmatpush.bf16.msra.mxu2 %v5407_v19 }
 0x201   :  { %1574 = vmatpush.bf16.msra.mxu2 %v5406_v23  ;;  %v5421_v23 = vld [vmem:[%s6654_s7 + $0x28] sm:$0xff] }
 0x205   :  { %1575 = vmatpush.bf16.msra.mxu2 %v5405_v28 }
 0x209   :  { %1576 = vmatpush.bf16.msra.mxu2 %v5404_v36  ;;  %v4482_v36 = vld [vmem:[%s6647_s0 + $0x40] sm:$0xff] }
 0x26f   :  { %v892_v30 = vpop.f32.mrf.mxu2 }
 0x270   :  { %v893_v33 = vadd.f32 %v5563_v26, %v892_v30 }
 0x272   :  { %v896_v35 = vmax.f32 %v893_v33, 0.0  ;;  %v5409_v33 = vld [vmem:[%s6651_s5 + $0x1a8] sm:$0xff] }
 0x274   :  { %v897_v38 = vpack.c.bf16 %v896_v35, %v896_v35  ;;  %v5417_v35 = vld [vmem:[%s6651_s5 + $0x1e8] sm:$0xff] }
 0x276   :  { %4072 = vmatmul.msk.bf16.vlgmr.msrb.gmra.mxu3 %vm104_vm2, %v897_v38 }
 0x277   :  { %v894_v40 = vpop.f32.mrf.mxu2  ;;  %1412 = vmatpush.bf16.msrb.mxu3 %v5391_v4 }
 0x278   :  { %v5412_v40 = vld [vmem:[%s6651_s5 + $0x1c0] sm:$0xff] }
 0x27b   :  { %1413 = vmatpush.bf16.msrb.mxu3 %v5390_v8 }
 0x27f   :  { %v1123_v45 = vpop.f32.mrf.mxu2  ;;  %1414 = vmatpush.bf16.msrb.mxu3 %v5389_v12 }
 0x280   :  { %v1128_v46 = vadd.f32 %v1123_v45, %v1065_v43 }
 0x282   :  { %v1135_v47 = vadd.f32 %v5564_v44, %v1128_v46 }
 0x283   :  { %1415 = vmatpush.bf16.msrb.mxu3 %v5388_v16 }
 0x284   :  { %v1137_v50 = vmax.f32 %v1135_v47, 0.0 }
 0x286   :  { %1139 = vst.msk [vmem:[#allocation2 + $0x8] sm:$0xff] %vm104_vm2, %v1137_v50 }
 0x287   :  { %v1125_v52 = vpop.f32.mrf.mxu2 }
 0x288   :  { %v1129_v53 = vadd.f32 %v1125_v52, %v1067_v51 }
 0x28a   :  { %v1136_v54 = vadd.f32 %v5564_v44, %v1129_v53 }
 0x28c   :  { %v1138_v55 = vmax.f32 %v1136_v54, 0.0 }
 0x28d   :  { %v1153_v56 = vld [vmem:[#allocation2 + $0x8] sm:$0xff] }
 0x28e   :  { %1140 = vst.msk [vmem:[#allocation2 + $0x20] sm:$0xff] %vm104_vm2, %v1138_v55  ;;  %v1141_v57 = vld [vmem:[#allocation2 + $0x7] sm:$0xff] }
 0x28f   :  { %v1247_v58 = vld [vmem:[#allocation2 + $0x9] sm:$0xff] }
 0x295   :  { %v1154_v59 = vld [vmem:[#allocation2 + $0x20] sm:$0xff] }
 0x296   :  { %v1142_v60 = vld [vmem:[#allocation2 + $0x1f] sm:$0xff]  ;;  %v1155_v62 = vpack.c.bf16 %v1154_v59, %v1153_v56 }
 0x297   :  { %v1248_v61 = vld [vmem:[#allocation2 + $0x21] sm:$0xff]  ;;  %v1143_v63 = vpack.c.bf16 %v1142_v60, %v1141_v57 }
 0x298   :  { %v1249_v0 = vpack.c.bf16 %v1248_v61, %v1247_v58  ;;  %4185 = vmatmul.msk.bf16.vlgmr.msra.gmra.mxu3 %vm104_vm2, %v1155_v62 }
 0x299   :  { %4202 = vmatmul.msk.bf16.vlgmr.msrb.gmra.mxu0 %vm104_vm2, %v1143_v63  ;;  %1627 = vmatpush.bf16.msra.mxu3 %v5411_v20 }
 0x29a   :  { %4227 = vmatmul.msk.bf16.vlgmr.msrb.gmra.mxu1 %vm104_vm2, %v1249_v0  ;;  %1681 = vmatpush.bf16.msrb.mxu0 %v5415_v21  ;;  %v5423_v21 = vld [vmem:[%s6654_s7 + $0x38] sm:$0xff] }
 0x29b   :  { %1735 = vmatpush.bf16.msrb.mxu1 %v5419_v22  ;;  %v5422_v22 = vld [vmem:[%s6654_s7 + $0x30] sm:$0xff] }
 0x29d   :  { %1628 = vmatpush.bf16.msra.mxu3 %v5410_v24 }
 0x29e   :  { %1682 = vmatpush.bf16.msrb.mxu0 %v5414_v25  ;;  %v5420_v25 = vld [vmem:[%s6654_s7 + $0x20] sm:$0xff] }
 0x29f   :  { %1736 = vmatpush.bf16.msrb.mxu1 %v5418_v27  ;;  %v5431_v27 = vld [vmem:[%s6646_s1 + $0xd8] sm:$0xff] }
 0x2a1   :  { %1629 = vmatpush.bf16.msra.mxu3 %v5409_v33  ;;  %v5438_v33 = vld [vmem:[%s6646_s1 + $0x110] sm:$0xff] }
 0x2a2   :  { %1683 = vmatpush.bf16.msrb.mxu0 %v5413_v34  ;;  %v5433_v34 = vld [vmem:[%s6646_s1 + $0xe8] sm:$0xff] }
 0x2a3   :  { %1737 = vmatpush.bf16.msrb.mxu1 %v5417_v35 }
 0x2a5   :  { %1630 = vmatpush.bf16.msra.mxu3 %v5408_v39  ;;  %v5429_v39 = vld [vmem:[%s6646_s1 + $0xc8] sm:$0xff] }
 0x2a6   :  { %1684 = vmatpush.bf16.msrb.mxu0 %v5412_v40  ;;  %v4485_v40 = vld [vmem:[%s6647_s0 + $0x58] sm:$0x3] }
 0x2a7   :  { %1738 = vmatpush.bf16.msrb.mxu1 %v5416_v41  ;;  %v1882_v41 = vrot.slane %v4482_v36, 1 }
 0x2f9   :  { %v5989_v1 = vpop.f32.mrf.mxu3 }
 0x301   :  { %v948_v2 = vpop.f32.mrf.mxu3 }
 0x316   :  { %v1242_v26 = vpop.f32.mrf.mxu0 }
 0x317   :  { %v1295_v29 = vpop.f32.mrf.mxu1 }
 0x31b   :  { %v1201_v30 = vpop.f32.mrf.mxu3 }
 0x31c   :  { %v1243_v31 = vadd.f32 %v1242_v26, %v1201_v30  ;;  %v5435_v26 = vld [vmem:[%s6646_s1 + $0xf8] sm:$0xff]  ;;  %v5434_v30 = vld [vmem:[%s6646_s1 + $0xf0] sm:$0xff] }
 0x31e   :  { %v1300_v37 = vadd.f32 %v1295_v29, %v1243_v31  ;;  %v1244_v43 = vpop.f32.mrf.mxu0  ;;  %v5439_v29 = vld [vmem:[%s6646_s1 + $0x118] sm:$0xff]  ;;  %v5430_v31 = vld [vmem:[%s6646_s1 + $0xd0] sm:$0xff] }
 0x31f   :  { %v1297_v46 = vpop.f32.mrf.mxu1 }
 0x320   :  { %v1307_v38 = vadd.f32 %v5566_v32, %v1300_v37  ;;  %v4483_v37 = vld [vmem:[%s6647_s0 + $0x48] sm:$0x3] }
 0x322   :  { %v1309_v42 = vmax.f32 %v1307_v38, 0.0  ;;  %v4484_v38 = vld [vmem:[%s6647_s0 + $0x50] sm:$0xff] }
 0x323   :  { %v1203_v44 = vpop.f32.mrf.mxu3 }
 0x324   :  { %v1245_v45 = vadd.f32 %v1244_v43, %v1203_v44  ;;  %v1311_v47 = vpack.c.bf16 %v1309_v42, %v1309_v42  ;;  %v1883_v42 = vrot.slane %v4483_v37, 1  ;;  %v1885_v43 = vrot.slane %v4484_v38, 1 }
 0x326   :  { %v1301_v48 = vadd.f32 %v1297_v46, %v1245_v45  ;;  %v1333_v50 = vunpack.c.l.b16 %v1311_v47  ;;  %v1886_v45 = vrot.slane %v4485_v40, 1  ;;  %v5437_v47 = vld [vmem:[%s6646_s1 + $0x108] sm:$0xff] }
 0x328   :  { %v1308_v49 = vadd.f32 %v5566_v32, %v1301_v48  ;;  %v1335_v54 = vrot.slane %v1333_v50, 1  ;;  %v1430_v55 = vrot.slane %v1333_v50, 2  ;;  %v1484_v56 = vrot.slane %v1333_v50, 3  ;;  %v5432_v48 = vld [vmem:[%s6646_s1 + $0xe0] sm:$0xff] }
 0x329   :  { %v1538_v6 = vrot.slane %v1333_v50, 4  ;;  %v1592_v11 = vrot.slane %v1333_v50, 5  ;;  %v1646_v12 = vrot.slane %v1333_v50, 6  ;;  %v1700_v13 = vrot.slane %v1333_v50, 7 }
 0x32a   :  { %v1310_v51 = vmax.f32 %v1308_v49, 0.0  ;;  %v1884_v49 = vsel %vm61_vm0, %v1882_v41, %v1883_v42 }
 0x32c   :  { %v1312_v52 = vpack.c.bf16 %v1310_v51, %v1310_v51 }
 0x32e   :  { %v1334_v53 = vunpack.c.l.b16 %v1312_v52  ;;  %v5428_v52 = vld [vmem:[%s6646_s1 + $0xc0] sm:$0xff] }
 0x330   :  { %v1336_v57 = vsel %vm427_vm4, %v1334_v53, %v1335_v54  ;;  %v1378_v58 = vrot.slane %v1334_v53, 7  ;;  %v1431_v59 = vrot.slane %v1334_v53, 1  ;;  %v1485_v60 = vrot.slane %v1334_v53, 2 }
 0x331   :  { %v1337_v61 = vpack.c.b16 %v1336_v57, %v1336_v57  ;;  %v1539_v5 = vrot.slane %v1334_v53, 3  ;;  %v1593_v7 = vrot.slane %v1334_v53, 4  ;;  %v1647_v8 = vrot.slane %v1334_v53, 5 }
 0x332   :  { %v1379_v62 = vsel %vm427_vm4, %v1378_v58, %v1333_v50  ;;  %v1432_v63 = vsel %vm427_vm4, %v1431_v59, %v1430_v55  ;;  %v1486_v0 = vsel %vm427_vm4, %v1485_v60, %v1484_v56  ;;  %v1701_v9 = vrot.slane %v1334_v53, 6  ;;  %v5436_v55 = vld [vmem:[%s6646_s1 + $0x100] sm:$0xff] }
 0x333   :  { %4261 = vmatmul.msk.bf16.vlgmr.msrb.gmra.mxu2 %vm104_vm2, %v1337_v61  ;;  %v1380_v2 = vpack.c.b16 %v1379_v62, %v1379_v62  ;;  %v1433_v3 = vpack.c.b16 %v1432_v63, %v1432_v63  ;;  %v1487_v4 = vpack.c.b16 %v1486_v0, %v1486_v0  ;;  %v1540_v10 = vsel %vm427_vm4, %v1539_v5, %v1538_v6  ;;  %v5427_v62 = vld [vmem:[%s6655_s9 + $0x38] sm:$0xff] }
 0x334   :  { %v1594_v14 = vsel %vm427_vm4, %v1593_v7, %v1592_v11  ;;  %v1648_v15 = vsel %vm427_vm4, %v1647_v8, %v1646_v12  ;;  %v1541_v16 = vpack.c.b16 %v1540_v10, %v1540_v10  ;;  %v1702_v17 = vsel %vm427_vm4, %v1701_v9, %v1700_v13  ;;  %1798 = vmatpush.bf16.msrb.mxu2 %v5423_v21  ;;  %v5567_v7 = vld [vmem:[%s6652_s6 + $0x1] ss:$0 sm:$0xff] }
 0x335   :  { %4278 = vmatmul.msk.bf16.vlgmr.msrb.gmra.mxu3 %vm104_vm2, %v1380_v2  ;;  %4303 = vmatmul.msk.bf16.vlgmr.msra.gmra.mxu0 %vm104_vm2, %v1433_v3  ;;  %v1595_v18 = vpack.c.b16 %v1594_v14, %v1594_v14  ;;  %v1649_v19 = vpack.c.b16 %v1648_v15, %v1648_v15  ;;  %v1703_v20 = vpack.c.b16 %v1702_v17, %v1702_v17  ;;  %v5426_v2 = vld [vmem:[%s6655_s9 + $0x30] sm:$0xff]  ;;  %v1982_v15 = vrot.slane %v4482_v36, 2 }
 0x336   :  { %4328 = vmatmul.msk.bf16.vlgmr.msra.gmra.mxu1 %vm104_vm2, %v1487_v4  ;;  %1931 = vmatpush.bf16.msra.mxu0 %v5435_v26  ;;  %v1887_v50 = vsel %vm61_vm0, %v1885_v43, %v1886_v45  ;;  %v1868_v57 = vpack.c.bf16 %v4484_v38, %v4482_v36  ;;  %v1985_v17 = vrot.slane %v4484_v38, 2  ;;  %v5451_v26 = vld [vmem:[%s6649_s3 + $0x118] sm:$0xff]  ;;  %v5440_v38 = vld [vmem:[%s6649_s3 + $0xc0] sm:$0xff] }
 0x337   :  { %1972 = vmatpush.bf16.msra.mxu1 %v5431_v27  ;;  %v1890_v54 = vpack.c.bf16 %v1887_v50, %v1884_v49  ;;  %1854 = vmatpush.bf16.msrb.mxu3 %v5427_v62  ;;  %v5568_v27 = vld [vmem:[%s6653_s8 + $0x1] ss:$0 sm:$0xff]  ;;  %v5569_v45 = vld [vmem:[%s6648_s2 + $0x2] ss:$0 sm:$0xff] }
 0x338   :  { %1799 = vmatpush.bf16.msrb.mxu2 %v5422_v22  ;;  %v5425_v22 = vld [vmem:[%s6655_s9 + $0x28] sm:$0xff] }
 0x33a   :  { %1932 = vmatpush.bf16.msra.mxu0 %v5434_v30  ;;  %v5450_v30 = vld [vmem:[%s6649_s3 + $0x110] sm:$0xff] }
 0x33b   :  { %1973 = vmatpush.bf16.msra.mxu1 %v5430_v31  ;;  %1855 = vmatpush.bf16.msrb.mxu3 %v5426_v2 }
 0x33c   :  { %1800 = vmatpush.bf16.msrb.mxu2 %v5421_v23  ;;  %v5424_v23 = vld [vmem:[%s6655_s9 + $0x20] sm:$0xff] }
 0x33e   :  { %1933 = vmatpush.bf16.msra.mxu0 %v5433_v34 }
 0x33f   :  { %1974 = vmatpush.bf16.msra.mxu1 %v5429_v39  ;;  %1856 = vmatpush.bf16.msrb.mxu3 %v5425_v22  ;;  %v5464_v22 = vld [vmem:[%s6651_s5 + $0x260] sm:$0xff] }
 0x340   :  { %1801 = vmatpush.bf16.msrb.mxu2 %v5420_v25  ;;  %v5443_v25 = vld [vmem:[%s6649_s3 + $0xd8] sm:$0xff] }
 0x342   :  { %1934 = vmatpush.bf16.msra.mxu0 %v5432_v48 }
 0x343   :  { %4353 = vmatmul.msk.bf16.vlgmr.msra.gmra.mxu2 %vm104_vm2, %v1541_v16  ;;  %1975 = vmatpush.bf16.msra.mxu1 %v5428_v52  ;;  %v1983_v16 = vrot.slane %v4483_v37, 2  ;;  %v5444_v37 = vld [vmem:[%s6649_s3 + $0xe0] sm:$0xff] }
 0x344   :  { %2031 = vmatpush.bf16.msra.mxu2 %v5439_v29  ;;  %1857 = vmatpush.bf16.msrb.mxu3 %v5424_v23  ;;  %v5442_v29 = vld [vmem:[%s6649_s3 + $0xd0] sm:$0xff]  ;;  %v5471_v23 = vld [vmem:[%s6651_s5 + $0x298] sm:$0xff] }
 0x345   :  { %4378 = vmatmul.msk.bf16.vlgmr.msra.gmra.mxu3 %vm104_vm2, %v1595_v18  ;;  %4403 = vmatmul.msk.bf16.vlgmr.msrb.gmra.mxu0 %vm104_vm2, %v1649_v19  ;;  %v1986_v18 = vrot.slane %v4485_v40, 2  ;;  %v1984_v19 = vsel %vm163_vm1, %v1982_v15, %v1983_v16  ;;  %v5448_v40 = vld [vmem:[%s6649_s3 + $0x100] sm:$0xff]  ;;  %v5457_v15 = vld [vmem:[%s6651_s5 + $0x228] sm:$0xff] }
 0x346   :  { %4428 = vmatmul.msk.bf16.vlgmr.msrb.gmra.mxu1 %vm104_vm2, %v1703_v20  ;;  %2150 = vmatpush.bf16.msrb.mxu0 %v5443_v25  ;;  %v5453_v16 = vld [vmem:[%s6651_s5 + $0x208] sm:$0xff]  ;;  %v5479_v25 = vld [vmem:[%s6651_s5 + $0x2d8] sm:$0xff] }
 0x347   :  { %v1987_v20 = vsel %vm163_vm1, %v1985_v17, %v1986_v18  ;;  %2203 = vmatpush.bf16.msrb.mxu1 %v5451_v26  ;;  %v5461_v17 = vld [vmem:[%s6651_s5 + $0x248] sm:$0xff]  ;;  %v5483_v26 = vld [vmem:[%s6651_s5 + $0x2f8] sm:$0xff] }
 0x348   :  { %2032 = vmatpush.bf16.msra.mxu2 %v5438_v33  ;;  %v1990_v21 = vpack.c.bf16 %v1987_v20, %v1984_v19  ;;  %v5441_v33 = vld [vmem:[%s6649_s3 + $0xc8] sm:$0xff]  ;;  %v5456_v19 = vld [vmem:[%s6651_s5 + $0x220] sm:$0xff] }
 0x349   :  { %v5465_v18 = vld [vmem:[%s6651_s5 + $0x268] sm:$0xff]  ;;  %v5452_v20 = vld [vmem:[%s6651_s5 + $0x200] sm:$0xff] }
 0x34a   :  { %2151 = vmatpush.bf16.msrb.mxu0 %v5442_v29  ;;  %v5478_v29 = vld [vmem:[%s6651_s5 + $0x2d0] sm:$0xff] }
 0x34b   :  { %2204 = vmatpush.bf16.msrb.mxu1 %v5450_v30 }
 0x34c   :  { %2033 = vmatpush.bf16.msra.mxu2 %v5437_v47 }
 0x34e   :  { %2152 = vmatpush.bf16.msrb.mxu0 %v5441_v33 }
 0x350   :  { %2034 = vmatpush.bf16.msra.mxu2 %v5436_v55 }
 0x352   :  { %2153 = vmatpush.bf16.msrb.mxu0 %v5440_v38  ;;  %v5477_v38 = vld [vmem:[%s6651_s5 + $0x2c8] sm:$0xff] }
 0x355   :  { %4518 = vmatmul.msk.bf16.vlgmr.msra.gmra.mxu0 %vm104_vm2, %v1890_v54 }
 0x356   :  { %4535 = vmatmul.msk.bf16.vlgmr.msra.gmra.mxu1 %vm104_vm2, %v1868_v57 }
 0x3b2   :  { %v1470_v24 = vpop.f32.mrf.mxu0 }
 0x3b3   :  { %v1524_v28 = vpop.f32.mrf.mxu1 }
 0x3b6   :  { %v1374_v32 = vpop.f32.mrf.mxu2 }
 0x3b8   :  { %v1417_v35 = vpop.f32.mrf.mxu3 }
 0x3b9   :  { %v1418_v51 = vadd.f32 %v1417_v35, %v1374_v32  ;;  %v5445_v32 = vld [vmem:[%s6649_s3 + $0xe8] sm:$0xff] }
 0x3ba   :  { %v1472_v44 = vpop.f32.mrf.mxu0  ;;  %v5449_v35 = vld [vmem:[%s6649_s3 + $0x108] sm:$0xff] }
 0x3bb   :  { %v1526_v46 = vpop.f32.mrf.mxu1  ;;  %v1474_v58 = vadd.f32 %v1470_v24, %v1418_v51  ;;  %v5447_v24 = vld [vmem:[%s6649_s3 + $0xf8] sm:$0xff]  ;;  %2205 = vmatpush.bf16.msrb.mxu1 %v5449_v35 }
 0x3bc   :  { %2109 = vmatpush.bf16.msra.mxu3 %v5447_v24  ;;  %v5475_v24 = vld [vmem:[%s6651_s5 + $0x2b8] sm:$0xff] }
 0x3bd   :  { %v1528_v61 = vadd.f32 %v1524_v28, %v1474_v58  ;;  %v5446_v28 = vld [vmem:[%s6649_s3 + $0xf0] sm:$0xff] }
 0x3be   :  { %v1376_v53 = vpop.f32.mrf.mxu2 }
 0x3bf   :  { %2206 = vmatpush.bf16.msrb.mxu1 %v5448_v40  ;;  %v5468_v40 = vld [vmem:[%s6651_s5 + $0x280] sm:$0xff] }
 0x3c0   :  { %v1419_v56 = vpop.f32.mrf.mxu3  ;;  %2110 = vmatpush.bf16.msra.mxu3 %v5446_v28  ;;  %v5474_v28 = vld [vmem:[%s6651_s5 + $0x2b0] sm:$0xff] }
 0x3c2   :  { %v1686_v59 = vpop.f32.mrf.mxu0 }
 0x3c3   :  { %v1740_v60 = vpop.f32.mrf.mxu1 }
 0x3c4   :  { %2111 = vmatpush.bf16.msra.mxu3 %v5445_v32  ;;  %v5469_v32 = vld [vmem:[%s6651_s5 + $0x288] sm:$0xff] }
 0x3c6   :  { %v1578_v63 = vpop.f32.mrf.mxu2 }
 0x3c7   :  { %v1582_v0 = vadd.f32 %v1578_v63, %v1528_v61 }
 0x3c8   :  { %v1632_v3 = vpop.f32.mrf.mxu3  ;;  %2112 = vmatpush.bf16.msra.mxu3 %v5444_v37  ;;  %v5473_v37 = vld [vmem:[%s6651_s5 + $0x2a8] sm:$0xff] }
 0x3c9   :  { %v1636_v4 = vadd.f32 %v1632_v3, %v1582_v0  ;;  %v5570_v3 = vld [vmem:[%s6656_s10 + $0x1] ss:$0 sm:$0xff] }
 0x3ca   :  { %v1688_v5 = vpop.f32.mrf.mxu0 }
 0x3cb   :  { %v1690_v6 = vadd.f32 %v1686_v59, %v1636_v4  ;;  %v1742_v8 = vpop.f32.mrf.mxu1 }
 0x3cc   :  { %v5455_v8 = vld [vmem:[%s6651_s5 + $0x218] sm:$0xff] }
 0x3cd   :  { %v1744_v9 = vadd.f32 %v1740_v60, %v1690_v6 }
 0x3ce   :  { %v1580_v10 = vpop.f32.mrf.mxu2 }
 0x3cf   :  { %v1750_v11 = vadd.f32 %v5567_v7, %v1744_v9  ;;  %v5459_v7 = vld [vmem:[%s6651_s5 + $0x238] sm:$0xff] }
 0x3d0   :  { %v1634_v12 = vpop.f32.mrf.mxu3  ;;  %v5463_v9 = vld [vmem:[%s6651_s5 + $0x258] sm:$0xff] }
 0x3d1   :  { %v1751_v13 = vmax.f32 %v1750_v11, 0.0  ;;  %v5467_v10 = vld [vmem:[%s6651_s5 + $0x278] sm:$0xff]  ;;  %2378 = vmatpush.bf16.msra.mxu0 %v5463_v9  ;;  %v5458_v11 = vld [vmem:[%s6651_s5 + $0x230] sm:$0xff] }
 0x3d2   :  { %v1936_v42 = vpop.f32.mrf.mxu0  ;;  %2432 = vmatpush.bf16.msra.mxu1 %v5467_v10  ;;  %v5454_v12 = vld [vmem:[%s6651_s5 + $0x210] sm:$0xff] }
 0x3d3   :  { %v1752_v14 = vpack.c.bf16 %v1751_v13, %v1751_v13  ;;  %v1977_v43 = vpop.f32.mrf.mxu1  ;;  %v5462_v13 = vld [vmem:[%s6651_s5 + $0x250] sm:$0xff] }
 0x3d4   :  { %v1978_v44 = vadd.f32 %v1977_v43, %v1936_v42  ;;  %v5472_v43 = vld [vmem:[%s6651_s5 + $0x2a0] sm:$0xff] }
 0x3d5   :  { %4455 = vmatmul.msk.bf16.vlgmr.msrb.gmra.mxu2 %vm104_vm2, %v1752_v14  ;;  %v5466_v14 = vld [vmem:[%s6651_s5 + $0x270] sm:$0xff]  ;;  %2379 = vmatpush.bf16.msra.mxu0 %v5462_v13 }
 0x3d6   :  { %2282 = vmatpush.bf16.msrb.mxu2 %v5459_v7  ;;  %2433 = vmatpush.bf16.msra.mxu1 %v5466_v14 }
 0x3d9   :  { %2380 = vmatpush.bf16.msra.mxu0 %v5461_v17 }
 0x3da   :  { %v1938_v49 = vpop.f32.mrf.mxu0  ;;  %2283 = vmatpush.bf16.msrb.mxu2 %v5458_v11  ;;  %2434 = vmatpush.bf16.msra.mxu1 %v5465_v18 }
 0x3db   :  { %v1979_v50 = vpop.f32.mrf.mxu1 }
 0x3dc   :  { %v1980_v52 = vadd.f32 %v1979_v50, %v1938_v49 }
 0x3de   :  { %2284 = vmatpush.bf16.msrb.mxu2 %v5457_v15  ;;  %2435 = vmatpush.bf16.msra.mxu1 %v5464_v22 }
 0x3e2   :  { %2285 = vmatpush.bf16.msrb.mxu2 %v5456_v19 }
 0x3e5   :  { %4560 = vmatmul.msk.bf16.vlgmr.msra.gmra.mxu2 %vm104_vm2, %v1990_v21  ;;  %v5460_v21 = vld [vmem:[%s6651_s5 + $0x240] sm:$0xff] }
 0x3e6   :  { %2381 = vmatpush.bf16.msra.mxu0 %v5460_v21  ;;  %2486 = vmatpush.bf16.msra.mxu2 %v5471_v23 }
 0x458   :  { %v1803_v31 = vpop.f32.mrf.mxu2 }
 0x459   :  { %v1804_v34 = vadd.f32 %v5568_v27, %v1803_v31  ;;  %v5470_v27 = vld [vmem:[%s6651_s5 + $0x290] sm:$0xff] }
 0x45a   :  { %2487 = vmatpush.bf16.msra.mxu2 %v5470_v27  ;;  %v5482_v31 = vld [vmem:[%s6651_s5 + $0x2f0] sm:$0xff]  ;;  %v5485_v27 = vld [vmem:[%s6654_s7 + $0x48] sm:$0xff] }
 0x45b   :  { %v1807_v36 = vmax.f32 %v1804_v34, 0.0 }
 0x45d   :  { %v1808_v39 = vpack.c.bf16 %v1807_v36, %v1807_v36  ;;  %v5571_v36 = vld [vmem:[%s6650_s4 + $0x2] ss:$0 sm:$0xff] }
 0x45e   :  { %2488 = vmatpush.bf16.msra.mxu2 %v5469_v32 }
 0x45f   :  { %4481 = vmatmul.msk.bf16.vlgmr.msrb.gmra.mxu3 %vm104_vm2, %v1808_v39  ;;  %v5481_v39 = vld [vmem:[%s6651_s5 + $0x2e8] sm:$0xff] }
 0x460   :  { %v1805_v41 = vpop.f32.mrf.mxu2  ;;  %2325 = vmatpush.bf16.msrb.mxu3 %v5455_v8 }
 0x462   :  { %2489 = vmatpush.bf16.msra.mxu2 %v5468_v40  ;;  %v4891_v40 = vld [vmem:[%s6647_s0 + $0x60] sm:$0xff] }
 0x464   :  { %2326 = vmatpush.bf16.msrb.mxu3 %v5454_v12 }
 0x468   :  { %v2036_v46 = vpop.f32.mrf.mxu2  ;;  %2327 = vmatpush.bf16.msrb.mxu3 %v5453_v16 }
 0x469   :  { %v2041_v47 = vadd.f32 %v2036_v46, %v1978_v44  ;;  %v5476_v44 = vld [vmem:[%s6651_s5 + $0x2c0] sm:$0xff] }
 0x46b   :  { %v2048_v48 = vadd.f32 %v5569_v45, %v2041_v47 }
 0x46c   :  { %2328 = vmatpush.bf16.msrb.mxu3 %v5452_v20 }
 0x46d   :  { %v2050_v51 = vmax.f32 %v2048_v48, 0.0 }
 0x46f   :  { %2052 = vst.msk [vmem:[#allocation2 + $0x8] sm:$0xff] %vm104_vm2, %v2050_v51 }
 0x470   :  { %v2038_v53 = vpop.f32.mrf.mxu2 }
 0x471   :  { %v2042_v54 = vadd.f32 %v2038_v53, %v1980_v52 }
 0x473   :  { %v2049_v55 = vadd.f32 %v5569_v45, %v2042_v54  ;;  %v5480_v45 = vld [vmem:[%s6651_s5 + $0x2e0] sm:$0xff] }
 0x475   :  { %v2051_v56 = vmax.f32 %v2049_v55, 0.0 }
 0x476   :  { %v2066_v57 = vld [vmem:[#allocation2 + $0x8] sm:$0xff] }
 0x477   :  { %2053 = vst.msk [vmem:[#allocation2 + $0x20] sm:$0xff] %vm104_vm2, %v2051_v56  ;;  %v2054_v58 = vld [vmem:[#allocation2 + $0x7] sm:$0xff] }
 0x478   :  { %v2160_v59 = vld [vmem:[#allocation2 + $0x9] sm:$0xff] }
 0x47e   :  { %v2067_v60 = vld [vmem:[#allocation2 + $0x20] sm:$0xff] }
 0x47f   :  { %v2055_v61 = vld [vmem:[#allocation2 + $0x1f] sm:$0xff]  ;;  %v2068_v63 = vpack.c.bf16 %v2067_v60, %v2066_v57 }
 0x480   :  { %v2161_v62 = vld [vmem:[#allocation2 + $0x21] sm:$0xff]  ;;  %v2056_v0 = vpack.c.bf16 %v2055_v61, %v2054_v58 }
 0x481   :  { %v2162_v2 = vpack.c.bf16 %v2161_v62, %v2160_v59  ;;  %4594 = vmatmul.msk.bf16.vlgmr.msra.gmra.mxu3 %vm104_vm2, %v2068_v63 }
 0x482   :  { %4611 = vmatmul.msk.bf16.vlgmr.msrb.gmra.mxu0 %vm104_vm2, %v2056_v0  ;;  %2540 = vmatpush.bf16.msra.mxu3 %v5475_v24 }
 0x483   :  { %4636 = vmatmul.msk.bf16.vlgmr.msrb.gmra.mxu1 %vm104_vm2, %v2162_v2  ;;  %2594 = vmatpush.bf16.msrb.mxu0 %v5479_v25  ;;  %v5487_v25 = vld [vmem:[%s6654_s7 + $0x58] sm:$0xff] }
 0x484   :  { %2648 = vmatpush.bf16.msrb.mxu1 %v5483_v26  ;;  %v5486_v26 = vld [vmem:[%s6654_s7 + $0x50] sm:$0xff] }
 0x486   :  { %2541 = vmatpush.bf16.msra.mxu3 %v5474_v28 }
 0x487   :  { %2595 = vmatpush.bf16.msrb.mxu0 %v5478_v29  ;;  %v5484_v29 = vld [vmem:[%s6654_s7 + $0x40] sm:$0xff] }
 0x488   :  { %2649 = vmatpush.bf16.msrb.mxu1 %v5482_v31  ;;  %v5495_v31 = vld [vmem:[%s6646_s1 + $0x138] sm:$0xff] }
 0x48a   :  { %2542 = vmatpush.bf16.msra.mxu3 %v5473_v37  ;;  %v5502_v37 = vld [vmem:[%s6646_s1 + $0x170] sm:$0xff] }
 0x48b   :  { %2596 = vmatpush.bf16.msrb.mxu0 %v5477_v38  ;;  %v5497_v38 = vld [vmem:[%s6646_s1 + $0x148] sm:$0xff] }
 0x48c   :  { %2650 = vmatpush.bf16.msrb.mxu1 %v5481_v39 }
 0x48e   :  { %2543 = vmatpush.bf16.msra.mxu3 %v5472_v43  ;;  %v5493_v43 = vld [vmem:[%s6646_s1 + $0x128] sm:$0xff] }
 0x48f   :  { %2597 = vmatpush.bf16.msrb.mxu0 %v5476_v44  ;;  %v4894_v44 = vld [vmem:[%s6647_s0 + $0x78] sm:$0x3] }
 0x490   :  { %2651 = vmatpush.bf16.msrb.mxu1 %v5480_v45  ;;  %v2795_v45 = vrot.slane %v4891_v40, 1 }
 0x4e2   :  { %v1859_v4 = vpop.f32.mrf.mxu3 }
 0x4e3   :  { %v1860_v5 = vadd.f32 %v5570_v3, %v1859_v4 }
 0x4e5   :  { %3690 = vrot.lane.b32.xlu0 %v1860_v5, %s5581_s23 }
 0x4ea   :  { %v1861_v6 = vpop.f32.mrf.mxu3 }
 0x4ff   :  { %v2155_v30 = vpop.f32.mrf.mxu0 }
 0x500   :  { %v2208_v33 = vpop.f32.mrf.mxu1 }
 0x504   :  { %v2114_v34 = vpop.f32.mrf.mxu3 }
 0x505   :  { %v2156_v35 = vadd.f32 %v2155_v30, %v2114_v34  ;;  %v5499_v30 = vld [vmem:[%s6646_s1 + $0x158] sm:$0xff]  ;;  %v5498_v34 = vld [vmem:[%s6646_s1 + $0x150] sm:$0xff] }
 0x507   :  { %v2213_v41 = vadd.f32 %v2208_v33, %v2156_v35  ;;  %v2157_v47 = vpop.f32.mrf.mxu0  ;;  %v5503_v33 = vld [vmem:[%s6646_s1 + $0x178] sm:$0xff]  ;;  %v5494_v35 = vld [vmem:[%s6646_s1 + $0x130] sm:$0xff] }
 0x508   :  { %v2210_v50 = vpop.f32.mrf.mxu1 }
 0x509   :  { %v2220_v42 = vadd.f32 %v5571_v36, %v2213_v41  ;;  %v4892_v41 = vld [vmem:[%s6647_s0 + $0x68] sm:$0x3] }
 0x50b   :  { %v2222_v46 = vmax.f32 %v2220_v42, 0.0  ;;  %v4893_v42 = vld [vmem:[%s6647_s0 + $0x70] sm:$0xff]  ;;  %s5582_s0 = smov 4  }
 0x50c   :  { %v2116_v48 = vpop.f32.mrf.mxu3 }
 0x50d   :  { %v2158_v49 = vadd.f32 %v2157_v47, %v2116_v48  ;;  %v2224_v51 = vpack.c.bf16 %v2222_v46, %v2222_v46  ;;  %v2796_v46 = vrot.slane %v4892_v41, 1  ;;  %v2798_v47 = vrot.slane %v4893_v42, 1 }
 0x50f   :  { %v2214_v52 = vadd.f32 %v2210_v50, %v2158_v49  ;;  %v2246_v54 = vunpack.c.l.b16 %v2224_v51  ;;  %v2799_v49 = vrot.slane %v4894_v44, 1  ;;  %v5501_v51 = vld [vmem:[%s6646_s1 + $0x168] sm:$0xff] }
 0x511   :  { %v2221_v53 = vadd.f32 %v5571_v36, %v2214_v52  ;;  %v2248_v58 = vrot.slane %v2246_v54, 1  ;;  %v2343_v59 = vrot.slane %v2246_v54, 2  ;;  %v2397_v60 = vrot.slane %v2246_v54, 3  ;;  %v5496_v52 = vld [vmem:[%s6646_s1 + $0x140] sm:$0xff] }
 0x512   :  { %v2451_v10 = vrot.slane %v2246_v54, 4  ;;  %v2505_v15 = vrot.slane %v2246_v54, 5  ;;  %v2559_v16 = vrot.slane %v2246_v54, 6  ;;  %v2613_v17 = vrot.slane %v2246_v54, 7 }
 0x513   :  { %v2223_v55 = vmax.f32 %v2221_v53, 0.0  ;;  %v2797_v53 = vsel %vm61_vm0, %v2795_v45, %v2796_v46 }
 0x515   :  { %v2225_v56 = vpack.c.bf16 %v2223_v55, %v2223_v55 }
 0x517   :  { %v2247_v57 = vunpack.c.l.b16 %v2225_v56  ;;  %v5492_v56 = vld [vmem:[%s6646_s1 + $0x120] sm:$0xff] }
 0x519   :  { %v2249_v61 = vsel %vm427_vm4, %v2247_v57, %v2248_v58  ;;  %v2291_v62 = vrot.slane %v2247_v57, 7  ;;  %v2344_v63 = vrot.slane %v2247_v57, 1  ;;  %v2398_v0 = vrot.slane %v2247_v57, 2 }
 0x51a   :  { %v2250_v2 = vpack.c.b16 %v2249_v61, %v2249_v61  ;;  %v2452_v9 = vrot.slane %v2247_v57, 3  ;;  %v2506_v11 = vrot.slane %v2247_v57, 4  ;;  %v2560_v12 = vrot.slane %v2247_v57, 5 }
 0x51b   :  { %v2292_v3 = vsel %vm427_vm4, %v2291_v62, %v2246_v54  ;;  %v2345_v4 = vsel %vm427_vm4, %v2344_v63, %v2343_v59  ;;  %v2399_v5 = vsel %vm427_vm4, %v2398_v0, %v2397_v60  ;;  %v2614_v13 = vrot.slane %v2247_v57, 6  ;;  %v5500_v59 = vld [vmem:[%s6646_s1 + $0x160] sm:$0xff] }
 0x51c   :  { %4670 = vmatmul.msk.bf16.vlgmr.msrb.gmra.mxu2 %vm104_vm2, %v2250_v2  ;;  %v2293_v6 = vpack.c.b16 %v2292_v3, %v2292_v3  ;;  %v2346_v7 = vpack.c.b16 %v2345_v4, %v2345_v4  ;;  %v2400_v8 = vpack.c.b16 %v2399_v5, %v2399_v5  ;;  %v2453_v14 = vsel %vm427_vm4, %v2452_v9, %v2451_v10  ;;  %v5491_v3 = vld [vmem:[%s6655_s9 + $0x58] sm:$0xff] }
 0x51d   :  { %v2507_v18 = vsel %vm427_vm4, %v2506_v11, %v2505_v15  ;;  %v2561_v19 = vsel %vm427_vm4, %v2560_v12, %v2559_v16  ;;  %v2454_v20 = vpack.c.b16 %v2453_v14, %v2453_v14  ;;  %v2615_v21 = vsel %vm427_vm4, %v2614_v13, %v2613_v17  ;;  %2711 = vmatpush.bf16.msrb.mxu2 %v5487_v25  ;;  %v5572_v11 = vld [vmem:[%s6652_s6 + $0x2] ss:$0 sm:$0xff] }
 0x51e   :  { %4687 = vmatmul.msk.bf16.vlgmr.msrb.gmra.mxu3 %vm104_vm2, %v2293_v6  ;;  %4712 = vmatmul.msk.bf16.vlgmr.msra.gmra.mxu0 %vm104_vm2, %v2346_v7  ;;  %v2508_v22 = vpack.c.b16 %v2507_v18, %v2507_v18  ;;  %v2562_v23 = vpack.c.b16 %v2561_v19, %v2561_v19  ;;  %v2616_v24 = vpack.c.b16 %v2615_v21, %v2615_v21  ;;  %v5490_v6 = vld [vmem:[%s6655_s9 + $0x50] sm:$0xff]  ;;  %v2895_v19 = vrot.slane %v4891_v40, 2 }
 0x51f   :  { %4737 = vmatmul.msk.bf16.vlgmr.msra.gmra.mxu1 %vm104_vm2, %v2400_v8  ;;  %2844 = vmatpush.bf16.msra.mxu0 %v5499_v30  ;;  %v2800_v54 = vsel %vm61_vm0, %v2798_v47, %v2799_v49  ;;  %v2781_v61 = vpack.c.bf16 %v4893_v42, %v4891_v40  ;;  %v2898_v21 = vrot.slane %v4893_v42, 2  ;;  %v5515_v30 = vld [vmem:[%s6649_s3 + $0x178] sm:$0xff]  ;;  %v5504_v42 = vld [vmem:[%s6649_s3 + $0x120] sm:$0xff] }
 0x520   :  { %2885 = vmatpush.bf16.msra.mxu1 %v5495_v31  ;;  %v2803_v58 = vpack.c.bf16 %v2800_v54, %v2797_v53  ;;  %2767 = vmatpush.bf16.msrb.mxu3 %v5491_v3  ;;  %v5573_v31 = vld [vmem:[%s6653_s8 + $0x2] ss:$0 sm:$0xff]  ;;  %v5574_v49 = vld [vmem:[%s6648_s2 + $0x3] ss:$0 sm:$0xff] }
 0x521   :  { %2712 = vmatpush.bf16.msrb.mxu2 %v5486_v26  ;;  %v5489_v26 = vld [vmem:[%s6655_s9 + $0x48] sm:$0xff] }
 0x523   :  { %2845 = vmatpush.bf16.msra.mxu0 %v5498_v34  ;;  %v5514_v34 = vld [vmem:[%s6649_s3 + $0x170] sm:$0xff] }
 0x524   :  { %2886 = vmatpush.bf16.msra.mxu1 %v5494_v35  ;;  %2768 = vmatpush.bf16.msrb.mxu3 %v5490_v6 }
 0x525   :  { %2713 = vmatpush.bf16.msrb.mxu2 %v5485_v27  ;;  %v5488_v27 = vld [vmem:[%s6655_s9 + $0x40] sm:$0xff] }
 0x527   :  { %2846 = vmatpush.bf16.msra.mxu0 %v5497_v38 }
 0x528   :  { %2887 = vmatpush.bf16.msra.mxu1 %v5493_v43  ;;  %2769 = vmatpush.bf16.msrb.mxu3 %v5489_v26  ;;  %v5528_v26 = vld [vmem:[%s6651_s5 + $0x360] sm:$0xff] }
 0x529   :  { %2714 = vmatpush.bf16.msrb.mxu2 %v5484_v29  ;;  %v5507_v29 = vld [vmem:[%s6649_s3 + $0x138] sm:$0xff] }
 0x52b   :  { %2847 = vmatpush.bf16.msra.mxu0 %v5496_v52 }
 0x52c   :  { %4762 = vmatmul.msk.bf16.vlgmr.msra.gmra.mxu2 %vm104_vm2, %v2454_v20  ;;  %2888 = vmatpush.bf16.msra.mxu1 %v5492_v56  ;;  %v2896_v20 = vrot.slane %v4892_v41, 2  ;;  %v5508_v41 = vld [vmem:[%s6649_s3 + $0x140] sm:$0xff] }
 0x52d   :  { %2944 = vmatpush.bf16.msra.mxu2 %v5503_v33  ;;  %2770 = vmatpush.bf16.msrb.mxu3 %v5488_v27  ;;  %v5506_v33 = vld [vmem:[%s6649_s3 + $0x130] sm:$0xff]  ;;  %v5535_v27 = vld [vmem:[%s6651_s5 + $0x398] sm:$0xff] }
 0x52e   :  { %4787 = vmatmul.msk.bf16.vlgmr.msra.gmra.mxu3 %vm104_vm2, %v2508_v22  ;;  %4812 = vmatmul.msk.bf16.vlgmr.msrb.gmra.mxu0 %vm104_vm2, %v2562_v23  ;;  %v2899_v22 = vrot.slane %v4894_v44, 2  ;;  %v2897_v23 = vsel %vm163_vm1, %v2895_v19, %v2896_v20  ;;  %v5512_v44 = vld [vmem:[%s6649_s3 + $0x160] sm:$0xff]  ;;  %v5521_v19 = vld [vmem:[%s6651_s5 + $0x328] sm:$0xff] }
 0x52f   :  { %4837 = vmatmul.msk.bf16.vlgmr.msrb.gmra.mxu1 %vm104_vm2, %v2616_v24  ;;  %3063 = vmatpush.bf16.msrb.mxu0 %v5507_v29  ;;  %v5517_v20 = vld [vmem:[%s6651_s5 + $0x308] sm:$0xff]  ;;  %v5543_v29 = vld [vmem:[%s6651_s5 + $0x3d8] sm:$0xff] }
 0x530   :  { %v2900_v24 = vsel %vm163_vm1, %v2898_v21, %v2899_v22  ;;  %3116 = vmatpush.bf16.msrb.mxu1 %v5515_v30  ;;  %v5525_v21 = vld [vmem:[%s6651_s5 + $0x348] sm:$0xff]  ;;  %v5547_v30 = vld [vmem:[%s6651_s5 + $0x3f8] sm:$0xff] }
 0x531   :  { %2945 = vmatpush.bf16.msra.mxu2 %v5502_v37  ;;  %v2903_v25 = vpack.c.bf16 %v2900_v24, %v2897_v23  ;;  %v5505_v37 = vld [vmem:[%s6649_s3 + $0x128] sm:$0xff]  ;;  %v5520_v23 = vld [vmem:[%s6651_s5 + $0x320] sm:$0xff] }
 0x532   :  { %v5529_v22 = vld [vmem:[%s6651_s5 + $0x368] sm:$0xff]  ;;  %v5516_v24 = vld [vmem:[%s6651_s5 + $0x300] sm:$0xff] }
 0x533   :  { %3064 = vmatpush.bf16.msrb.mxu0 %v5506_v33  ;;  %v5542_v33 = vld [vmem:[%s6651_s5 + $0x3d0] sm:$0xff] }
 0x534   :  { %3117 = vmatpush.bf16.msrb.mxu1 %v5514_v34 }
 0x535   :  { %2946 = vmatpush.bf16.msra.mxu2 %v5501_v51 }
 0x537   :  { %3065 = vmatpush.bf16.msrb.mxu0 %v5505_v37 }
 0x539   :  { %2947 = vmatpush.bf16.msra.mxu2 %v5500_v59 }
 0x53b   :  { %3066 = vmatpush.bf16.msrb.mxu0 %v5504_v42  ;;  %v5541_v42 = vld [vmem:[%s6651_s5 + $0x3c8] sm:$0xff] }
 0x53e   :  { %4927 = vmatmul.msk.bf16.vlgmr.msra.gmra.mxu0 %vm104_vm2, %v2803_v58 }
 0x53f   :  { %4944 = vmatmul.msk.bf16.vlgmr.msra.gmra.mxu1 %vm104_vm2, %v2781_v61 }
 0x59b   :  { %v2383_v28 = vpop.f32.mrf.mxu0 }
 0x59c   :  { %v2437_v32 = vpop.f32.mrf.mxu1 }
 0x59f   :  { %v2287_v36 = vpop.f32.mrf.mxu2 }
 0x5a1   :  { %v2330_v39 = vpop.f32.mrf.mxu3 }
 0x5a2   :  { %v2331_v55 = vadd.f32 %v2330_v39, %v2287_v36  ;;  %v5509_v36 = vld [vmem:[%s6649_s3 + $0x148] sm:$0xff] }
 0x5a3   :  { %v2385_v48 = vpop.f32.mrf.mxu0  ;;  %v5513_v39 = vld [vmem:[%s6649_s3 + $0x168] sm:$0xff] }
 0x5a4   :  { %v2439_v50 = vpop.f32.mrf.mxu1  ;;  %v2387_v62 = vadd.f32 %v2383_v28, %v2331_v55  ;;  %v5511_v28 = vld [vmem:[%s6649_s3 + $0x158] sm:$0xff]  ;;  %3118 = vmatpush.bf16.msrb.mxu1 %v5513_v39 }
 0x5a5   :  { %3022 = vmatpush.bf16.msra.mxu3 %v5511_v28  ;;  %v5539_v28 = vld [vmem:[%s6651_s5 + $0x3b8] sm:$0xff] }
 0x5a6   :  { %v2441_v2 = vadd.f32 %v2437_v32, %v2387_v62  ;;  %v5510_v32 = vld [vmem:[%s6649_s3 + $0x150] sm:$0xff] }
 0x5a7   :  { %v2289_v57 = vpop.f32.mrf.mxu2 }
 0x5a8   :  { %3119 = vmatpush.bf16.msrb.mxu1 %v5512_v44  ;;  %v5532_v44 = vld [vmem:[%s6651_s5 + $0x380] sm:$0xff] }
 0x5a9   :  { %v2332_v60 = vpop.f32.mrf.mxu3  ;;  %3023 = vmatpush.bf16.msra.mxu3 %v5510_v32  ;;  %v5538_v32 = vld [vmem:[%s6651_s5 + $0x3b0] sm:$0xff] }
 0x5ab   :  { %v2599_v63 = vpop.f32.mrf.mxu0 }
 0x5ac   :  { %v2653_v0 = vpop.f32.mrf.mxu1 }
 0x5ad   :  { %3024 = vmatpush.bf16.msra.mxu3 %v5509_v36  ;;  %v5533_v36 = vld [vmem:[%s6651_s5 + $0x388] sm:$0xff] }
 0x5af   :  { %v2491_v4 = vpop.f32.mrf.mxu2 }
 0x5b0   :  { %v2495_v5 = vadd.f32 %v2491_v4, %v2441_v2 }
 0x5b1   :  { %v2545_v7 = vpop.f32.mrf.mxu3  ;;  %3025 = vmatpush.bf16.msra.mxu3 %v5508_v41  ;;  %v5537_v41 = vld [vmem:[%s6651_s5 + $0x3a8] sm:$0xff] }
 0x5b2   :  { %v2549_v8 = vadd.f32 %v2545_v7, %v2495_v5  ;;  %v5575_v7 = vld [vmem:[%s6656_s10 + $0x2] ss:$0 sm:$0xff] }
 0x5b3   :  { %v2601_v9 = vpop.f32.mrf.mxu0 }
 0x5b4   :  { %v2603_v10 = vadd.f32 %v2599_v63, %v2549_v8  ;;  %v2655_v12 = vpop.f32.mrf.mxu1 }
 0x5b5   :  { %v5519_v12 = vld [vmem:[%s6651_s5 + $0x318] sm:$0xff] }
 0x5b6   :  { %v2657_v13 = vadd.f32 %v2653_v0, %v2603_v10 }
 0x5b7   :  { %v2493_v14 = vpop.f32.mrf.mxu2 }
 0x5b8   :  { %v2663_v15 = vadd.f32 %v5572_v11, %v2657_v13  ;;  %v5523_v11 = vld [vmem:[%s6651_s5 + $0x338] sm:$0xff] }
 0x5b9   :  { %v2547_v16 = vpop.f32.mrf.mxu3  ;;  %v5527_v13 = vld [vmem:[%s6651_s5 + $0x358] sm:$0xff] }
 0x5ba   :  { %v2664_v17 = vmax.f32 %v2663_v15, 0.0  ;;  %v5531_v14 = vld [vmem:[%s6651_s5 + $0x378] sm:$0xff]  ;;  %3291 = vmatpush.bf16.msra.mxu0 %v5527_v13  ;;  %v5522_v15 = vld [vmem:[%s6651_s5 + $0x330] sm:$0xff] }
 0x5bb   :  { %v2849_v46 = vpop.f32.mrf.mxu0  ;;  %3345 = vmatpush.bf16.msra.mxu1 %v5531_v14  ;;  %v5518_v16 = vld [vmem:[%s6651_s5 + $0x310] sm:$0xff] }
 0x5bc   :  { %v2665_v18 = vpack.c.bf16 %v2664_v17, %v2664_v17  ;;  %v2890_v47 = vpop.f32.mrf.mxu1  ;;  %v5526_v17 = vld [vmem:[%s6651_s5 + $0x350] sm:$0xff] }
 0x5bd   :  { %v2891_v48 = vadd.f32 %v2890_v47, %v2849_v46  ;;  %v5536_v47 = vld [vmem:[%s6651_s5 + $0x3a0] sm:$0xff] }
 0x5be   :  { %4864 = vmatmul.msk.bf16.vlgmr.msrb.gmra.mxu2 %vm104_vm2, %v2665_v18  ;;  %v5530_v18 = vld [vmem:[%s6651_s5 + $0x370] sm:$0xff]  ;;  %3292 = vmatpush.bf16.msra.mxu0 %v5526_v17 }
 0x5bf   :  { %3195 = vmatpush.bf16.msrb.mxu2 %v5523_v11  ;;  %3346 = vmatpush.bf16.msra.mxu1 %v5530_v18 }
 0x5c2   :  { %3293 = vmatpush.bf16.msra.mxu0 %v5525_v21 }
 0x5c3   :  { %v2851_v53 = vpop.f32.mrf.mxu0  ;;  %3196 = vmatpush.bf16.msrb.mxu2 %v5522_v15  ;;  %3347 = vmatpush.bf16.msra.mxu1 %v5529_v22 }
 0x5c4   :  { %v2892_v54 = vpop.f32.mrf.mxu1 }
 0x5c5   :  { %v2893_v56 = vadd.f32 %v2892_v54, %v2851_v53 }
 0x5c7   :  { %3197 = vmatpush.bf16.msrb.mxu2 %v5521_v19  ;;  %3348 = vmatpush.bf16.msra.mxu1 %v5528_v26 }
 0x5cb   :  { %3198 = vmatpush.bf16.msrb.mxu2 %v5520_v23 }
 0x5ce   :  { %4969 = vmatmul.msk.bf16.vlgmr.msra.gmra.mxu2 %vm104_vm2, %v2903_v25  ;;  %v5524_v25 = vld [vmem:[%s6651_s5 + $0x340] sm:$0xff] }
 0x5cf   :  { %3294 = vmatpush.bf16.msra.mxu0 %v5524_v25  ;;  %3399 = vmatpush.bf16.msra.mxu2 %v5535_v27 }
 0x641   :  { %v2716_v35 = vpop.f32.mrf.mxu2 }
 0x642   :  { %v2717_v38 = vadd.f32 %v5573_v31, %v2716_v35  ;;  %v5534_v31 = vld [vmem:[%s6651_s5 + $0x390] sm:$0xff] }
 0x643   :  { %3400 = vmatpush.bf16.msra.mxu2 %v5534_v31  ;;  %v5546_v35 = vld [vmem:[%s6651_s5 + $0x3f0] sm:$0xff]  ;;  %v5549_v31 = vld [vmem:[%s6654_s7 + $0x68] sm:$0xff] }
 0x644   :  { %v2720_v40 = vmax.f32 %v2717_v38, 0.0 }
 0x646   :  { %v2721_v43 = vpack.c.bf16 %v2720_v40, %v2720_v40  ;;  %v5576_v40 = vld [vmem:[%s6650_s4 + $0x3] ss:$0 sm:$0xff] }
 0x647   :  { %3401 = vmatpush.bf16.msra.mxu2 %v5533_v36 }
 0x648   :  { %4890 = vmatmul.msk.bf16.vlgmr.msrb.gmra.mxu3 %vm104_vm2, %v2721_v43  ;;  %v5545_v43 = vld [vmem:[%s6651_s5 + $0x3e8] sm:$0xff] }
 0x649   :  { %v2718_v45 = vpop.f32.mrf.mxu2  ;;  %3238 = vmatpush.bf16.msrb.mxu3 %v5519_v12 }
 0x64b   :  { %3402 = vmatpush.bf16.msra.mxu2 %v5532_v44 }
 0x64d   :  { %3239 = vmatpush.bf16.msrb.mxu3 %v5518_v16 }
 0x651   :  { %v2949_v50 = vpop.f32.mrf.mxu2  ;;  %3240 = vmatpush.bf16.msrb.mxu3 %v5517_v20 }
 0x652   :  { %v2954_v51 = vadd.f32 %v2949_v50, %v2891_v48  ;;  %v5540_v48 = vld [vmem:[%s6651_s5 + $0x3c0] sm:$0xff] }
 0x654   :  { %v2961_v52 = vadd.f32 %v5574_v49, %v2954_v51 }
 0x655   :  { %3241 = vmatpush.bf16.msrb.mxu3 %v5516_v24 }
 0x656   :  { %v2963_v55 = vmax.f32 %v2961_v52, 0.0 }
 0x658   :  { %2965 = vst.msk [vmem:[#allocation2 + $0x8] sm:$0xff] %vm104_vm2, %v2963_v55 }
 0x659   :  { %v2951_v57 = vpop.f32.mrf.mxu2 }
 0x65a   :  { %v2955_v58 = vadd.f32 %v2951_v57, %v2893_v56 }
 0x65c   :  { %v2962_v59 = vadd.f32 %v5574_v49, %v2955_v58  ;;  %v5544_v49 = vld [vmem:[%s6651_s5 + $0x3e0] sm:$0xff] }
 0x65e   :  { %v2964_v60 = vmax.f32 %v2962_v59, 0.0 }
 0x65f   :  { %v2979_v61 = vld [vmem:[#allocation2 + $0x8] sm:$0xff] }
 0x660   :  { %2966 = vst.msk [vmem:[#allocation2 + $0x20] sm:$0xff] %vm104_vm2, %v2964_v60  ;;  %v2967_v62 = vld [vmem:[#allocation2 + $0x7] sm:$0xff] }
 0x661   :  { %v3073_v63 = vld [vmem:[#allocation2 + $0x9] sm:$0xff] }
 0x667   :  { %v2980_v0 = vld [vmem:[#allocation2 + $0x20] sm:$0xff] }
 0x668   :  { %v2968_v2 = vld [vmem:[#allocation2 + $0x1f] sm:$0xff]  ;;  %v2981_v4 = vpack.c.bf16 %v2980_v0, %v2979_v61 }
 0x669   :  { %v3074_v3 = vld [vmem:[#allocation2 + $0x21] sm:$0xff]  ;;  %v2969_v5 = vpack.c.bf16 %v2968_v2, %v2967_v62 }
 0x66a   :  { %v3075_v6 = vpack.c.bf16 %v3074_v3, %v3073_v63  ;;  %5003 = vmatmul.msk.bf16.vlgmr.msra.gmra.mxu3 %vm104_vm2, %v2981_v4 }
 0x66b   :  { %5020 = vmatmul.msk.bf16.vlgmr.msrb.gmra.mxu0 %vm104_vm2, %v2969_v5  ;;  %3453 = vmatpush.bf16.msra.mxu3 %v5539_v28 }
 0x66c   :  { %5045 = vmatmul.msk.bf16.vlgmr.msrb.gmra.mxu1 %vm104_vm2, %v3075_v6  ;;  %3507 = vmatpush.bf16.msrb.mxu0 %v5543_v29  ;;  %v5551_v29 = vld [vmem:[%s6654_s7 + $0x78] sm:$0xff] }
 0x66d   :  { %3561 = vmatpush.bf16.msrb.mxu1 %v5547_v30  ;;  %v5550_v30 = vld [vmem:[%s6654_s7 + $0x70] sm:$0xff] }
 0x66f   :  { %3454 = vmatpush.bf16.msra.mxu3 %v5538_v32 }
 0x670   :  { %3508 = vmatpush.bf16.msrb.mxu0 %v5542_v33  ;;  %v5548_v33 = vld [vmem:[%s6654_s7 + $0x60] sm:$0xff] }
 0x671   :  { %3562 = vmatpush.bf16.msrb.mxu1 %v5546_v35  ;;  %v5555_v35 = vld [vmem:[%s6655_s9 + $0x78] sm:$0xff] }
 0x673   :  { %3455 = vmatpush.bf16.msra.mxu3 %v5537_v41  ;;  %v5553_v41 = vld [vmem:[%s6655_s9 + $0x68] sm:$0xff] }
 0x674   :  { %3509 = vmatpush.bf16.msrb.mxu0 %v5541_v42 }
 0x675   :  { %3563 = vmatpush.bf16.msrb.mxu1 %v5545_v43 }
 0x677   :  { %3456 = vmatpush.bf16.msra.mxu3 %v5536_v47 }
 0x678   :  { %3510 = vmatpush.bf16.msrb.mxu0 %v5540_v48 }
 0x679   :  { %3564 = vmatpush.bf16.msrb.mxu1 %v5544_v49 }
 0x6cb   :  { %v2772_v8 = vpop.f32.mrf.mxu3 }
 0x6cc   :  { %v2773_v9 = vadd.f32 %v5575_v7, %v2772_v8 }
 0x6ce   :  { %3694 = vrot.lane.b32.xlu0 %v2773_v9, %s5582_s0 }
 0x6d3   :  { %v2774_v10 = vpop.f32.mrf.mxu3 }
 0x6e8   :  { %v3068_v34 = vpop.f32.mrf.mxu0 }
 0x6e9   :  { %v3121_v37 = vpop.f32.mrf.mxu1 }
 0x6ed   :  { %v3027_v38 = vpop.f32.mrf.mxu3 }
 0x6ee   :  { %v3069_v39 = vadd.f32 %v3068_v34, %v3027_v38 }
 0x6f0   :  { %v3126_v45 = vadd.f32 %v3121_v37, %v3069_v39  ;;  %v3070_v51 = vpop.f32.mrf.mxu0  ;;  %v5554_v37 = vld [vmem:[%s6655_s9 + $0x70] sm:$0xff] }
 0x6f1   :  { %v3123_v54 = vpop.f32.mrf.mxu1 }
 0x6f2   :  { %v3133_v46 = vadd.f32 %v5576_v40, %v3126_v45 }
 0x6f4   :  { %v3135_v50 = vmax.f32 %v3133_v46, 0.0 }
 0x6f5   :  { %v3029_v52 = vpop.f32.mrf.mxu3 }
 0x6f6   :  { %v3071_v53 = vadd.f32 %v3070_v51, %v3029_v52  ;;  %v3137_v55 = vpack.c.bf16 %v3135_v50, %v3135_v50 }
 0x6f8   :  { %v3127_v56 = vadd.f32 %v3123_v54, %v3071_v53  ;;  %v3159_v58 = vunpack.c.l.b16 %v3137_v55  ;;  %v5577_v55 = vld [vmem:[%s6652_s6 + $0x3] ss:$0 sm:$0xff] }
 0x6fa   :  { %v3134_v57 = vadd.f32 %v5576_v40, %v3127_v56  ;;  %v3161_v62 = vrot.slane %v3159_v58, 1  ;;  %v3256_v63 = vrot.slane %v3159_v58, 2  ;;  %v3310_v0 = vrot.slane %v3159_v58, 3 }
 0x6fb   :  { %v3364_v14 = vrot.slane %v3159_v58, 4  ;;  %v3418_v19 = vrot.slane %v3159_v58, 5  ;;  %v3472_v20 = vrot.slane %v3159_v58, 6  ;;  %v3526_v21 = vrot.slane %v3159_v58, 7 }
 0x6fc   :  { %v3136_v59 = vmax.f32 %v3134_v57, 0.0 }
 0x6fe   :  { %v3138_v60 = vpack.c.bf16 %v3136_v59, %v3136_v59 }
 0x700   :  { %v3160_v61 = vunpack.c.l.b16 %v3138_v60 }
 0x702   :  { %v3162_v2 = vsel %vm427_vm4, %v3160_v61, %v3161_v62  ;;  %v3204_v3 = vrot.slane %v3160_v61, 7  ;;  %v3257_v4 = vrot.slane %v3160_v61, 1  ;;  %v3311_v5 = vrot.slane %v3160_v61, 2 }
 0x703   :  { %v3163_v6 = vpack.c.b16 %v3162_v2, %v3162_v2  ;;  %v3365_v13 = vrot.slane %v3160_v61, 3  ;;  %v3419_v15 = vrot.slane %v3160_v61, 4  ;;  %v3473_v16 = vrot.slane %v3160_v61, 5 }
 0x704   :  { %v3205_v7 = vsel %vm427_vm4, %v3204_v3, %v3159_v58  ;;  %v3258_v8 = vsel %vm427_vm4, %v3257_v4, %v3256_v63  ;;  %v3312_v9 = vsel %vm427_vm4, %v3311_v5, %v3310_v0  ;;  %v3527_v17 = vrot.slane %v3160_v61, 6  ;;  %v5552_v63 = vld [vmem:[%s6655_s9 + $0x60] sm:$0xff] }
 0x705   :  { %5079 = vmatmul.msk.bf16.vlgmr.msrb.gmra.mxu2 %vm104_vm2, %v3163_v6  ;;  %v3206_v10 = vpack.c.b16 %v3205_v7, %v3205_v7  ;;  %v3259_v11 = vpack.c.b16 %v3258_v8, %v3258_v8  ;;  %v3313_v12 = vpack.c.b16 %v3312_v9, %v3312_v9  ;;  %v3366_v18 = vsel %vm427_vm4, %v3365_v13, %v3364_v14  ;;  %v5578_v0 = vld [vmem:[%s6653_s8 + $0x3] ss:$0 sm:$0xff] }
 0x706   :  { %v3420_v22 = vsel %vm427_vm4, %v3419_v15, %v3418_v19  ;;  %v3474_v23 = vsel %vm427_vm4, %v3473_v16, %v3472_v20  ;;  %v3367_v24 = vpack.c.b16 %v3366_v18, %v3366_v18  ;;  %v3528_v25 = vsel %vm427_vm4, %v3527_v17, %v3526_v21  ;;  %3624 = vmatpush.bf16.msrb.mxu2 %v5551_v29  ;;  %v5579_v7 = vld [vmem:[%s6656_s10 + $0x3] ss:$0 sm:$0xff] }
 0x707   :  { %5096 = vmatmul.msk.bf16.vlgmr.msrb.gmra.mxu3 %vm104_vm2, %v3206_v10  ;;  %5121 = vmatmul.msk.bf16.vlgmr.msra.gmra.mxu0 %vm104_vm2, %v3259_v11  ;;  %v3421_v26 = vpack.c.b16 %v3420_v22, %v3420_v22  ;;  %v3475_v27 = vpack.c.b16 %v3474_v23, %v3474_v23  ;;  %v3529_v28 = vpack.c.b16 %v3528_v25, %v3528_v25  ;;  %v3691_v11 = vpop.permute.xlu0 %3690 }
 0x708   :  { %5146 = vmatmul.msk.bf16.vlgmr.msra.gmra.mxu1 %vm104_vm2, %v3313_v12  ;;  %3680 = vmatpush.bf16.msrb.mxu3 %v5555_v35  ;;  %v5565_v12 = vld [vmem:[%s6656_s10] ss:$0 sm:$0xff] }
 0x709   :  { %v947_v13 = vadd.f32 %v5565_v12, %v5989_v1 }
 0x70a   :  { %3625 = vmatpush.bf16.msrb.mxu2 %v5550_v30 }
 0x70b   :  { %v3702_v15 = vsel %vm3701_vm5, %v947_v13, %v3691_v11 }
 0x70c   :  { %3681 = vmatpush.bf16.msrb.mxu3 %v5554_v37 }
 0x70e   :  { %3626 = vmatpush.bf16.msrb.mxu2 %v5549_v31 }
 0x710   :  { %3682 = vmatpush.bf16.msrb.mxu3 %v5553_v41 }
 0x712   :  { %3627 = vmatpush.bf16.msrb.mxu2 %v5548_v33 }
 0x714   :  { %3683 = vmatpush.bf16.msrb.mxu3 %v5552_v63 }
 0x715   :  { %5171 = vmatmul.msk.bf16.vlgmr.msra.gmra.mxu2 %vm104_vm2, %v3367_v24 }
 0x717   :  { %5196 = vmatmul.msk.bf16.vlgmr.msra.gmra.mxu3 %vm104_vm2, %v3421_v26  ;;  %5221 = vmatmul.msk.bf16.vlgmr.msrb.gmra.mxu0 %vm104_vm2, %v3475_v27 }
 0x718   :  { %5246 = vmatmul.msk.bf16.vlgmr.msrb.gmra.mxu1 %vm104_vm2, %v3529_v28 }
 0x740   :  { %v3695_v14 = vpop.permute.xlu0 %3694 }
 0x741   :  { %v3704_v16 = vsel %vm3703_vm6, %v3702_v15, %v3695_v14 }
 0x784   :  { %v3296_v32 = vpop.f32.mrf.mxu0 }
 0x785   :  { %v3350_v34 = vpop.f32.mrf.mxu1 }
 0x788   :  { %v3200_v36 = vpop.f32.mrf.mxu2 }
 0x78a   :  { %v3243_v38 = vpop.f32.mrf.mxu3 }
 0x78b   :  { %v3244_v42 = vadd.f32 %v3243_v38, %v3200_v36 }
 0x78c   :  { %v3298_v39 = vpop.f32.mrf.mxu0 }
 0x78d   :  { %v3352_v40 = vpop.f32.mrf.mxu1  ;;  %v3300_v45 = vadd.f32 %v3296_v32, %v3244_v42 }
 0x78f   :  { %v3354_v48 = vadd.f32 %v3350_v34, %v3300_v45 }
 0x790   :  { %v3202_v43 = vpop.f32.mrf.mxu2 }
 0x792   :  { %v3245_v44 = vpop.f32.mrf.mxu3 }
 0x794   :  { %v3512_v46 = vpop.f32.mrf.mxu0 }
 0x795   :  { %v3566_v47 = vpop.f32.mrf.mxu1 }
 0x798   :  { %v3404_v49 = vpop.f32.mrf.mxu2 }
 0x799   :  { %v3408_v50 = vadd.f32 %v3404_v49, %v3354_v48 }
 0x79a   :  { %v3458_v51 = vpop.f32.mrf.mxu3 }
 0x79b   :  { %v3462_v52 = vadd.f32 %v3458_v51, %v3408_v50 }
 0x79c   :  { %v3514_v53 = vpop.f32.mrf.mxu0 }
 0x79d   :  { %v3516_v54 = vadd.f32 %v3512_v46, %v3462_v52  ;;  %v3568_v56 = vpop.f32.mrf.mxu1 }
 0x79f   :  { %v3570_v57 = vadd.f32 %v3566_v47, %v3516_v54 }
 0x7a0   :  { %v3406_v58 = vpop.f32.mrf.mxu2 }
 0x7a1   :  { %v3576_v59 = vadd.f32 %v5577_v55, %v3570_v57 }
 0x7a2   :  { %v3460_v60 = vpop.f32.mrf.mxu3 }
 0x7a3   :  { %v3577_v61 = vmax.f32 %v3576_v59, 0.0 }
 0x7a5   :  { %v3578_v62 = vpack.c.bf16 %v3577_v61, %v3577_v61 }
 0x7a7   :  { %5273 = vmatmul.msk.bf16.vlgmr.msrb.gmra.mxu2 %vm104_vm2, %v3578_v62 }
 0x82a   :  { %v3629_v2 = vpop.f32.mrf.mxu2 }
 0x82b   :  { %v3630_v3 = vadd.f32 %v5578_v0, %v3629_v2 }
 0x82d   :  { %v3633_v4 = vmax.f32 %v3630_v3, 0.0 }
 0x82f   :  { %v3634_v5 = vpack.c.bf16 %v3633_v4, %v3633_v4 }
 0x831   :  { %5299 = vmatmul.msk.bf16.vlgmr.msrb.gmra.mxu3 %vm104_vm2, %v3634_v5 }
 0x832   :  { %v3631_v6 = vpop.f32.mrf.mxu2 }
 0x8b4   :  { %v3685_v8 = vpop.f32.mrf.mxu3 }
 0x8b5   :  { %v3686_v9 = vadd.f32 %v5579_v7, %v3685_v8 }
 0x8b7   :  { %3698 = vrot.lane.b32.xlu1 %v3686_v9, %s5583_s25 }
 0x8bc   :  { %v3687_v10 = vpop.f32.mrf.mxu3 }
 0x929   :  { %v3699_v17 = vpop.permute.xlu1 %3698 }
 0x92a   :  { %v3706_v18 = vsel %vm3705_vm7, %v3704_v16, %v3699_v17 }
 0x92b   :  { %3708 = vst.msk [vmem:[%s6657_s11] sm:$0x3] %vm3707_vm8, %v3706_v18 }

</bundles_post_ra>
